<compile_context>
chip_gen: v7x
topology: tpu7x:2x2x1
jax: 0.10.0
libtpu: 0.0.40
codegen_flags: <defaults>
</compile_context>

<pallas_src>
import functools

import numpy as np
import jax
import jax.numpy as jnp
from jax import lax
from jax.experimental import pallas as pl
from jax.experimental.pallas import tpu as pltpu

# ----------------------------- configuration --------------------------------
B = 2          # batch
L_DEC = 8      # decoder sequence length
L_ENC = 16     # encoder (cross) sequence length
D_MODEL = 32   # model width
N_HEADS = 4    # attention heads
D_FF = 32      # feed-forward width
C_OUT = 4      # output channels
MOVING_AVG = 5 # series_decomp kernel size (odd)
N_LAYERS = 2
LN_EPS = 1e-5


# ----------------------------- constant operators ----------------------------
def _moving_avg_matrix(length, k):
    """A[i, t]: replicate-padded moving average of window k (series_decomp)."""
    pad = (k - 1) // 2
    mat = np.zeros((length, length), np.float32)
    for i in range(length):
        for j in range(k):
            t = min(max(i + j - pad, 0), length - 1)
            mat[i, t] += 1.0 / k
    return mat


def _block_diag(mat, n_blocks):
    """kron(I_n, mat) — applies `mat` independently to each batch block."""
    return np.kron(np.eye(n_blocks, dtype=np.float32), mat.astype(np.float32))


# ----------------------------- fused kernel ----------------------------------
def _decoder_fused_kernel(
        x_ref, cross_ref, trend_ref, avg_ref, seqmean_ref,
        sa_wqkv_ref, sa_bqkv_ref, sa_wo_ref, sa_bo_ref,
        ca_wq_ref, ca_bq_ref, ca_wkv_ref, ca_bkv_ref, ca_wo_ref, ca_bo_ref,
        w1_ref, w2_ref, wt_ref,
        g_ref, bn_ref, pw_ref, pb_ref,
        out_ref,
        *, n_heads, n_layers, n_batch, l_dec, l_enc, eps):
    """Whole Autoformer Decoder forward, batch-stacked along sublanes."""
    d = x_ref.shape[-1]
    dk = d // n_heads

    avg = avg_ref[...]          # (BL, BL) block-diag moving-average operator
    g = g_ref[...]              # (1, D)   my_Layernorm gamma
    bn = bn_ref[...]            # (1, D)   my_Layernorm beta
    pw = pw_ref[...]            # (D, C)   final Linear weight
    pb = pb_ref[...]            # (1, C)   final Linear bias

    xb = x_ref[...]             # (B*Ld, D)
    cb = cross_ref[...]         # (B*Le, D)
    tb = trend_ref[...]         # (B*Ld, C)

    def mha(xq, q, k, v, wo, bo, lq, lk):
        """Residual MHA; only score/context dots are per-batch."""
        ctx_rows = []
        for b in range(n_batch):
            qb = q[b * lq:(b + 1) * lq, :]
            kb = k[b * lk:(b + 1) * lk, :]
            vb = v[b * lk:(b + 1) * lk, :]
            heads = []
            for h in range(n_heads):
                sl = slice(h * dk, (h + 1) * dk)
                # NT matmul: contract the head dim of both operands (no K^T).
                s = lax.dot_general(qb[:, sl], kb[:, sl],
                                    (((1,), (1,)), ((), ())),
                                    preferred_element_type=jnp.float32)
                s = s - jnp.max(s, axis=-1, keepdims=True)
                e = jnp.exp(s)
                p = e * pl.reciprocal(jnp.sum(e, axis=-1, keepdims=True),
                                      approx=True)
                heads.append(jnp.dot(p, vb[:, sl],
                                     preferred_element_type=jnp.float32))
            ctx_rows.append(jnp.concatenate(heads, axis=-1))   # (lq, D)
        ctx = jnp.concatenate(ctx_rows, axis=0)                # (B*lq, D)
        return xq + jnp.dot(ctx, wo, preferred_element_type=jnp.float32) + bo

    def decomp(xin):
        """series_decomp via constant block-diagonal (BL, BL) operator."""
        mean = jnp.dot(avg, xin, preferred_element_type=jnp.float32)
        return xin - mean, mean

    for li in range(n_layers):
        # ---- self attention (fused QKV, scale folded into Wq/bq) ----
        qkv = (jnp.dot(xb, sa_wqkv_ref[li], preferred_element_type=jnp.float32)
               + sa_bqkv_ref[li])                               # (BL, 3D)
        q = qkv[:, 0:d]
        k = qkv[:, d:2 * d]
        v = qkv[:, 2 * d:3 * d]
        xb = mha(xb, q, k, v, sa_wo_ref[li], sa_bo_ref[li], l_dec, l_dec)
        xb, t1 = decomp(xb)

        # ---- cross attention (fused KV on the encoder stream) ----
        q = (jnp.dot(xb, ca_wq_ref[li], preferred_element_type=jnp.float32)
             + ca_bq_ref[li])                                   # (BL, D)
        kv = (jnp.dot(cb, ca_wkv_ref[li], preferred_element_type=jnp.float32)
              + ca_bkv_ref[li])                                 # (BS, 2D)
        k = kv[:, 0:d]
        v = kv[:, d:2 * d]
        xb = mha(xb, q, k, v, ca_wo_ref[li], ca_bo_ref[li], l_dec, l_enc)
        xb, t2 = decomp(xb)

        # ---- FFN: x + conv2(relu(conv1(x)))  (kernel-size-1 convs) ----
        y = jnp.maximum(
            jnp.dot(xb, w1_ref[li], preferred_element_type=jnp.float32), 0.0)
        xb = xb + jnp.dot(y, w2_ref[li], preferred_element_type=jnp.float32)
        xb, t3 = decomp(xb)

        # ---- residual_trend = circular Conv1d(k=3, d_model -> c_out) ----
        trend_in = t1 + t2 + t3                                 # (BL, D)
        cols = []
        for j in range(3):
            sft = (1 - j) % l_dec        # shifted[i] = trend_in[(i+j-1) % L]
            if sft == 0:
                cols.append(trend_in)
            else:
                parts = [pltpu.roll(trend_in[b * l_dec:(b + 1) * l_dec, :],
                                    sft, 0)
                         for b in range(n_batch)]
                cols.append(jnp.concatenate(parts, axis=0))
        trend_feat = jnp.concatenate(cols, axis=-1)             # (BL, 3D)
        tb = tb + jnp.dot(trend_feat, wt_ref[li],
                          preferred_element_type=jnp.float32)   # (BL, C)

    # ---- my_Layernorm: LayerNorm(D) then subtract per-batch seq mean ----
    mu = jnp.mean(xb, axis=-1, keepdims=True)
    xc = xb - mu
    var = jnp.mean(xc * xc, axis=-1, keepdims=True)
    xhat = xc * lax.rsqrt(var + eps) * g + bn
    xhat = xhat - jnp.dot(seqmean_ref[...], xhat,
                          preferred_element_type=jnp.float32)

    # ---- final Linear(d_model -> c_out), packed with trend (single store) ----
    proj = jnp.dot(xhat, pw, preferred_element_type=jnp.float32) + pb
    out_ref[...] = jnp.concatenate([proj, tb], axis=-1)         # (BL, 2C)


# ----------------------------- wrapper ----------------------------------------
def decoder_forward(x, cross, trend, params):
    b, l, d = x.shape
    s = cross.shape[1]
    c_out = trend.shape[-1]

    # Constant block-diagonal operators (per-batch moving avg / seq mean).
    avg_big = jnp.asarray(_block_diag(_moving_avg_matrix(l, MOVING_AVG), b))
    seqmean = jnp.asarray(_block_diag(np.full((l, l), 1.0 / l, np.float32), b))

    kernel = functools.partial(_decoder_fused_kernel,
                               n_heads=N_HEADS, n_layers=N_LAYERS, n_batch=b,
                               l_dec=l, l_enc=s, eps=LN_EPS)

    # Single fused, gridless call: whole working set (<1 MiB) stays in VMEM.
    packed = pl.pallas_call(
        kernel,
        out_shape=jax.ShapeDtypeStruct((b * l, 2 * c_out), jnp.float32),
        compiler_params=pltpu.CompilerParams(vmem_limit_bytes=16 * 1024 * 1024),
    )(x.reshape(b * l, d), cross.reshape(b * s, d), trend.reshape(b * l, c_out),
      avg_big, seqmean,
      params["sa_wqkv"], params["sa_bqkv"], params["sa_wo"], params["sa_bo"],
      params["ca_wq"], params["ca_bq"], params["ca_wkv"], params["ca_bkv"],
      params["ca_wo"], params["ca_bo"],
      params["w1"], params["w2"], params["w_trend"],
      params["norm_g"], params["norm_b"], params["proj_w"], params["proj_b"])

    packed = packed.reshape(b, l, 2 * c_out)
    return packed[..., :c_out], packed[..., c_out:]


# ----------------------------- parameter init --------------------------------
def init_params(key):
    keys = iter(jax.random.split(key, 32))

    def nrm(shape, scale=0.1):
        return scale * jax.random.normal(next(keys), shape, dtype=jnp.float32)

    nl = N_LAYERS
    dk = D_MODEL // N_HEADS
    qscale = 1.0 / (dk ** 0.5)   # softmax scale folded into Wq / bq

    # raw per-component weights (PyTorch-style), then packed/folded once here
    sa_wq = nrm((nl, D_MODEL, D_MODEL)); sa_wk = nrm((nl, D_MODEL, D_MODEL))
    sa_wv = nrm((nl, D_MODEL, D_MODEL)); sa_wo = nrm((nl, D_MODEL, D_MODEL))
    sa_bq = nrm((nl, 1, D_MODEL), 0.02); sa_bk = nrm((nl, 1, D_MODEL), 0.02)
    sa_bv = nrm((nl, 1, D_MODEL), 0.02); sa_bo = nrm((nl, 1, D_MODEL), 0.02)

    ca_wq = nrm((nl, D_MODEL, D_MODEL)); ca_wk = nrm((nl, D_MODEL, D_MODEL))
    ca_wv = nrm((nl, D_MODEL, D_MODEL)); ca_wo = nrm((nl, D_MODEL, D_MODEL))
    ca_bq = nrm((nl, 1, D_MODEL), 0.02); ca_bk = nrm((nl, 1, D_MODEL), 0.02)
    ca_bv = nrm((nl, 1, D_MODEL), 0.02); ca_bo = nrm((nl, 1, D_MODEL), 0.02)

    w_trend = nrm((nl, 3, D_MODEL, C_OUT))   # circular Conv1d(d_model, c_out, 3)

    return dict(
        # self-attention: fused QKV, softmax scale folded into the Q part
        sa_wqkv=jnp.concatenate([sa_wq * qscale, sa_wk, sa_wv], axis=-1),
        sa_bqkv=jnp.concatenate([sa_bq * qscale, sa_bk, sa_bv], axis=-1),
        sa_wo=sa_wo, sa_bo=sa_bo,
        # cross-attention: fused KV (K/V share the `cross` input), scaled Q
        ca_wq=ca_wq * qscale, ca_bq=ca_bq * qscale,
        ca_wkv=jnp.concatenate([ca_wk, ca_wv], axis=-1),
        ca_bkv=jnp.concatenate([ca_bk, ca_bv], axis=-1),
        ca_wo=ca_wo, ca_bo=ca_bo,
        # feed-forward (Conv1d kernel_size=1, no bias)
        w1=nrm((nl, D_MODEL, D_FF)), w2=nrm((nl, D_FF, D_MODEL)),
        # trend projection weights stacked along the "shift" axis: (nl, 3D, C)
        w_trend=w_trend.reshape(nl, 3 * D_MODEL, C_OUT),
        # my_Layernorm + final Linear projection
        norm_g=jnp.ones((1, D_MODEL), jnp.float32),
        norm_b=jnp.zeros((1, D_MODEL), jnp.float32),
        proj_w=nrm((D_MODEL, C_OUT)),
        proj_b=nrm((1, C_OUT), 0.02),
    )


# ----------------------------- main -------------------------------------------
if __name__ == "__main__":
    key = jax.random.PRNGKey(0)
    kx, kc, kt, kp = jax.random.split(key, 4)
    x = jax.random.normal(kx, (B, L_DEC, D_MODEL), dtype=jnp.float32)
    cross = jax.random.normal(kc, (B, L_ENC, D_MODEL), dtype=jnp.float32)
    trend = jax.random.normal(kt, (B, L_DEC, C_OUT), dtype=jnp.float32)
    params = init_params(kp)

    out, trend_out = jax.jit(decoder_forward)(x, cross, trend, params)
    jax.block_until_ready((out, trend_out))
    assert out.shape == (B, L_DEC, C_OUT) and trend_out.shape == (B, L_DEC, C_OUT)
    print("KERNEL_OK")
</pallas_src>

<mosaic_0001>
module attributes {stable_mosaic.version = 11 : i64} {
  func.func @_decoder_fused_kernel(%arg0: memref<16x32xf32, #tpu.memory_space<vmem>>, %arg1: memref<32x32xf32, #tpu.memory_space<vmem>>, %arg2: memref<16x4xf32, #tpu.memory_space<vmem>>, %arg3: memref<16x16xf32, #tpu.memory_space<vmem>>, %arg4: memref<16x16xf32, #tpu.memory_space<vmem>>, %arg5: memref<2x32x96xf32, #tpu.memory_space<vmem>>, %arg6: memref<2x1x96xf32, #tpu.memory_space<vmem>>, %arg7: memref<2x32x32xf32, #tpu.memory_space<vmem>>, %arg8: memref<2x1x32xf32, #tpu.memory_space<vmem>>, %arg9: memref<2x32x32xf32, #tpu.memory_space<vmem>>, %arg10: memref<2x1x32xf32, #tpu.memory_space<vmem>>, %arg11: memref<2x32x64xf32, #tpu.memory_space<vmem>>, %arg12: memref<2x1x64xf32, #tpu.memory_space<vmem>>, %arg13: memref<2x32x32xf32, #tpu.memory_space<vmem>>, %arg14: memref<2x1x32xf32, #tpu.memory_space<vmem>>, %arg15: memref<2x32x32xf32, #tpu.memory_space<vmem>>, %arg16: memref<2x32x32xf32, #tpu.memory_space<vmem>>, %arg17: memref<2x96x4xf32, #tpu.memory_space<vmem>>, %arg18: memref<1x32xf32, #tpu.memory_space<vmem>>, %arg19: memref<1x32xf32, #tpu.memory_space<vmem>>, %arg20: memref<32x4xf32, #tpu.memory_space<vmem>>, %arg21: memref<1x4xf32, #tpu.memory_space<vmem>>, %arg22: memref<16x8xf32, #tpu.memory_space<vmem>>) attributes {dimension_semantics = [], scalar_prefetch = 0 : i64, scratch_operands = 0 : i64, tpu.core_type = #tpu.core_type<tc>} {
    %c0 = arith.constant 0 : index
    %c0_0 = arith.constant 0 : index
    %0 = vector.load %arg3[%c0, %c0_0] : memref<16x16xf32, #tpu.memory_space<vmem>>, vector<16x16xf32>
    %c0_1 = arith.constant 0 : index
    %c0_2 = arith.constant 0 : index
    %1 = vector.load %arg18[%c0_1, %c0_2] : memref<1x32xf32, #tpu.memory_space<vmem>>, vector<1x32xf32>
    %c0_3 = arith.constant 0 : index
    %c0_4 = arith.constant 0 : index
    %2 = vector.load %arg19[%c0_3, %c0_4] : memref<1x32xf32, #tpu.memory_space<vmem>>, vector<1x32xf32>
    %c0_5 = arith.constant 0 : index
    %c0_6 = arith.constant 0 : index
    %3 = vector.load %arg20[%c0_5, %c0_6] : memref<32x4xf32, #tpu.memory_space<vmem>>, vector<32x4xf32>
    %c0_7 = arith.constant 0 : index
    %c0_8 = arith.constant 0 : index
    %4 = vector.load %arg21[%c0_7, %c0_8] : memref<1x4xf32, #tpu.memory_space<vmem>>, vector<1x4xf32>
    %c0_9 = arith.constant 0 : index
    %c0_10 = arith.constant 0 : index
    %5 = vector.load %arg0[%c0_9, %c0_10] : memref<16x32xf32, #tpu.memory_space<vmem>>, vector<16x32xf32>
    %c0_11 = arith.constant 0 : index
    %c0_12 = arith.constant 0 : index
    %6 = vector.load %arg1[%c0_11, %c0_12] : memref<32x32xf32, #tpu.memory_space<vmem>>, vector<32x32xf32>
    %c0_13 = arith.constant 0 : index
    %c0_14 = arith.constant 0 : index
    %7 = vector.load %arg2[%c0_13, %c0_14] : memref<16x4xf32, #tpu.memory_space<vmem>>, vector<16x4xf32>
    %c0_15 = arith.constant 0 : index
    %c0_16 = arith.constant 0 : index
    %c0_17 = arith.constant 0 : index
    %8 = vector.load %arg5[%c0_15, %c0_16, %c0_17] : memref<2x32x96xf32, #tpu.memory_space<vmem>>, vector<1x32x96xf32>
    %9 = vector.shape_cast %8 : vector<1x32x96xf32> to vector<32x96xf32>
    %cst = arith.constant dense<0.000000e+00> : vector<16x96xf32>
    %10 = tpu.matmul %5, %9, %cst {dimension_numbers = #tpu.dot_dimension_numbers<[1], [0], [0], [1], [0, 0, 1, 1], [], []>} : vector<16x32xf32>, vector<32x96xf32>, vector<16x96xf32> -> vector<16x96xf32>
    %c0_18 = arith.constant 0 : index
    %c0_19 = arith.constant 0 : index
    %c0_20 = arith.constant 0 : index
    %11 = vector.load %arg6[%c0_18, %c0_19, %c0_20] : memref<2x1x96xf32, #tpu.memory_space<vmem>>, vector<1x1x96xf32>
    %12 = vector.shape_cast %11 : vector<1x1x96xf32> to vector<1x96xf32>
    %13 = vector.broadcast %12 : vector<1x96xf32> to vector<16x96xf32>
    %14 = arith.addf %10, %13 : vector<16x96xf32>
    %15 = vector.extract_strided_slice %14 {offsets = [0, 0], sizes = [16, 32], strides = [1, 1]} : vector<16x96xf32> to vector<16x32xf32>
    %16 = vector.extract_strided_slice %14 {offsets = [0, 32], sizes = [16, 32], strides = [1, 1]} : vector<16x96xf32> to vector<16x32xf32>
    %17 = vector.extract_strided_slice %14 {offsets = [0, 64], sizes = [16, 32], strides = [1, 1]} : vector<16x96xf32> to vector<16x32xf32>
    %c0_21 = arith.constant 0 : index
    %c0_22 = arith.constant 0 : index
    %c0_23 = arith.constant 0 : index
    %18 = vector.load %arg7[%c0_21, %c0_22, %c0_23] : memref<2x32x32xf32, #tpu.memory_space<vmem>>, vector<1x32x32xf32>
    %19 = vector.shape_cast %18 : vector<1x32x32xf32> to vector<32x32xf32>
    %c0_24 = arith.constant 0 : index
    %c0_25 = arith.constant 0 : index
    %c0_26 = arith.constant 0 : index
    %20 = vector.load %arg8[%c0_24, %c0_25, %c0_26] : memref<2x1x32xf32, #tpu.memory_space<vmem>>, vector<1x1x32xf32>
    %21 = vector.shape_cast %20 : vector<1x1x32xf32> to vector<1x32xf32>
    %22 = vector.extract_strided_slice %15 {offsets = [0, 0], sizes = [8, 32], strides = [1, 1]} : vector<16x32xf32> to vector<8x32xf32>
    %23 = vector.extract_strided_slice %16 {offsets = [0, 0], sizes = [8, 32], strides = [1, 1]} : vector<16x32xf32> to vector<8x32xf32>
    %24 = vector.extract_strided_slice %17 {offsets = [0, 0], sizes = [8, 32], strides = [1, 1]} : vector<16x32xf32> to vector<8x32xf32>
    %25 = vector.extract_strided_slice %22 {offsets = [0, 0], sizes = [8, 8], strides = [1, 1]} : vector<8x32xf32> to vector<8x8xf32>
    %26 = vector.extract_strided_slice %23 {offsets = [0, 0], sizes = [8, 8], strides = [1, 1]} : vector<8x32xf32> to vector<8x8xf32>
    %cst_27 = arith.constant dense<0.000000e+00> : vector<8x8xf32>
    %27 = tpu.matmul %25, %26, %cst_27 {dimension_numbers = #tpu.dot_dimension_numbers<[1], [1], [0], [0], [0, 0, 1, 0], [], []>} : vector<8x8xf32>, vector<8x8xf32>, vector<8x8xf32> -> vector<8x8xf32>
    %cst_28 = arith.constant dense<0xFF800000> : vector<8xf32>
    %28 = vector.multi_reduction <maximumf>, %27, %cst_28 [1] : vector<8x8xf32> to vector<8xf32>
    %29 = vector.shape_cast %28 : vector<8xf32> to vector<8x1xf32>
    %30 = vector.broadcast %29 : vector<8x1xf32> to vector<8x8xf32>
    %31 = arith.subf %27, %30 : vector<8x8xf32>
    %32 = math.exp %31 : vector<8x8xf32>
    %cst_29 = arith.constant dense<0.000000e+00> : vector<8xf32>
    %33 = vector.multi_reduction <add>, %32, %cst_29 [1] : vector<8x8xf32> to vector<8xf32>
    %34 = vector.shape_cast %33 : vector<8xf32> to vector<8x1xf32>
    %35 = tpu.reciprocal %34 {approx = true} : vector<8x1xf32> -> vector<8x1xf32>
    %36 = vector.broadcast %35 : vector<8x1xf32> to vector<8x8xf32>
    %37 = arith.mulf %32, %36 : vector<8x8xf32>
    %38 = vector.extract_strided_slice %24 {offsets = [0, 0], sizes = [8, 8], strides = [1, 1]} : vector<8x32xf32> to vector<8x8xf32>
    %cst_30 = arith.constant dense<0.000000e+00> : vector<8x8xf32>
    %39 = tpu.matmul %37, %38, %cst_30 {dimension_numbers = #tpu.dot_dimension_numbers<[1], [0], [0], [1], [0, 0, 1, 1], [], []>} : vector<8x8xf32>, vector<8x8xf32>, vector<8x8xf32> -> vector<8x8xf32>
    %40 = vector.extract_strided_slice %22 {offsets = [0, 8], sizes = [8, 8], strides = [1, 1]} : vector<8x32xf32> to vector<8x8xf32>
    %41 = vector.extract_strided_slice %23 {offsets = [0, 8], sizes = [8, 8], strides = [1, 1]} : vector<8x32xf32> to vector<8x8xf32>
    %cst_31 = arith.constant dense<0.000000e+00> : vector<8x8xf32>
    %42 = tpu.matmul %40, %41, %cst_31 {dimension_numbers = #tpu.dot_dimension_numbers<[1], [1], [0], [0], [0, 0, 1, 0], [], []>} : vector<8x8xf32>, vector<8x8xf32>, vector<8x8xf32> -> vector<8x8xf32>
    %cst_32 = arith.constant dense<0xFF800000> : vector<8xf32>
    %43 = vector.multi_reduction <maximumf>, %42, %cst_32 [1] : vector<8x8xf32> to vector<8xf32>
    %44 = vector.shape_cast %43 : vector<8xf32> to vector<8x1xf32>
    %45 = vector.broadcast %44 : vector<8x1xf32> to vector<8x8xf32>
    %46 = arith.subf %42, %45 : vector<8x8xf32>
    %47 = math.exp %46 : vector<8x8xf32>
    %cst_33 = arith.constant dense<0.000000e+00> : vector<8xf32>
    %48 = vector.multi_reduction <add>, %47, %cst_33 [1] : vector<8x8xf32> to vector<8xf32>
    %49 = vector.shape_cast %48 : vector<8xf32> to vector<8x1xf32>
    %50 = tpu.reciprocal %49 {approx = true} : vector<8x1xf32> -> vector<8x1xf32>
    %51 = vector.broadcast %50 : vector<8x1xf32> to vector<8x8xf32>
    %52 = arith.mulf %47, %51 : vector<8x8xf32>
    %53 = vector.extract_strided_slice %24 {offsets = [0, 8], sizes = [8, 8], strides = [1, 1]} : vector<8x32xf32> to vector<8x8xf32>
    %cst_34 = arith.constant dense<0.000000e+00> : vector<8x8xf32>
    %54 = tpu.matmul %52, %53, %cst_34 {dimension_numbers = #tpu.dot_dimension_numbers<[1], [0], [0], [1], [0, 0, 1, 1], [], []>} : vector<8x8xf32>, vector<8x8xf32>, vector<8x8xf32> -> vector<8x8xf32>
    %55 = vector.extract_strided_slice %22 {offsets = [0, 16], sizes = [8, 8], strides = [1, 1]} : vector<8x32xf32> to vector<8x8xf32>
    %56 = vector.extract_strided_slice %23 {offsets = [0, 16], sizes = [8, 8], strides = [1, 1]} : vector<8x32xf32> to vector<8x8xf32>
    %cst_35 = arith.constant dense<0.000000e+00> : vector<8x8xf32>
    %57 = tpu.matmul %55, %56, %cst_35 {dimension_numbers = #tpu.dot_dimension_numbers<[1], [1], [0], [0], [0, 0, 1, 0], [], []>} : vector<8x8xf32>, vector<8x8xf32>, vector<8x8xf32> -> vector<8x8xf32>
    %cst_36 = arith.constant dense<0xFF800000> : vector<8xf32>
    %58 = vector.multi_reduction <maximumf>, %57, %cst_36 [1] : vector<8x8xf32> to vector<8xf32>
    %59 = vector.shape_cast %58 : vector<8xf32> to vector<8x1xf32>
    %60 = vector.broadcast %59 : vector<8x1xf32> to vector<8x8xf32>
    %61 = arith.subf %57, %60 : vector<8x8xf32>
    %62 = math.exp %61 : vector<8x8xf32>
    %cst_37 = arith.constant dense<0.000000e+00> : vector<8xf32>
    %63 = vector.multi_reduction <add>, %62, %cst_37 [1] : vector<8x8xf32> to vector<8xf32>
    %64 = vector.shape_cast %63 : vector<8xf32> to vector<8x1xf32>
    %65 = tpu.reciprocal %64 {approx = true} : vector<8x1xf32> -> vector<8x1xf32>
    %66 = vector.broadcast %65 : vector<8x1xf32> to vector<8x8xf32>
    %67 = arith.mulf %62, %66 : vector<8x8xf32>
    %68 = vector.extract_strided_slice %24 {offsets = [0, 16], sizes = [8, 8], strides = [1, 1]} : vector<8x32xf32> to vector<8x8xf32>
    %cst_38 = arith.constant dense<0.000000e+00> : vector<8x8xf32>
    %69 = tpu.matmul %67, %68, %cst_38 {dimension_numbers = #tpu.dot_dimension_numbers<[1], [0], [0], [1], [0, 0, 1, 1], [], []>} : vector<8x8xf32>, vector<8x8xf32>, vector<8x8xf32> -> vector<8x8xf32>
    %70 = vector.extract_strided_slice %22 {offsets = [0, 24], sizes = [8, 8], strides = [1, 1]} : vector<8x32xf32> to vector<8x8xf32>
    %71 = vector.extract_strided_slice %23 {offsets = [0, 24], sizes = [8, 8], strides = [1, 1]} : vector<8x32xf32> to vector<8x8xf32>
    %cst_39 = arith.constant dense<0.000000e+00> : vector<8x8xf32>
    %72 = tpu.matmul %70, %71, %cst_39 {dimension_numbers = #tpu.dot_dimension_numbers<[1], [1], [0], [0], [0, 0, 1, 0], [], []>} : vector<8x8xf32>, vector<8x8xf32>, vector<8x8xf32> -> vector<8x8xf32>
    %cst_40 = arith.constant dense<0xFF800000> : vector<8xf32>
    %73 = vector.multi_reduction <maximumf>, %72, %cst_40 [1] : vector<8x8xf32> to vector<8xf32>
    %74 = vector.shape_cast %73 : vector<8xf32> to vector<8x1xf32>
    %75 = vector.broadcast %74 : vector<8x1xf32> to vector<8x8xf32>
    %76 = arith.subf %72, %75 : vector<8x8xf32>
    %77 = math.exp %76 : vector<8x8xf32>
    %cst_41 = arith.constant dense<0.000000e+00> : vector<8xf32>
    %78 = vector.multi_reduction <add>, %77, %cst_41 [1] : vector<8x8xf32> to vector<8xf32>
    %79 = vector.shape_cast %78 : vector<8xf32> to vector<8x1xf32>
    %80 = tpu.reciprocal %79 {approx = true} : vector<8x1xf32> -> vector<8x1xf32>
    %81 = vector.broadcast %80 : vector<8x1xf32> to vector<8x8xf32>
    %82 = arith.mulf %77, %81 : vector<8x8xf32>
    %83 = vector.extract_strided_slice %24 {offsets = [0, 24], sizes = [8, 8], strides = [1, 1]} : vector<8x32xf32> to vector<8x8xf32>
    %cst_42 = arith.constant dense<0.000000e+00> : vector<8x8xf32>
    %84 = tpu.matmul %82, %83, %cst_42 {dimension_numbers = #tpu.dot_dimension_numbers<[1], [0], [0], [1], [0, 0, 1, 1], [], []>} : vector<8x8xf32>, vector<8x8xf32>, vector<8x8xf32> -> vector<8x8xf32>
    %85 = tpu.concatenate %39, %54, %69, %84 in 1 : vector<8x8xf32>, vector<8x8xf32>, vector<8x8xf32>, vector<8x8xf32> -> vector<8x32xf32>
    %86 = vector.extract_strided_slice %15 {offsets = [8, 0], sizes = [8, 32], strides = [1, 1]} : vector<16x32xf32> to vector<8x32xf32>
    %87 = vector.extract_strided_slice %16 {offsets = [8, 0], sizes = [8, 32], strides = [1, 1]} : vector<16x32xf32> to vector<8x32xf32>
    %88 = vector.extract_strided_slice %17 {offsets = [8, 0], sizes = [8, 32], strides = [1, 1]} : vector<16x32xf32> to vector<8x32xf32>
    %89 = vector.extract_strided_slice %86 {offsets = [0, 0], sizes = [8, 8], strides = [1, 1]} : vector<8x32xf32> to vector<8x8xf32>
    %90 = vector.extract_strided_slice %87 {offsets = [0, 0], sizes = [8, 8], strides = [1, 1]} : vector<8x32xf32> to vector<8x8xf32>
    %cst_43 = arith.constant dense<0.000000e+00> : vector<8x8xf32>
    %91 = tpu.matmul %89, %90, %cst_43 {dimension_numbers = #tpu.dot_dimension_numbers<[1], [1], [0], [0], [0, 0, 1, 0], [], []>} : vector<8x8xf32>, vector<8x8xf32>, vector<8x8xf32> -> vector<8x8xf32>
    %cst_44 = arith.constant dense<0xFF800000> : vector<8xf32>
    %92 = vector.multi_reduction <maximumf>, %91, %cst_44 [1] : vector<8x8xf32> to vector<8xf32>
    %93 = vector.shape_cast %92 : vector<8xf32> to vector<8x1xf32>
    %94 = vector.broadcast %93 : vector<8x1xf32> to vector<8x8xf32>
    %95 = arith.subf %91, %94 : vector<8x8xf32>
    %96 = math.exp %95 : vector<8x8xf32>
    %cst_45 = arith.constant dense<0.000000e+00> : vector<8xf32>
    %97 = vector.multi_reduction <add>, %96, %cst_45 [1] : vector<8x8xf32> to vector<8xf32>
    %98 = vector.shape_cast %97 : vector<8xf32> to vector<8x1xf32>
    %99 = tpu.reciprocal %98 {approx = true} : vector<8x1xf32> -> vector<8x1xf32>
    %100 = vector.broadcast %99 : vector<8x1xf32> to vector<8x8xf32>
    %101 = arith.mulf %96, %100 : vector<8x8xf32>
    %102 = vector.extract_strided_slice %88 {offsets = [0, 0], sizes = [8, 8], strides = [1, 1]} : vector<8x32xf32> to vector<8x8xf32>
    %cst_46 = arith.constant dense<0.000000e+00> : vector<8x8xf32>
    %103 = tpu.matmul %101, %102, %cst_46 {dimension_numbers = #tpu.dot_dimension_numbers<[1], [0], [0], [1], [0, 0, 1, 1], [], []>} : vector<8x8xf32>, vector<8x8xf32>, vector<8x8xf32> -> vector<8x8xf32>
    %104 = vector.extract_strided_slice %86 {offsets = [0, 8], sizes = [8, 8], strides = [1, 1]} : vector<8x32xf32> to vector<8x8xf32>
    %105 = vector.extract_strided_slice %87 {offsets = [0, 8], sizes = [8, 8], strides = [1, 1]} : vector<8x32xf32> to vector<8x8xf32>
    %cst_47 = arith.constant dense<0.000000e+00> : vector<8x8xf32>
    %106 = tpu.matmul %104, %105, %cst_47 {dimension_numbers = #tpu.dot_dimension_numbers<[1], [1], [0], [0], [0, 0, 1, 0], [], []>} : vector<8x8xf32>, vector<8x8xf32>, vector<8x8xf32> -> vector<8x8xf32>
    %cst_48 = arith.constant dense<0xFF800000> : vector<8xf32>
    %107 = vector.multi_reduction <maximumf>, %106, %cst_48 [1] : vector<8x8xf32> to vector<8xf32>
    %108 = vector.shape_cast %107 : vector<8xf32> to vector<8x1xf32>
    %109 = vector.broadcast %108 : vector<8x1xf32> to vector<8x8xf32>
    %110 = arith.subf %106, %109 : vector<8x8xf32>
    %111 = math.exp %110 : vector<8x8xf32>
    %cst_49 = arith.constant dense<0.000000e+00> : vector<8xf32>
    %112 = vector.multi_reduction <add>, %111, %cst_49 [1] : vector<8x8xf32> to vector<8xf32>
    %113 = vector.shape_cast %112 : vector<8xf32> to vector<8x1xf32>
    %114 = tpu.reciprocal %113 {approx = true} : vector<8x1xf32> -> vector<8x1xf32>
    %115 = vector.broadcast %114 : vector<8x1xf32> to vector<8x8xf32>
    %116 = arith.mulf %111, %115 : vector<8x8xf32>
    %117 = vector.extract_strided_slice %88 {offsets = [0, 8], sizes = [8, 8], strides = [1, 1]} : vector<8x32xf32> to vector<8x8xf32>
    %cst_50 = arith.constant dense<0.000000e+00> : vector<8x8xf32>
    %118 = tpu.matmul %116, %117, %cst_50 {dimension_numbers = #tpu.dot_dimension_numbers<[1], [0], [0], [1], [0, 0, 1, 1], [], []>} : vector<8x8xf32>, vector<8x8xf32>, vector<8x8xf32> -> vector<8x8xf32>
    %119 = vector.extract_strided_slice %86 {offsets = [0, 16], sizes = [8, 8], strides = [1, 1]} : vector<8x32xf32> to vector<8x8xf32>
    %120 = vector.extract_strided_slice %87 {offsets = [0, 16], sizes = [8, 8], strides = [1, 1]} : vector<8x32xf32> to vector<8x8xf32>
    %cst_51 = arith.constant dense<0.000000e+00> : vector<8x8xf32>
    %121 = tpu.matmul %119, %120, %cst_51 {dimension_numbers = #tpu.dot_dimension_numbers<[1], [1], [0], [0], [0, 0, 1, 0], [], []>} : vector<8x8xf32>, vector<8x8xf32>, vector<8x8xf32> -> vector<8x8xf32>
    %cst_52 = arith.constant dense<0xFF800000> : vector<8xf32>
    %122 = vector.multi_reduction <maximumf>, %121, %cst_52 [1] : vector<8x8xf32> to vector<8xf32>
    %123 = vector.shape_cast %122 : vector<8xf32> to vector<8x1xf32>
    %124 = vector.broadcast %123 : vector<8x1xf32> to vector<8x8xf32>
    %125 = arith.subf %121, %124 : vector<8x8xf32>
    %126 = math.exp %125 : vector<8x8xf32>
    %cst_53 = arith.constant dense<0.000000e+00> : vector<8xf32>
    %127 = vector.multi_reduction <add>, %126, %cst_53 [1] : vector<8x8xf32> to vector<8xf32>
    %128 = vector.shape_cast %127 : vector<8xf32> to vector<8x1xf32>
    %129 = tpu.reciprocal %128 {approx = true} : vector<8x1xf32> -> vector<8x1xf32>
    %130 = vector.broadcast %129 : vector<8x1xf32> to vector<8x8xf32>
    %131 = arith.mulf %126, %130 : vector<8x8xf32>
    %132 = vector.extract_strided_slice %88 {offsets = [0, 16], sizes = [8, 8], strides = [1, 1]} : vector<8x32xf32> to vector<8x8xf32>
    %cst_54 = arith.constant dense<0.000000e+00> : vector<8x8xf32>
    %133 = tpu.matmul %131, %132, %cst_54 {dimension_numbers = #tpu.dot_dimension_numbers<[1], [0], [0], [1], [0, 0, 1, 1], [], []>} : vector<8x8xf32>, vector<8x8xf32>, vector<8x8xf32> -> vector<8x8xf32>
    %134 = vector.extract_strided_slice %86 {offsets = [0, 24], sizes = [8, 8], strides = [1, 1]} : vector<8x32xf32> to vector<8x8xf32>
    %135 = vector.extract_strided_slice %87 {offsets = [0, 24], sizes = [8, 8], strides = [1, 1]} : vector<8x32xf32> to vector<8x8xf32>
    %cst_55 = arith.constant dense<0.000000e+00> : vector<8x8xf32>
    %136 = tpu.matmul %134, %135, %cst_55 {dimension_numbers = #tpu.dot_dimension_numbers<[1], [1], [0], [0], [0, 0, 1, 0], [], []>} : vector<8x8xf32>, vector<8x8xf32>, vector<8x8xf32> -> vector<8x8xf32>
    %cst_56 = arith.constant dense<0xFF800000> : vector<8xf32>
    %137 = vector.multi_reduction <maximumf>, %136, %cst_56 [1] : vector<8x8xf32> to vector<8xf32>
    %138 = vector.shape_cast %137 : vector<8xf32> to vector<8x1xf32>
    %139 = vector.broadcast %138 : vector<8x1xf32> to vector<8x8xf32>
    %140 = arith.subf %136, %139 : vector<8x8xf32>
    %141 = math.exp %140 : vector<8x8xf32>
    %cst_57 = arith.constant dense<0.000000e+00> : vector<8xf32>
    %142 = vector.multi_reduction <add>, %141, %cst_57 [1] : vector<8x8xf32> to vector<8xf32>
    %143 = vector.shape_cast %142 : vector<8xf32> to vector<8x1xf32>
    %144 = tpu.reciprocal %143 {approx = true} : vector<8x1xf32> -> vector<8x1xf32>
    %145 = vector.broadcast %144 : vector<8x1xf32> to vector<8x8xf32>
    %146 = arith.mulf %141, %145 : vector<8x8xf32>
    %147 = vector.extract_strided_slice %88 {offsets = [0, 24], sizes = [8, 8], strides = [1, 1]} : vector<8x32xf32> to vector<8x8xf32>
    %cst_58 = arith.constant dense<0.000000e+00> : vector<8x8xf32>
    %148 = tpu.matmul %146, %147, %cst_58 {dimension_numbers = #tpu.dot_dimension_numbers<[1], [0], [0], [1], [0, 0, 1, 1], [], []>} : vector<8x8xf32>, vector<8x8xf32>, vector<8x8xf32> -> vector<8x8xf32>
    %149 = tpu.concatenate %103, %118, %133, %148 in 1 : vector<8x8xf32>, vector<8x8xf32>, vector<8x8xf32>, vector<8x8xf32> -> vector<8x32xf32>
    %150 = tpu.concatenate %85, %149 in 0 : vector<8x32xf32>, vector<8x32xf32> -> vector<16x32xf32>
    %cst_59 = arith.constant dense<0.000000e+00> : vector<16x32xf32>
    %151 = tpu.matmul %150, %19, %cst_59 {dimension_numbers = #tpu.dot_dimension_numbers<[1], [0], [0], [1], [0, 0, 1, 1], [], []>} : vector<16x32xf32>, vector<32x32xf32>, vector<16x32xf32> -> vector<16x32xf32>
    %152 = arith.addf %5, %151 : vector<16x32xf32>
    %153 = vector.broadcast %21 : vector<1x32xf32> to vector<16x32xf32>
    %154 = arith.addf %152, %153 : vector<16x32xf32>
    %cst_60 = arith.constant dense<0.000000e+00> : vector<16x32xf32>
    %155 = tpu.matmul %0, %154, %cst_60 {dimension_numbers = #tpu.dot_dimension_numbers<[1], [0], [0], [1], [0, 0, 1, 1], [], []>} : vector<16x16xf32>, vector<16x32xf32>, vector<16x32xf32> -> vector<16x32xf32>
    %156 = arith.subf %154, %155 : vector<16x32xf32>
    %c0_61 = arith.constant 0 : index
    %c0_62 = arith.constant 0 : index
    %c0_63 = arith.constant 0 : index
    %157 = vector.load %arg9[%c0_61, %c0_62, %c0_63] : memref<2x32x32xf32, #tpu.memory_space<vmem>>, vector<1x32x32xf32>
    %158 = vector.shape_cast %157 : vector<1x32x32xf32> to vector<32x32xf32>
    %cst_64 = arith.constant dense<0.000000e+00> : vector<16x32xf32>
    %159 = tpu.matmul %156, %158, %cst_64 {dimension_numbers = #tpu.dot_dimension_numbers<[1], [0], [0], [1], [0, 0, 1, 1], [], []>} : vector<16x32xf32>, vector<32x32xf32>, vector<16x32xf32> -> vector<16x32xf32>
    %c0_65 = arith.constant 0 : index
    %c0_66 = arith.constant 0 : index
    %c0_67 = arith.constant 0 : index
    %160 = vector.load %arg10[%c0_65, %c0_66, %c0_67] : memref<2x1x32xf32, #tpu.memory_space<vmem>>, vector<1x1x32xf32>
    %161 = vector.shape_cast %160 : vector<1x1x32xf32> to vector<1x32xf32>
    %162 = vector.broadcast %161 : vector<1x32xf32> to vector<16x32xf32>
    %163 = arith.addf %159, %162 : vector<16x32xf32>
    %c0_68 = arith.constant 0 : index
    %c0_69 = arith.constant 0 : index
    %c0_70 = arith.constant 0 : index
    %164 = vector.load %arg11[%c0_68, %c0_69, %c0_70] : memref<2x32x64xf32, #tpu.memory_space<vmem>>, vector<1x32x64xf32>
    %165 = vector.shape_cast %164 : vector<1x32x64xf32> to vector<32x64xf32>
    %cst_71 = arith.constant dense<0.000000e+00> : vector<32x64xf32>
    %166 = tpu.matmul %6, %165, %cst_71 {dimension_numbers = #tpu.dot_dimension_numbers<[1], [0], [0], [1], [0, 0, 1, 1], [], []>} : vector<32x32xf32>, vector<32x64xf32>, vector<32x64xf32> -> vector<32x64xf32>
    %c0_72 = arith.constant 0 : index
    %c0_73 = arith.constant 0 : index
    %c0_74 = arith.constant 0 : index
    %167 = vector.load %arg12[%c0_72, %c0_73, %c0_74] : memref<2x1x64xf32, #tpu.memory_space<vmem>>, vector<1x1x64xf32>
    %168 = vector.shape_cast %167 : vector<1x1x64xf32> to vector<1x64xf32>
    %169 = vector.broadcast %168 : vector<1x64xf32> to vector<32x64xf32>
    %170 = arith.addf %166, %169 : vector<32x64xf32>
    %171 = vector.extract_strided_slice %170 {offsets = [0, 0], sizes = [32, 32], strides = [1, 1]} : vector<32x64xf32> to vector<32x32xf32>
    %172 = vector.extract_strided_slice %170 {offsets = [0, 32], sizes = [32, 32], strides = [1, 1]} : vector<32x64xf32> to vector<32x32xf32>
    %c0_75 = arith.constant 0 : index
    %c0_76 = arith.constant 0 : index
    %c0_77 = arith.constant 0 : index
    %173 = vector.load %arg13[%c0_75, %c0_76, %c0_77] : memref<2x32x32xf32, #tpu.memory_space<vmem>>, vector<1x32x32xf32>
    %174 = vector.shape_cast %173 : vector<1x32x32xf32> to vector<32x32xf32>
    %c0_78 = arith.constant 0 : index
    %c0_79 = arith.constant 0 : index
    %c0_80 = arith.constant 0 : index
    %175 = vector.load %arg14[%c0_78, %c0_79, %c0_80] : memref<2x1x32xf32, #tpu.memory_space<vmem>>, vector<1x1x32xf32>
    %176 = vector.shape_cast %175 : vector<1x1x32xf32> to vector<1x32xf32>
    %177 = vector.extract_strided_slice %163 {offsets = [0, 0], sizes = [8, 32], strides = [1, 1]} : vector<16x32xf32> to vector<8x32xf32>
    %178 = vector.extract_strided_slice %171 {offsets = [0, 0], sizes = [16, 32], strides = [1, 1]} : vector<32x32xf32> to vector<16x32xf32>
    %179 = vector.extract_strided_slice %172 {offsets = [0, 0], sizes = [16, 32], strides = [1, 1]} : vector<32x32xf32> to vector<16x32xf32>
    %180 = vector.extract_strided_slice %177 {offsets = [0, 0], sizes = [8, 8], strides = [1, 1]} : vector<8x32xf32> to vector<8x8xf32>
    %181 = vector.extract_strided_slice %178 {offsets = [0, 0], sizes = [16, 8], strides = [1, 1]} : vector<16x32xf32> to vector<16x8xf32>
    %cst_81 = arith.constant dense<0.000000e+00> : vector<8x16xf32>
    %182 = tpu.matmul %180, %181, %cst_81 {dimension_numbers = #tpu.dot_dimension_numbers<[1], [1], [0], [0], [0, 0, 1, 0], [], []>} : vector<8x8xf32>, vector<16x8xf32>, vector<8x16xf32> -> vector<8x16xf32>
    %cst_82 = arith.constant dense<0xFF800000> : vector<8xf32>
    %183 = vector.multi_reduction <maximumf>, %182, %cst_82 [1] : vector<8x16xf32> to vector<8xf32>
    %184 = vector.shape_cast %183 : vector<8xf32> to vector<8x1xf32>
    %185 = vector.broadcast %184 : vector<8x1xf32> to vector<8x16xf32>
    %186 = arith.subf %182, %185 : vector<8x16xf32>
    %187 = math.exp %186 : vector<8x16xf32>
    %cst_83 = arith.constant dense<0.000000e+00> : vector<8xf32>
    %188 = vector.multi_reduction <add>, %187, %cst_83 [1] : vector<8x16xf32> to vector<8xf32>
    %189 = vector.shape_cast %188 : vector<8xf32> to vector<8x1xf32>
    %190 = tpu.reciprocal %189 {approx = true} : vector<8x1xf32> -> vector<8x1xf32>
    %191 = vector.broadcast %190 : vector<8x1xf32> to vector<8x16xf32>
    %192 = arith.mulf %187, %191 : vector<8x16xf32>
    %193 = vector.extract_strided_slice %179 {offsets = [0, 0], sizes = [16, 8], strides = [1, 1]} : vector<16x32xf32> to vector<16x8xf32>
    %cst_84 = arith.constant dense<0.000000e+00> : vector<8x8xf32>
    %194 = tpu.matmul %192, %193, %cst_84 {dimension_numbers = #tpu.dot_dimension_numbers<[1], [0], [0], [1], [0, 0, 1, 1], [], []>} : vector<8x16xf32>, vector<16x8xf32>, vector<8x8xf32> -> vector<8x8xf32>
    %195 = vector.extract_strided_slice %177 {offsets = [0, 8], sizes = [8, 8], strides = [1, 1]} : vector<8x32xf32> to vector<8x8xf32>
    %196 = vector.extract_strided_slice %178 {offsets = [0, 8], sizes = [16, 8], strides = [1, 1]} : vector<16x32xf32> to vector<16x8xf32>
    %cst_85 = arith.constant dense<0.000000e+00> : vector<8x16xf32>
    %197 = tpu.matmul %195, %196, %cst_85 {dimension_numbers = #tpu.dot_dimension_numbers<[1], [1], [0], [0], [0, 0, 1, 0], [], []>} : vector<8x8xf32>, vector<16x8xf32>, vector<8x16xf32> -> vector<8x16xf32>
    %cst_86 = arith.constant dense<0xFF800000> : vector<8xf32>
    %198 = vector.multi_reduction <maximumf>, %197, %cst_86 [1] : vector<8x16xf32> to vector<8xf32>
    %199 = vector.shape_cast %198 : vector<8xf32> to vector<8x1xf32>
    %200 = vector.broadcast %199 : vector<8x1xf32> to vector<8x16xf32>
    %201 = arith.subf %197, %200 : vector<8x16xf32>
    %202 = math.exp %201 : vector<8x16xf32>
    %cst_87 = arith.constant dense<0.000000e+00> : vector<8xf32>
    %203 = vector.multi_reduction <add>, %202, %cst_87 [1] : vector<8x16xf32> to vector<8xf32>
    %204 = vector.shape_cast %203 : vector<8xf32> to vector<8x1xf32>
    %205 = tpu.reciprocal %204 {approx = true} : vector<8x1xf32> -> vector<8x1xf32>
    %206 = vector.broadcast %205 : vector<8x1xf32> to vector<8x16xf32>
    %207 = arith.mulf %202, %206 : vector<8x16xf32>
    %208 = vector.extract_strided_slice %179 {offsets = [0, 8], sizes = [16, 8], strides = [1, 1]} : vector<16x32xf32> to vector<16x8xf32>
    %cst_88 = arith.constant dense<0.000000e+00> : vector<8x8xf32>
    %209 = tpu.matmul %207, %208, %cst_88 {dimension_numbers = #tpu.dot_dimension_numbers<[1], [0], [0], [1], [0, 0, 1, 1], [], []>} : vector<8x16xf32>, vector<16x8xf32>, vector<8x8xf32> -> vector<8x8xf32>
    %210 = vector.extract_strided_slice %177 {offsets = [0, 16], sizes = [8, 8], strides = [1, 1]} : vector<8x32xf32> to vector<8x8xf32>
    %211 = vector.extract_strided_slice %178 {offsets = [0, 16], sizes = [16, 8], strides = [1, 1]} : vector<16x32xf32> to vector<16x8xf32>
    %cst_89 = arith.constant dense<0.000000e+00> : vector<8x16xf32>
    %212 = tpu.matmul %210, %211, %cst_89 {dimension_numbers = #tpu.dot_dimension_numbers<[1], [1], [0], [0], [0, 0, 1, 0], [], []>} : vector<8x8xf32>, vector<16x8xf32>, vector<8x16xf32> -> vector<8x16xf32>
    %cst_90 = arith.constant dense<0xFF800000> : vector<8xf32>
    %213 = vector.multi_reduction <maximumf>, %212, %cst_90 [1] : vector<8x16xf32> to vector<8xf32>
    %214 = vector.shape_cast %213 : vector<8xf32> to vector<8x1xf32>
    %215 = vector.broadcast %214 : vector<8x1xf32> to vector<8x16xf32>
    %216 = arith.subf %212, %215 : vector<8x16xf32>
    %217 = math.exp %216 : vector<8x16xf32>
    %cst_91 = arith.constant dense<0.000000e+00> : vector<8xf32>
    %218 = vector.multi_reduction <add>, %217, %cst_91 [1] : vector<8x16xf32> to vector<8xf32>
    %219 = vector.shape_cast %218 : vector<8xf32> to vector<8x1xf32>
    %220 = tpu.reciprocal %219 {approx = true} : vector<8x1xf32> -> vector<8x1xf32>
    %221 = vector.broadcast %220 : vector<8x1xf32> to vector<8x16xf32>
    %222 = arith.mulf %217, %221 : vector<8x16xf32>
    %223 = vector.extract_strided_slice %179 {offsets = [0, 16], sizes = [16, 8], strides = [1, 1]} : vector<16x32xf32> to vector<16x8xf32>
    %cst_92 = arith.constant dense<0.000000e+00> : vector<8x8xf32>
    %224 = tpu.matmul %222, %223, %cst_92 {dimension_numbers = #tpu.dot_dimension_numbers<[1], [0], [0], [1], [0, 0, 1, 1], [], []>} : vector<8x16xf32>, vector<16x8xf32>, vector<8x8xf32> -> vector<8x8xf32>
    %225 = vector.extract_strided_slice %177 {offsets = [0, 24], sizes = [8, 8], strides = [1, 1]} : vector<8x32xf32> to vector<8x8xf32>
    %226 = vector.extract_strided_slice %178 {offsets = [0, 24], sizes = [16, 8], strides = [1, 1]} : vector<16x32xf32> to vector<16x8xf32>
    %cst_93 = arith.constant dense<0.000000e+00> : vector<8x16xf32>
    %227 = tpu.matmul %225, %226, %cst_93 {dimension_numbers = #tpu.dot_dimension_numbers<[1], [1], [0], [0], [0, 0, 1, 0], [], []>} : vector<8x8xf32>, vector<16x8xf32>, vector<8x16xf32> -> vector<8x16xf32>
    %cst_94 = arith.constant dense<0xFF800000> : vector<8xf32>
    %228 = vector.multi_reduction <maximumf>, %227, %cst_94 [1] : vector<8x16xf32> to vector<8xf32>
    %229 = vector.shape_cast %228 : vector<8xf32> to vector<8x1xf32>
    %230 = vector.broadcast %229 : vector<8x1xf32> to vector<8x16xf32>
    %231 = arith.subf %227, %230 : vector<8x16xf32>
    %232 = math.exp %231 : vector<8x16xf32>
    %cst_95 = arith.constant dense<0.000000e+00> : vector<8xf32>
    %233 = vector.multi_reduction <add>, %232, %cst_95 [1] : vector<8x16xf32> to vector<8xf32>
    %234 = vector.shape_cast %233 : vector<8xf32> to vector<8x1xf32>
    %235 = tpu.reciprocal %234 {approx = true} : vector<8x1xf32> -> vector<8x1xf32>
    %236 = vector.broadcast %235 : vector<8x1xf32> to vector<8x16xf32>
    %237 = arith.mulf %232, %236 : vector<8x16xf32>
    %238 = vector.extract_strided_slice %179 {offsets = [0, 24], sizes = [16, 8], strides = [1, 1]} : vector<16x32xf32> to vector<16x8xf32>
    %cst_96 = arith.constant dense<0.000000e+00> : vector<8x8xf32>
    %239 = tpu.matmul %237, %238, %cst_96 {dimension_numbers = #tpu.dot_dimension_numbers<[1], [0], [0], [1], [0, 0, 1, 1], [], []>} : vector<8x16xf32>, vector<16x8xf32>, vector<8x8xf32> -> vector<8x8xf32>
    %240 = tpu.concatenate %194, %209, %224, %239 in 1 : vector<8x8xf32>, vector<8x8xf32>, vector<8x8xf32>, vector<8x8xf32> -> vector<8x32xf32>
    %241 = vector.extract_strided_slice %163 {offsets = [8, 0], sizes = [8, 32], strides = [1, 1]} : vector<16x32xf32> to vector<8x32xf32>
    %242 = vector.extract_strided_slice %171 {offsets = [16, 0], sizes = [16, 32], strides = [1, 1]} : vector<32x32xf32> to vector<16x32xf32>
    %243 = vector.extract_strided_slice %172 {offsets = [16, 0], sizes = [16, 32], strides = [1, 1]} : vector<32x32xf32> to vector<16x32xf32>
    %244 = vector.extract_strided_slice %241 {offsets = [0, 0], sizes = [8, 8], strides = [1, 1]} : vector<8x32xf32> to vector<8x8xf32>
    %245 = vector.extract_strided_slice %242 {offsets = [0, 0], sizes = [16, 8], strides = [1, 1]} : vector<16x32xf32> to vector<16x8xf32>
    %cst_97 = arith.constant dense<0.000000e+00> : vector<8x16xf32>
    %246 = tpu.matmul %244, %245, %cst_97 {dimension_numbers = #tpu.dot_dimension_numbers<[1], [1], [0], [0], [0, 0, 1, 0], [], []>} : vector<8x8xf32>, vector<16x8xf32>, vector<8x16xf32> -> vector<8x16xf32>
    %cst_98 = arith.constant dense<0xFF800000> : vector<8xf32>
    %247 = vector.multi_reduction <maximumf>, %246, %cst_98 [1] : vector<8x16xf32> to vector<8xf32>
    %248 = vector.shape_cast %247 : vector<8xf32> to vector<8x1xf32>
    %249 = vector.broadcast %248 : vector<8x1xf32> to vector<8x16xf32>
    %250 = arith.subf %246, %249 : vector<8x16xf32>
    %251 = math.exp %250 : vector<8x16xf32>
    %cst_99 = arith.constant dense<0.000000e+00> : vector<8xf32>
    %252 = vector.multi_reduction <add>, %251, %cst_99 [1] : vector<8x16xf32> to vector<8xf32>
    %253 = vector.shape_cast %252 : vector<8xf32> to vector<8x1xf32>
    %254 = tpu.reciprocal %253 {approx = true} : vector<8x1xf32> -> vector<8x1xf32>
    %255 = vector.broadcast %254 : vector<8x1xf32> to vector<8x16xf32>
    %256 = arith.mulf %251, %255 : vector<8x16xf32>
    %257 = vector.extract_strided_slice %243 {offsets = [0, 0], sizes = [16, 8], strides = [1, 1]} : vector<16x32xf32> to vector<16x8xf32>
    %cst_100 = arith.constant dense<0.000000e+00> : vector<8x8xf32>
    %258 = tpu.matmul %256, %257, %cst_100 {dimension_numbers = #tpu.dot_dimension_numbers<[1], [0], [0], [1], [0, 0, 1, 1], [], []>} : vector<8x16xf32>, vector<16x8xf32>, vector<8x8xf32> -> vector<8x8xf32>
    %259 = vector.extract_strided_slice %241 {offsets = [0, 8], sizes = [8, 8], strides = [1, 1]} : vector<8x32xf32> to vector<8x8xf32>
    %260 = vector.extract_strided_slice %242 {offsets = [0, 8], sizes = [16, 8], strides = [1, 1]} : vector<16x32xf32> to vector<16x8xf32>
    %cst_101 = arith.constant dense<0.000000e+00> : vector<8x16xf32>
    %261 = tpu.matmul %259, %260, %cst_101 {dimension_numbers = #tpu.dot_dimension_numbers<[1], [1], [0], [0], [0, 0, 1, 0], [], []>} : vector<8x8xf32>, vector<16x8xf32>, vector<8x16xf32> -> vector<8x16xf32>
    %cst_102 = arith.constant dense<0xFF800000> : vector<8xf32>
    %262 = vector.multi_reduction <maximumf>, %261, %cst_102 [1] : vector<8x16xf32> to vector<8xf32>
    %263 = vector.shape_cast %262 : vector<8xf32> to vector<8x1xf32>
    %264 = vector.broadcast %263 : vector<8x1xf32> to vector<8x16xf32>
    %265 = arith.subf %261, %264 : vector<8x16xf32>
    %266 = math.exp %265 : vector<8x16xf32>
    %cst_103 = arith.constant dense<0.000000e+00> : vector<8xf32>
    %267 = vector.multi_reduction <add>, %266, %cst_103 [1] : vector<8x16xf32> to vector<8xf32>
    %268 = vector.shape_cast %267 : vector<8xf32> to vector<8x1xf32>
    %269 = tpu.reciprocal %268 {approx = true} : vector<8x1xf32> -> vector<8x1xf32>
    %270 = vector.broadcast %269 : vector<8x1xf32> to vector<8x16xf32>
    %271 = arith.mulf %266, %270 : vector<8x16xf32>
    %272 = vector.extract_strided_slice %243 {offsets = [0, 8], sizes = [16, 8], strides = [1, 1]} : vector<16x32xf32> to vector<16x8xf32>
    %cst_104 = arith.constant dense<0.000000e+00> : vector<8x8xf32>
    %273 = tpu.matmul %271, %272, %cst_104 {dimension_numbers = #tpu.dot_dimension_numbers<[1], [0], [0], [1], [0, 0, 1, 1], [], []>} : vector<8x16xf32>, vector<16x8xf32>, vector<8x8xf32> -> vector<8x8xf32>
    %274 = vector.extract_strided_slice %241 {offsets = [0, 16], sizes = [8, 8], strides = [1, 1]} : vector<8x32xf32> to vector<8x8xf32>
    %275 = vector.extract_strided_slice %242 {offsets = [0, 16], sizes = [16, 8], strides = [1, 1]} : vector<16x32xf32> to vector<16x8xf32>
    %cst_105 = arith.constant dense<0.000000e+00> : vector<8x16xf32>
    %276 = tpu.matmul %274, %275, %cst_105 {dimension_numbers = #tpu.dot_dimension_numbers<[1], [1], [0], [0], [0, 0, 1, 0], [], []>} : vector<8x8xf32>, vector<16x8xf32>, vector<8x16xf32> -> vector<8x16xf32>
    %cst_106 = arith.constant dense<0xFF800000> : vector<8xf32>
    %277 = vector.multi_reduction <maximumf>, %276, %cst_106 [1] : vector<8x16xf32> to vector<8xf32>
    %278 = vector.shape_cast %277 : vector<8xf32> to vector<8x1xf32>
    %279 = vector.broadcast %278 : vector<8x1xf32> to vector<8x16xf32>
    %280 = arith.subf %276, %279 : vector<8x16xf32>
    %281 = math.exp %280 : vector<8x16xf32>
    %cst_107 = arith.constant dense<0.000000e+00> : vector<8xf32>
    %282 = vector.multi_reduction <add>, %281, %cst_107 [1] : vector<8x16xf32> to vector<8xf32>
    %283 = vector.shape_cast %282 : vector<8xf32> to vector<8x1xf32>
    %284 = tpu.reciprocal %283 {approx = true} : vector<8x1xf32> -> vector<8x1xf32>
    %285 = vector.broadcast %284 : vector<8x1xf32> to vector<8x16xf32>
    %286 = arith.mulf %281, %285 : vector<8x16xf32>
    %287 = vector.extract_strided_slice %243 {offsets = [0, 16], sizes = [16, 8], strides = [1, 1]} : vector<16x32xf32> to vector<16x8xf32>
    %cst_108 = arith.constant dense<0.000000e+00> : vector<8x8xf32>
    %288 = tpu.matmul %286, %287, %cst_108 {dimension_numbers = #tpu.dot_dimension_numbers<[1], [0], [0], [1], [0, 0, 1, 1], [], []>} : vector<8x16xf32>, vector<16x8xf32>, vector<8x8xf32> -> vector<8x8xf32>
    %289 = vector.extract_strided_slice %241 {offsets = [0, 24], sizes = [8, 8], strides = [1, 1]} : vector<8x32xf32> to vector<8x8xf32>
    %290 = vector.extract_strided_slice %242 {offsets = [0, 24], sizes = [16, 8], strides = [1, 1]} : vector<16x32xf32> to vector<16x8xf32>
    %cst_109 = arith.constant dense<0.000000e+00> : vector<8x16xf32>
    %291 = tpu.matmul %289, %290, %cst_109 {dimension_numbers = #tpu.dot_dimension_numbers<[1], [1], [0], [0], [0, 0, 1, 0], [], []>} : vector<8x8xf32>, vector<16x8xf32>, vector<8x16xf32> -> vector<8x16xf32>
    %cst_110 = arith.constant dense<0xFF800000> : vector<8xf32>
    %292 = vector.multi_reduction <maximumf>, %291, %cst_110 [1] : vector<8x16xf32> to vector<8xf32>
    %293 = vector.shape_cast %292 : vector<8xf32> to vector<8x1xf32>
    %294 = vector.broadcast %293 : vector<8x1xf32> to vector<8x16xf32>
    %295 = arith.subf %291, %294 : vector<8x16xf32>
    %296 = math.exp %295 : vector<8x16xf32>
    %cst_111 = arith.constant dense<0.000000e+00> : vector<8xf32>
    %297 = vector.multi_reduction <add>, %296, %cst_111 [1] : vector<8x16xf32> to vector<8xf32>
    %298 = vector.shape_cast %297 : vector<8xf32> to vector<8x1xf32>
    %299 = tpu.reciprocal %298 {approx = true} : vector<8x1xf32> -> vector<8x1xf32>
    %300 = vector.broadcast %299 : vector<8x1xf32> to vector<8x16xf32>
    %301 = arith.mulf %296, %300 : vector<8x16xf32>
    %302 = vector.extract_strided_slice %243 {offsets = [0, 24], sizes = [16, 8], strides = [1, 1]} : vector<16x32xf32> to vector<16x8xf32>
    %cst_112 = arith.constant dense<0.000000e+00> : vector<8x8xf32>
    %303 = tpu.matmul %301, %302, %cst_112 {dimension_numbers = #tpu.dot_dimension_numbers<[1], [0], [0], [1], [0, 0, 1, 1], [], []>} : vector<8x16xf32>, vector<16x8xf32>, vector<8x8xf32> -> vector<8x8xf32>
    %304 = tpu.concatenate %258, %273, %288, %303 in 1 : vector<8x8xf32>, vector<8x8xf32>, vector<8x8xf32>, vector<8x8xf32> -> vector<8x32xf32>
    %305 = tpu.concatenate %240, %304 in 0 : vector<8x32xf32>, vector<8x32xf32> -> vector<16x32xf32>
    %cst_113 = arith.constant dense<0.000000e+00> : vector<16x32xf32>
    %306 = tpu.matmul %305, %174, %cst_113 {dimension_numbers = #tpu.dot_dimension_numbers<[1], [0], [0], [1], [0, 0, 1, 1], [], []>} : vector<16x32xf32>, vector<32x32xf32>, vector<16x32xf32> -> vector<16x32xf32>
    %307 = arith.addf %156, %306 : vector<16x32xf32>
    %308 = vector.broadcast %176 : vector<1x32xf32> to vector<16x32xf32>
    %309 = arith.addf %307, %308 : vector<16x32xf32>
    %cst_114 = arith.constant dense<0.000000e+00> : vector<16x32xf32>
    %310 = tpu.matmul %0, %309, %cst_114 {dimension_numbers = #tpu.dot_dimension_numbers<[1], [0], [0], [1], [0, 0, 1, 1], [], []>} : vector<16x16xf32>, vector<16x32xf32>, vector<16x32xf32> -> vector<16x32xf32>
    %311 = arith.subf %309, %310 : vector<16x32xf32>
    %c0_115 = arith.constant 0 : index
    %c0_116 = arith.constant 0 : index
    %c0_117 = arith.constant 0 : index
    %312 = vector.load %arg15[%c0_115, %c0_116, %c0_117] : memref<2x32x32xf32, #tpu.memory_space<vmem>>, vector<1x32x32xf32>
    %313 = vector.shape_cast %312 : vector<1x32x32xf32> to vector<32x32xf32>
    %cst_118 = arith.constant dense<0.000000e+00> : vector<16x32xf32>
    %314 = tpu.matmul %311, %313, %cst_118 {dimension_numbers = #tpu.dot_dimension_numbers<[1], [0], [0], [1], [0, 0, 1, 1], [], []>} : vector<16x32xf32>, vector<32x32xf32>, vector<16x32xf32> -> vector<16x32xf32>
    %cst_119 = arith.constant 0.000000e+00 : f32
    %315 = vector.broadcast %cst_119 : f32 to vector<16x32xf32>
    %316 = arith.maximumf %314, %315 : vector<16x32xf32>
    %c0_120 = arith.constant 0 : index
    %c0_121 = arith.constant 0 : index
    %c0_122 = arith.constant 0 : index
    %317 = vector.load %arg16[%c0_120, %c0_121, %c0_122] : memref<2x32x32xf32, #tpu.memory_space<vmem>>, vector<1x32x32xf32>
    %318 = vector.shape_cast %317 : vector<1x32x32xf32> to vector<32x32xf32>
    %cst_123 = arith.constant dense<0.000000e+00> : vector<16x32xf32>
    %319 = tpu.matmul %316, %318, %cst_123 {dimension_numbers = #tpu.dot_dimension_numbers<[1], [0], [0], [1], [0, 0, 1, 1], [], []>} : vector<16x32xf32>, vector<32x32xf32>, vector<16x32xf32> -> vector<16x32xf32>
    %320 = arith.addf %311, %319 : vector<16x32xf32>
    %cst_124 = arith.constant dense<0.000000e+00> : vector<16x32xf32>
    %321 = tpu.matmul %0, %320, %cst_124 {dimension_numbers = #tpu.dot_dimension_numbers<[1], [0], [0], [1], [0, 0, 1, 1], [], []>} : vector<16x16xf32>, vector<16x32xf32>, vector<16x32xf32> -> vector<16x32xf32>
    %322 = arith.subf %320, %321 : vector<16x32xf32>
    %323 = arith.addf %155, %310 : vector<16x32xf32>
    %324 = arith.addf %323, %321 : vector<16x32xf32>
    %325 = vector.extract_strided_slice %324 {offsets = [0, 0], sizes = [8, 32], strides = [1, 1]} : vector<16x32xf32> to vector<8x32xf32>
    %c1_i32 = arith.constant 1 : i32
    %326 = tpu.dynamic_rotate %325 by %c1_i32 dim 0 : vector<8x32xf32>, i32 -> vector<8x32xf32>
    %327 = vector.extract_strided_slice %324 {offsets = [8, 0], sizes = [8, 32], strides = [1, 1]} : vector<16x32xf32> to vector<8x32xf32>
    %c1_i32_125 = arith.constant 1 : i32
    %328 = tpu.dynamic_rotate %327 by %c1_i32_125 dim 0 : vector<8x32xf32>, i32 -> vector<8x32xf32>
    %329 = tpu.concatenate %326, %328 in 0 : vector<8x32xf32>, vector<8x32xf32> -> vector<16x32xf32>
    %330 = vector.extract_strided_slice %324 {offsets = [0, 0], sizes = [8, 32], strides = [1, 1]} : vector<16x32xf32> to vector<8x32xf32>
    %c7_i32 = arith.constant 7 : i32
    %331 = tpu.dynamic_rotate %330 by %c7_i32 dim 0 : vector<8x32xf32>, i32 -> vector<8x32xf32>
    %332 = vector.extract_strided_slice %324 {offsets = [8, 0], sizes = [8, 32], strides = [1, 1]} : vector<16x32xf32> to vector<8x32xf32>
    %c7_i32_126 = arith.constant 7 : i32
    %333 = tpu.dynamic_rotate %332 by %c7_i32_126 dim 0 : vector<8x32xf32>, i32 -> vector<8x32xf32>
    %334 = tpu.concatenate %331, %333 in 0 : vector<8x32xf32>, vector<8x32xf32> -> vector<16x32xf32>
    %335 = tpu.concatenate %329, %324, %334 in 1 : vector<16x32xf32>, vector<16x32xf32>, vector<16x32xf32> -> vector<16x96xf32>
    %c0_127 = arith.constant 0 : index
    %c0_128 = arith.constant 0 : index
    %c0_129 = arith.constant 0 : index
    %336 = vector.load %arg17[%c0_127, %c0_128, %c0_129] : memref<2x96x4xf32, #tpu.memory_space<vmem>>, vector<1x96x4xf32>
    %337 = vector.shape_cast %336 : vector<1x96x4xf32> to vector<96x4xf32>
    %cst_130 = arith.constant dense<0.000000e+00> : vector<16x4xf32>
    %338 = tpu.matmul %335, %337, %cst_130 {dimension_numbers = #tpu.dot_dimension_numbers<[1], [0], [0], [1], [0, 0, 1, 1], [], []>} : vector<16x96xf32>, vector<96x4xf32>, vector<16x4xf32> -> vector<16x4xf32>
    %339 = arith.addf %7, %338 : vector<16x4xf32>
    %c1 = arith.constant 1 : index
    %c0_131 = arith.constant 0 : index
    %c0_132 = arith.constant 0 : index
    %340 = vector.load %arg5[%c1, %c0_131, %c0_132] : memref<2x32x96xf32, #tpu.memory_space<vmem>>, vector<1x32x96xf32>
    %341 = vector.shape_cast %340 : vector<1x32x96xf32> to vector<32x96xf32>
    %cst_133 = arith.constant dense<0.000000e+00> : vector<16x96xf32>
    %342 = tpu.matmul %322, %341, %cst_133 {dimension_numbers = #tpu.dot_dimension_numbers<[1], [0], [0], [1], [0, 0, 1, 1], [], []>} : vector<16x32xf32>, vector<32x96xf32>, vector<16x96xf32> -> vector<16x96xf32>
    %c1_134 = arith.constant 1 : index
    %c0_135 = arith.constant 0 : index
    %c0_136 = arith.constant 0 : index
    %343 = vector.load %arg6[%c1_134, %c0_135, %c0_136] : memref<2x1x96xf32, #tpu.memory_space<vmem>>, vector<1x1x96xf32>
    %344 = vector.shape_cast %343 : vector<1x1x96xf32> to vector<1x96xf32>
    %345 = vector.broadcast %344 : vector<1x96xf32> to vector<16x96xf32>
    %346 = arith.addf %342, %345 : vector<16x96xf32>
    %347 = vector.extract_strided_slice %346 {offsets = [0, 0], sizes = [16, 32], strides = [1, 1]} : vector<16x96xf32> to vector<16x32xf32>
    %348 = vector.extract_strided_slice %346 {offsets = [0, 32], sizes = [16, 32], strides = [1, 1]} : vector<16x96xf32> to vector<16x32xf32>
    %349 = vector.extract_strided_slice %346 {offsets = [0, 64], sizes = [16, 32], strides = [1, 1]} : vector<16x96xf32> to vector<16x32xf32>
    %c1_137 = arith.constant 1 : index
    %c0_138 = arith.constant 0 : index
    %c0_139 = arith.constant 0 : index
    %350 = vector.load %arg7[%c1_137, %c0_138, %c0_139] : memref<2x32x32xf32, #tpu.memory_space<vmem>>, vector<1x32x32xf32>
    %351 = vector.shape_cast %350 : vector<1x32x32xf32> to vector<32x32xf32>
    %c1_140 = arith.constant 1 : index
    %c0_141 = arith.constant 0 : index
    %c0_142 = arith.constant 0 : index
    %352 = vector.load %arg8[%c1_140, %c0_141, %c0_142] : memref<2x1x32xf32, #tpu.memory_space<vmem>>, vector<1x1x32xf32>
    %353 = vector.shape_cast %352 : vector<1x1x32xf32> to vector<1x32xf32>
    %354 = vector.extract_strided_slice %347 {offsets = [0, 0], sizes = [8, 32], strides = [1, 1]} : vector<16x32xf32> to vector<8x32xf32>
    %355 = vector.extract_strided_slice %348 {offsets = [0, 0], sizes = [8, 32], strides = [1, 1]} : vector<16x32xf32> to vector<8x32xf32>
    %356 = vector.extract_strided_slice %349 {offsets = [0, 0], sizes = [8, 32], strides = [1, 1]} : vector<16x32xf32> to vector<8x32xf32>
    %357 = vector.extract_strided_slice %354 {offsets = [0, 0], sizes = [8, 8], strides = [1, 1]} : vector<8x32xf32> to vector<8x8xf32>
    %358 = vector.extract_strided_slice %355 {offsets = [0, 0], sizes = [8, 8], strides = [1, 1]} : vector<8x32xf32> to vector<8x8xf32>
    %cst_143 = arith.constant dense<0.000000e+00> : vector<8x8xf32>
    %359 = tpu.matmul %357, %358, %cst_143 {dimension_numbers = #tpu.dot_dimension_numbers<[1], [1], [0], [0], [0, 0, 1, 0], [], []>} : vector<8x8xf32>, vector<8x8xf32>, vector<8x8xf32> -> vector<8x8xf32>
    %cst_144 = arith.constant dense<0xFF800000> : vector<8xf32>
    %360 = vector.multi_reduction <maximumf>, %359, %cst_144 [1] : vector<8x8xf32> to vector<8xf32>
    %361 = vector.shape_cast %360 : vector<8xf32> to vector<8x1xf32>
    %362 = vector.broadcast %361 : vector<8x1xf32> to vector<8x8xf32>
    %363 = arith.subf %359, %362 : vector<8x8xf32>
    %364 = math.exp %363 : vector<8x8xf32>
    %cst_145 = arith.constant dense<0.000000e+00> : vector<8xf32>
    %365 = vector.multi_reduction <add>, %364, %cst_145 [1] : vector<8x8xf32> to vector<8xf32>
    %366 = vector.shape_cast %365 : vector<8xf32> to vector<8x1xf32>
    %367 = tpu.reciprocal %366 {approx = true} : vector<8x1xf32> -> vector<8x1xf32>
    %368 = vector.broadcast %367 : vector<8x1xf32> to vector<8x8xf32>
    %369 = arith.mulf %364, %368 : vector<8x8xf32>
    %370 = vector.extract_strided_slice %356 {offsets = [0, 0], sizes = [8, 8], strides = [1, 1]} : vector<8x32xf32> to vector<8x8xf32>
    %cst_146 = arith.constant dense<0.000000e+00> : vector<8x8xf32>
    %371 = tpu.matmul %369, %370, %cst_146 {dimension_numbers = #tpu.dot_dimension_numbers<[1], [0], [0], [1], [0, 0, 1, 1], [], []>} : vector<8x8xf32>, vector<8x8xf32>, vector<8x8xf32> -> vector<8x8xf32>
    %372 = vector.extract_strided_slice %354 {offsets = [0, 8], sizes = [8, 8], strides = [1, 1]} : vector<8x32xf32> to vector<8x8xf32>
    %373 = vector.extract_strided_slice %355 {offsets = [0, 8], sizes = [8, 8], strides = [1, 1]} : vector<8x32xf32> to vector<8x8xf32>
    %cst_147 = arith.constant dense<0.000000e+00> : vector<8x8xf32>
    %374 = tpu.matmul %372, %373, %cst_147 {dimension_numbers = #tpu.dot_dimension_numbers<[1], [1], [0], [0], [0, 0, 1, 0], [], []>} : vector<8x8xf32>, vector<8x8xf32>, vector<8x8xf32> -> vector<8x8xf32>
    %cst_148 = arith.constant dense<0xFF800000> : vector<8xf32>
    %375 = vector.multi_reduction <maximumf>, %374, %cst_148 [1] : vector<8x8xf32> to vector<8xf32>
    %376 = vector.shape_cast %375 : vector<8xf32> to vector<8x1xf32>
    %377 = vector.broadcast %376 : vector<8x1xf32> to vector<8x8xf32>
    %378 = arith.subf %374, %377 : vector<8x8xf32>
    %379 = math.exp %378 : vector<8x8xf32>
    %cst_149 = arith.constant dense<0.000000e+00> : vector<8xf32>
    %380 = vector.multi_reduction <add>, %379, %cst_149 [1] : vector<8x8xf32> to vector<8xf32>
    %381 = vector.shape_cast %380 : vector<8xf32> to vector<8x1xf32>
    %382 = tpu.reciprocal %381 {approx = true} : vector<8x1xf32> -> vector<8x1xf32>
    %383 = vector.broadcast %382 : vector<8x1xf32> to vector<8x8xf32>
    %384 = arith.mulf %379, %383 : vector<8x8xf32>
    %385 = vector.extract_strided_slice %356 {offsets = [0, 8], sizes = [8, 8], strides = [1, 1]} : vector<8x32xf32> to vector<8x8xf32>
    %cst_150 = arith.constant dense<0.000000e+00> : vector<8x8xf32>
    %386 = tpu.matmul %384, %385, %cst_150 {dimension_numbers = #tpu.dot_dimension_numbers<[1], [0], [0], [1], [0, 0, 1, 1], [], []>} : vector<8x8xf32>, vector<8x8xf32>, vector<8x8xf32> -> vector<8x8xf32>
    %387 = vector.extract_strided_slice %354 {offsets = [0, 16], sizes = [8, 8], strides = [1, 1]} : vector<8x32xf32> to vector<8x8xf32>
    %388 = vector.extract_strided_slice %355 {offsets = [0, 16], sizes = [8, 8], strides = [1, 1]} : vector<8x32xf32> to vector<8x8xf32>
    %cst_151 = arith.constant dense<0.000000e+00> : vector<8x8xf32>
    %389 = tpu.matmul %387, %388, %cst_151 {dimension_numbers = #tpu.dot_dimension_numbers<[1], [1], [0], [0], [0, 0, 1, 0], [], []>} : vector<8x8xf32>, vector<8x8xf32>, vector<8x8xf32> -> vector<8x8xf32>
    %cst_152 = arith.constant dense<0xFF800000> : vector<8xf32>
    %390 = vector.multi_reduction <maximumf>, %389, %cst_152 [1] : vector<8x8xf32> to vector<8xf32>
    %391 = vector.shape_cast %390 : vector<8xf32> to vector<8x1xf32>
    %392 = vector.broadcast %391 : vector<8x1xf32> to vector<8x8xf32>
    %393 = arith.subf %389, %392 : vector<8x8xf32>
    %394 = math.exp %393 : vector<8x8xf32>
    %cst_153 = arith.constant dense<0.000000e+00> : vector<8xf32>
    %395 = vector.multi_reduction <add>, %394, %cst_153 [1] : vector<8x8xf32> to vector<8xf32>
    %396 = vector.shape_cast %395 : vector<8xf32> to vector<8x1xf32>
    %397 = tpu.reciprocal %396 {approx = true} : vector<8x1xf32> -> vector<8x1xf32>
    %398 = vector.broadcast %397 : vector<8x1xf32> to vector<8x8xf32>
    %399 = arith.mulf %394, %398 : vector<8x8xf32>
    %400 = vector.extract_strided_slice %356 {offsets = [0, 16], sizes = [8, 8], strides = [1, 1]} : vector<8x32xf32> to vector<8x8xf32>
    %cst_154 = arith.constant dense<0.000000e+00> : vector<8x8xf32>
    %401 = tpu.matmul %399, %400, %cst_154 {dimension_numbers = #tpu.dot_dimension_numbers<[1], [0], [0], [1], [0, 0, 1, 1], [], []>} : vector<8x8xf32>, vector<8x8xf32>, vector<8x8xf32> -> vector<8x8xf32>
    %402 = vector.extract_strided_slice %354 {offsets = [0, 24], sizes = [8, 8], strides = [1, 1]} : vector<8x32xf32> to vector<8x8xf32>
    %403 = vector.extract_strided_slice %355 {offsets = [0, 24], sizes = [8, 8], strides = [1, 1]} : vector<8x32xf32> to vector<8x8xf32>
    %cst_155 = arith.constant dense<0.000000e+00> : vector<8x8xf32>
    %404 = tpu.matmul %402, %403, %cst_155 {dimension_numbers = #tpu.dot_dimension_numbers<[1], [1], [0], [0], [0, 0, 1, 0], [], []>} : vector<8x8xf32>, vector<8x8xf32>, vector<8x8xf32> -> vector<8x8xf32>
    %cst_156 = arith.constant dense<0xFF800000> : vector<8xf32>
    %405 = vector.multi_reduction <maximumf>, %404, %cst_156 [1] : vector<8x8xf32> to vector<8xf32>
    %406 = vector.shape_cast %405 : vector<8xf32> to vector<8x1xf32>
    %407 = vector.broadcast %406 : vector<8x1xf32> to vector<8x8xf32>
    %408 = arith.subf %404, %407 : vector<8x8xf32>
    %409 = math.exp %408 : vector<8x8xf32>
    %cst_157 = arith.constant dense<0.000000e+00> : vector<8xf32>
    %410 = vector.multi_reduction <add>, %409, %cst_157 [1] : vector<8x8xf32> to vector<8xf32>
    %411 = vector.shape_cast %410 : vector<8xf32> to vector<8x1xf32>
    %412 = tpu.reciprocal %411 {approx = true} : vector<8x1xf32> -> vector<8x1xf32>
    %413 = vector.broadcast %412 : vector<8x1xf32> to vector<8x8xf32>
    %414 = arith.mulf %409, %413 : vector<8x8xf32>
    %415 = vector.extract_strided_slice %356 {offsets = [0, 24], sizes = [8, 8], strides = [1, 1]} : vector<8x32xf32> to vector<8x8xf32>
    %cst_158 = arith.constant dense<0.000000e+00> : vector<8x8xf32>
    %416 = tpu.matmul %414, %415, %cst_158 {dimension_numbers = #tpu.dot_dimension_numbers<[1], [0], [0], [1], [0, 0, 1, 1], [], []>} : vector<8x8xf32>, vector<8x8xf32>, vector<8x8xf32> -> vector<8x8xf32>
    %417 = tpu.concatenate %371, %386, %401, %416 in 1 : vector<8x8xf32>, vector<8x8xf32>, vector<8x8xf32>, vector<8x8xf32> -> vector<8x32xf32>
    %418 = vector.extract_strided_slice %347 {offsets = [8, 0], sizes = [8, 32], strides = [1, 1]} : vector<16x32xf32> to vector<8x32xf32>
    %419 = vector.extract_strided_slice %348 {offsets = [8, 0], sizes = [8, 32], strides = [1, 1]} : vector<16x32xf32> to vector<8x32xf32>
    %420 = vector.extract_strided_slice %349 {offsets = [8, 0], sizes = [8, 32], strides = [1, 1]} : vector<16x32xf32> to vector<8x32xf32>
    %421 = vector.extract_strided_slice %418 {offsets = [0, 0], sizes = [8, 8], strides = [1, 1]} : vector<8x32xf32> to vector<8x8xf32>
    %422 = vector.extract_strided_slice %419 {offsets = [0, 0], sizes = [8, 8], strides = [1, 1]} : vector<8x32xf32> to vector<8x8xf32>
    %cst_159 = arith.constant dense<0.000000e+00> : vector<8x8xf32>
    %423 = tpu.matmul %421, %422, %cst_159 {dimension_numbers = #tpu.dot_dimension_numbers<[1], [1], [0], [0], [0, 0, 1, 0], [], []>} : vector<8x8xf32>, vector<8x8xf32>, vector<8x8xf32> -> vector<8x8xf32>
    %cst_160 = arith.constant dense<0xFF800000> : vector<8xf32>
    %424 = vector.multi_reduction <maximumf>, %423, %cst_160 [1] : vector<8x8xf32> to vector<8xf32>
    %425 = vector.shape_cast %424 : vector<8xf32> to vector<8x1xf32>
    %426 = vector.broadcast %425 : vector<8x1xf32> to vector<8x8xf32>
    %427 = arith.subf %423, %426 : vector<8x8xf32>
    %428 = math.exp %427 : vector<8x8xf32>
    %cst_161 = arith.constant dense<0.000000e+00> : vector<8xf32>
    %429 = vector.multi_reduction <add>, %428, %cst_161 [1] : vector<8x8xf32> to vector<8xf32>
    %430 = vector.shape_cast %429 : vector<8xf32> to vector<8x1xf32>
    %431 = tpu.reciprocal %430 {approx = true} : vector<8x1xf32> -> vector<8x1xf32>
    %432 = vector.broadcast %431 : vector<8x1xf32> to vector<8x8xf32>
    %433 = arith.mulf %428, %432 : vector<8x8xf32>
    %434 = vector.extract_strided_slice %420 {offsets = [0, 0], sizes = [8, 8], strides = [1, 1]} : vector<8x32xf32> to vector<8x8xf32>
    %cst_162 = arith.constant dense<0.000000e+00> : vector<8x8xf32>
    %435 = tpu.matmul %433, %434, %cst_162 {dimension_numbers = #tpu.dot_dimension_numbers<[1], [0], [0], [1], [0, 0, 1, 1], [], []>} : vector<8x8xf32>, vector<8x8xf32>, vector<8x8xf32> -> vector<8x8xf32>
    %436 = vector.extract_strided_slice %418 {offsets = [0, 8], sizes = [8, 8], strides = [1, 1]} : vector<8x32xf32> to vector<8x8xf32>
    %437 = vector.extract_strided_slice %419 {offsets = [0, 8], sizes = [8, 8], strides = [1, 1]} : vector<8x32xf32> to vector<8x8xf32>
    %cst_163 = arith.constant dense<0.000000e+00> : vector<8x8xf32>
    %438 = tpu.matmul %436, %437, %cst_163 {dimension_numbers = #tpu.dot_dimension_numbers<[1], [1], [0], [0], [0, 0, 1, 0], [], []>} : vector<8x8xf32>, vector<8x8xf32>, vector<8x8xf32> -> vector<8x8xf32>
    %cst_164 = arith.constant dense<0xFF800000> : vector<8xf32>
    %439 = vector.multi_reduction <maximumf>, %438, %cst_164 [1] : vector<8x8xf32> to vector<8xf32>
    %440 = vector.shape_cast %439 : vector<8xf32> to vector<8x1xf32>
    %441 = vector.broadcast %440 : vector<8x1xf32> to vector<8x8xf32>
    %442 = arith.subf %438, %441 : vector<8x8xf32>
    %443 = math.exp %442 : vector<8x8xf32>
    %cst_165 = arith.constant dense<0.000000e+00> : vector<8xf32>
    %444 = vector.multi_reduction <add>, %443, %cst_165 [1] : vector<8x8xf32> to vector<8xf32>
    %445 = vector.shape_cast %444 : vector<8xf32> to vector<8x1xf32>
    %446 = tpu.reciprocal %445 {approx = true} : vector<8x1xf32> -> vector<8x1xf32>
    %447 = vector.broadcast %446 : vector<8x1xf32> to vector<8x8xf32>
    %448 = arith.mulf %443, %447 : vector<8x8xf32>
    %449 = vector.extract_strided_slice %420 {offsets = [0, 8], sizes = [8, 8], strides = [1, 1]} : vector<8x32xf32> to vector<8x8xf32>
    %cst_166 = arith.constant dense<0.000000e+00> : vector<8x8xf32>
    %450 = tpu.matmul %448, %449, %cst_166 {dimension_numbers = #tpu.dot_dimension_numbers<[1], [0], [0], [1], [0, 0, 1, 1], [], []>} : vector<8x8xf32>, vector<8x8xf32>, vector<8x8xf32> -> vector<8x8xf32>
    %451 = vector.extract_strided_slice %418 {offsets = [0, 16], sizes = [8, 8], strides = [1, 1]} : vector<8x32xf32> to vector<8x8xf32>
    %452 = vector.extract_strided_slice %419 {offsets = [0, 16], sizes = [8, 8], strides = [1, 1]} : vector<8x32xf32> to vector<8x8xf32>
    %cst_167 = arith.constant dense<0.000000e+00> : vector<8x8xf32>
    %453 = tpu.matmul %451, %452, %cst_167 {dimension_numbers = #tpu.dot_dimension_numbers<[1], [1], [0], [0], [0, 0, 1, 0], [], []>} : vector<8x8xf32>, vector<8x8xf32>, vector<8x8xf32> -> vector<8x8xf32>
    %cst_168 = arith.constant dense<0xFF800000> : vector<8xf32>
    %454 = vector.multi_reduction <maximumf>, %453, %cst_168 [1] : vector<8x8xf32> to vector<8xf32>
    %455 = vector.shape_cast %454 : vector<8xf32> to vector<8x1xf32>
    %456 = vector.broadcast %455 : vector<8x1xf32> to vector<8x8xf32>
    %457 = arith.subf %453, %456 : vector<8x8xf32>
    %458 = math.exp %457 : vector<8x8xf32>
    %cst_169 = arith.constant dense<0.000000e+00> : vector<8xf32>
    %459 = vector.multi_reduction <add>, %458, %cst_169 [1] : vector<8x8xf32> to vector<8xf32>
    %460 = vector.shape_cast %459 : vector<8xf32> to vector<8x1xf32>
    %461 = tpu.reciprocal %460 {approx = true} : vector<8x1xf32> -> vector<8x1xf32>
    %462 = vector.broadcast %461 : vector<8x1xf32> to vector<8x8xf32>
    %463 = arith.mulf %458, %462 : vector<8x8xf32>
    %464 = vector.extract_strided_slice %420 {offsets = [0, 16], sizes = [8, 8], strides = [1, 1]} : vector<8x32xf32> to vector<8x8xf32>
    %cst_170 = arith.constant dense<0.000000e+00> : vector<8x8xf32>
    %465 = tpu.matmul %463, %464, %cst_170 {dimension_numbers = #tpu.dot_dimension_numbers<[1], [0], [0], [1], [0, 0, 1, 1], [], []>} : vector<8x8xf32>, vector<8x8xf32>, vector<8x8xf32> -> vector<8x8xf32>
    %466 = vector.extract_strided_slice %418 {offsets = [0, 24], sizes = [8, 8], strides = [1, 1]} : vector<8x32xf32> to vector<8x8xf32>
    %467 = vector.extract_strided_slice %419 {offsets = [0, 24], sizes = [8, 8], strides = [1, 1]} : vector<8x32xf32> to vector<8x8xf32>
    %cst_171 = arith.constant dense<0.000000e+00> : vector<8x8xf32>
    %468 = tpu.matmul %466, %467, %cst_171 {dimension_numbers = #tpu.dot_dimension_numbers<[1], [1], [0], [0], [0, 0, 1, 0], [], []>} : vector<8x8xf32>, vector<8x8xf32>, vector<8x8xf32> -> vector<8x8xf32>
    %cst_172 = arith.constant dense<0xFF800000> : vector<8xf32>
    %469 = vector.multi_reduction <maximumf>, %468, %cst_172 [1] : vector<8x8xf32> to vector<8xf32>
    %470 = vector.shape_cast %469 : vector<8xf32> to vector<8x1xf32>
    %471 = vector.broadcast %470 : vector<8x1xf32> to vector<8x8xf32>
    %472 = arith.subf %468, %471 : vector<8x8xf32>
    %473 = math.exp %472 : vector<8x8xf32>
    %cst_173 = arith.constant dense<0.000000e+00> : vector<8xf32>
    %474 = vector.multi_reduction <add>, %473, %cst_173 [1] : vector<8x8xf32> to vector<8xf32>
    %475 = vector.shape_cast %474 : vector<8xf32> to vector<8x1xf32>
    %476 = tpu.reciprocal %475 {approx = true} : vector<8x1xf32> -> vector<8x1xf32>
    %477 = vector.broadcast %476 : vector<8x1xf32> to vector<8x8xf32>
    %478 = arith.mulf %473, %477 : vector<8x8xf32>
    %479 = vector.extract_strided_slice %420 {offsets = [0, 24], sizes = [8, 8], strides = [1, 1]} : vector<8x32xf32> to vector<8x8xf32>
    %cst_174 = arith.constant dense<0.000000e+00> : vector<8x8xf32>
    %480 = tpu.matmul %478, %479, %cst_174 {dimension_numbers = #tpu.dot_dimension_numbers<[1], [0], [0], [1], [0, 0, 1, 1], [], []>} : vector<8x8xf32>, vector<8x8xf32>, vector<8x8xf32> -> vector<8x8xf32>
    %481 = tpu.concatenate %435, %450, %465, %480 in 1 : vector<8x8xf32>, vector<8x8xf32>, vector<8x8xf32>, vector<8x8xf32> -> vector<8x32xf32>
    %482 = tpu.concatenate %417, %481 in 0 : vector<8x32xf32>, vector<8x32xf32> -> vector<16x32xf32>
    %cst_175 = arith.constant dense<0.000000e+00> : vector<16x32xf32>
    %483 = tpu.matmul %482, %351, %cst_175 {dimension_numbers = #tpu.dot_dimension_numbers<[1], [0], [0], [1], [0, 0, 1, 1], [], []>} : vector<16x32xf32>, vector<32x32xf32>, vector<16x32xf32> -> vector<16x32xf32>
    %484 = arith.addf %322, %483 : vector<16x32xf32>
    %485 = vector.broadcast %353 : vector<1x32xf32> to vector<16x32xf32>
    %486 = arith.addf %484, %485 : vector<16x32xf32>
    %cst_176 = arith.constant dense<0.000000e+00> : vector<16x32xf32>
    %487 = tpu.matmul %0, %486, %cst_176 {dimension_numbers = #tpu.dot_dimension_numbers<[1], [0], [0], [1], [0, 0, 1, 1], [], []>} : vector<16x16xf32>, vector<16x32xf32>, vector<16x32xf32> -> vector<16x32xf32>
    %488 = arith.subf %486, %487 : vector<16x32xf32>
    %c1_177 = arith.constant 1 : index
    %c0_178 = arith.constant 0 : index
    %c0_179 = arith.constant 0 : index
    %489 = vector.load %arg9[%c1_177, %c0_178, %c0_179] : memref<2x32x32xf32, #tpu.memory_space<vmem>>, vector<1x32x32xf32>
    %490 = vector.shape_cast %489 : vector<1x32x32xf32> to vector<32x32xf32>
    %cst_180 = arith.constant dense<0.000000e+00> : vector<16x32xf32>
    %491 = tpu.matmul %488, %490, %cst_180 {dimension_numbers = #tpu.dot_dimension_numbers<[1], [0], [0], [1], [0, 0, 1, 1], [], []>} : vector<16x32xf32>, vector<32x32xf32>, vector<16x32xf32> -> vector<16x32xf32>
    %c1_181 = arith.constant 1 : index
    %c0_182 = arith.constant 0 : index
    %c0_183 = arith.constant 0 : index
    %492 = vector.load %arg10[%c1_181, %c0_182, %c0_183] : memref<2x1x32xf32, #tpu.memory_space<vmem>>, vector<1x1x32xf32>
    %493 = vector.shape_cast %492 : vector<1x1x32xf32> to vector<1x32xf32>
    %494 = vector.broadcast %493 : vector<1x32xf32> to vector<16x32xf32>
    %495 = arith.addf %491, %494 : vector<16x32xf32>
    %c1_184 = arith.constant 1 : index
    %c0_185 = arith.constant 0 : index
    %c0_186 = arith.constant 0 : index
    %496 = vector.load %arg11[%c1_184, %c0_185, %c0_186] : memref<2x32x64xf32, #tpu.memory_space<vmem>>, vector<1x32x64xf32>
    %497 = vector.shape_cast %496 : vector<1x32x64xf32> to vector<32x64xf32>
    %cst_187 = arith.constant dense<0.000000e+00> : vector<32x64xf32>
    %498 = tpu.matmul %6, %497, %cst_187 {dimension_numbers = #tpu.dot_dimension_numbers<[1], [0], [0], [1], [0, 0, 1, 1], [], []>} : vector<32x32xf32>, vector<32x64xf32>, vector<32x64xf32> -> vector<32x64xf32>
    %c1_188 = arith.constant 1 : index
    %c0_189 = arith.constant 0 : index
    %c0_190 = arith.constant 0 : index
    %499 = vector.load %arg12[%c1_188, %c0_189, %c0_190] : memref<2x1x64xf32, #tpu.memory_space<vmem>>, vector<1x1x64xf32>
    %500 = vector.shape_cast %499 : vector<1x1x64xf32> to vector<1x64xf32>
    %501 = vector.broadcast %500 : vector<1x64xf32> to vector<32x64xf32>
    %502 = arith.addf %498, %501 : vector<32x64xf32>
    %503 = vector.extract_strided_slice %502 {offsets = [0, 0], sizes = [32, 32], strides = [1, 1]} : vector<32x64xf32> to vector<32x32xf32>
    %504 = vector.extract_strided_slice %502 {offsets = [0, 32], sizes = [32, 32], strides = [1, 1]} : vector<32x64xf32> to vector<32x32xf32>
    %c1_191 = arith.constant 1 : index
    %c0_192 = arith.constant 0 : index
    %c0_193 = arith.constant 0 : index
    %505 = vector.load %arg13[%c1_191, %c0_192, %c0_193] : memref<2x32x32xf32, #tpu.memory_space<vmem>>, vector<1x32x32xf32>
    %506 = vector.shape_cast %505 : vector<1x32x32xf32> to vector<32x32xf32>
    %c1_194 = arith.constant 1 : index
    %c0_195 = arith.constant 0 : index
    %c0_196 = arith.constant 0 : index
    %507 = vector.load %arg14[%c1_194, %c0_195, %c0_196] : memref<2x1x32xf32, #tpu.memory_space<vmem>>, vector<1x1x32xf32>
    %508 = vector.shape_cast %507 : vector<1x1x32xf32> to vector<1x32xf32>
    %509 = vector.extract_strided_slice %495 {offsets = [0, 0], sizes = [8, 32], strides = [1, 1]} : vector<16x32xf32> to vector<8x32xf32>
    %510 = vector.extract_strided_slice %503 {offsets = [0, 0], sizes = [16, 32], strides = [1, 1]} : vector<32x32xf32> to vector<16x32xf32>
    %511 = vector.extract_strided_slice %504 {offsets = [0, 0], sizes = [16, 32], strides = [1, 1]} : vector<32x32xf32> to vector<16x32xf32>
    %512 = vector.extract_strided_slice %509 {offsets = [0, 0], sizes = [8, 8], strides = [1, 1]} : vector<8x32xf32> to vector<8x8xf32>
    %513 = vector.extract_strided_slice %510 {offsets = [0, 0], sizes = [16, 8], strides = [1, 1]} : vector<16x32xf32> to vector<16x8xf32>
    %cst_197 = arith.constant dense<0.000000e+00> : vector<8x16xf32>
    %514 = tpu.matmul %512, %513, %cst_197 {dimension_numbers = #tpu.dot_dimension_numbers<[1], [1], [0], [0], [0, 0, 1, 0], [], []>} : vector<8x8xf32>, vector<16x8xf32>, vector<8x16xf32> -> vector<8x16xf32>
    %cst_198 = arith.constant dense<0xFF800000> : vector<8xf32>
    %515 = vector.multi_reduction <maximumf>, %514, %cst_198 [1] : vector<8x16xf32> to vector<8xf32>
    %516 = vector.shape_cast %515 : vector<8xf32> to vector<8x1xf32>
    %517 = vector.broadcast %516 : vector<8x1xf32> to vector<8x16xf32>
    %518 = arith.subf %514, %517 : vector<8x16xf32>
    %519 = math.exp %518 : vector<8x16xf32>
    %cst_199 = arith.constant dense<0.000000e+00> : vector<8xf32>
    %520 = vector.multi_reduction <add>, %519, %cst_199 [1] : vector<8x16xf32> to vector<8xf32>
    %521 = vector.shape_cast %520 : vector<8xf32> to vector<8x1xf32>
    %522 = tpu.reciprocal %521 {approx = true} : vector<8x1xf32> -> vector<8x1xf32>
    %523 = vector.broadcast %522 : vector<8x1xf32> to vector<8x16xf32>
    %524 = arith.mulf %519, %523 : vector<8x16xf32>
    %525 = vector.extract_strided_slice %511 {offsets = [0, 0], sizes = [16, 8], strides = [1, 1]} : vector<16x32xf32> to vector<16x8xf32>
    %cst_200 = arith.constant dense<0.000000e+00> : vector<8x8xf32>
    %526 = tpu.matmul %524, %525, %cst_200 {dimension_numbers = #tpu.dot_dimension_numbers<[1], [0], [0], [1], [0, 0, 1, 1], [], []>} : vector<8x16xf32>, vector<16x8xf32>, vector<8x8xf32> -> vector<8x8xf32>
    %527 = vector.extract_strided_slice %509 {offsets = [0, 8], sizes = [8, 8], strides = [1, 1]} : vector<8x32xf32> to vector<8x8xf32>
    %528 = vector.extract_strided_slice %510 {offsets = [0, 8], sizes = [16, 8], strides = [1, 1]} : vector<16x32xf32> to vector<16x8xf32>
    %cst_201 = arith.constant dense<0.000000e+00> : vector<8x16xf32>
    %529 = tpu.matmul %527, %528, %cst_201 {dimension_numbers = #tpu.dot_dimension_numbers<[1], [1], [0], [0], [0, 0, 1, 0], [], []>} : vector<8x8xf32>, vector<16x8xf32>, vector<8x16xf32> -> vector<8x16xf32>
    %cst_202 = arith.constant dense<0xFF800000> : vector<8xf32>
    %530 = vector.multi_reduction <maximumf>, %529, %cst_202 [1] : vector<8x16xf32> to vector<8xf32>
    %531 = vector.shape_cast %530 : vector<8xf32> to vector<8x1xf32>
    %532 = vector.broadcast %531 : vector<8x1xf32> to vector<8x16xf32>
    %533 = arith.subf %529, %532 : vector<8x16xf32>
    %534 = math.exp %533 : vector<8x16xf32>
    %cst_203 = arith.constant dense<0.000000e+00> : vector<8xf32>
    %535 = vector.multi_reduction <add>, %534, %cst_203 [1] : vector<8x16xf32> to vector<8xf32>
    %536 = vector.shape_cast %535 : vector<8xf32> to vector<8x1xf32>
    %537 = tpu.reciprocal %536 {approx = true} : vector<8x1xf32> -> vector<8x1xf32>
    %538 = vector.broadcast %537 : vector<8x1xf32> to vector<8x16xf32>
    %539 = arith.mulf %534, %538 : vector<8x16xf32>
    %540 = vector.extract_strided_slice %511 {offsets = [0, 8], sizes = [16, 8], strides = [1, 1]} : vector<16x32xf32> to vector<16x8xf32>
    %cst_204 = arith.constant dense<0.000000e+00> : vector<8x8xf32>
    %541 = tpu.matmul %539, %540, %cst_204 {dimension_numbers = #tpu.dot_dimension_numbers<[1], [0], [0], [1], [0, 0, 1, 1], [], []>} : vector<8x16xf32>, vector<16x8xf32>, vector<8x8xf32> -> vector<8x8xf32>
    %542 = vector.extract_strided_slice %509 {offsets = [0, 16], sizes = [8, 8], strides = [1, 1]} : vector<8x32xf32> to vector<8x8xf32>
    %543 = vector.extract_strided_slice %510 {offsets = [0, 16], sizes = [16, 8], strides = [1, 1]} : vector<16x32xf32> to vector<16x8xf32>
    %cst_205 = arith.constant dense<0.000000e+00> : vector<8x16xf32>
    %544 = tpu.matmul %542, %543, %cst_205 {dimension_numbers = #tpu.dot_dimension_numbers<[1], [1], [0], [0], [0, 0, 1, 0], [], []>} : vector<8x8xf32>, vector<16x8xf32>, vector<8x16xf32> -> vector<8x16xf32>
    %cst_206 = arith.constant dense<0xFF800000> : vector<8xf32>
    %545 = vector.multi_reduction <maximumf>, %544, %cst_206 [1] : vector<8x16xf32> to vector<8xf32>
    %546 = vector.shape_cast %545 : vector<8xf32> to vector<8x1xf32>
    %547 = vector.broadcast %546 : vector<8x1xf32> to vector<8x16xf32>
    %548 = arith.subf %544, %547 : vector<8x16xf32>
    %549 = math.exp %548 : vector<8x16xf32>
    %cst_207 = arith.constant dense<0.000000e+00> : vector<8xf32>
    %550 = vector.multi_reduction <add>, %549, %cst_207 [1] : vector<8x16xf32> to vector<8xf32>
    %551 = vector.shape_cast %550 : vector<8xf32> to vector<8x1xf32>
    %552 = tpu.reciprocal %551 {approx = true} : vector<8x1xf32> -> vector<8x1xf32>
    %553 = vector.broadcast %552 : vector<8x1xf32> to vector<8x16xf32>
    %554 = arith.mulf %549, %553 : vector<8x16xf32>
    %555 = vector.extract_strided_slice %511 {offsets = [0, 16], sizes = [16, 8], strides = [1, 1]} : vector<16x32xf32> to vector<16x8xf32>
    %cst_208 = arith.constant dense<0.000000e+00> : vector<8x8xf32>
    %556 = tpu.matmul %554, %555, %cst_208 {dimension_numbers = #tpu.dot_dimension_numbers<[1], [0], [0], [1], [0, 0, 1, 1], [], []>} : vector<8x16xf32>, vector<16x8xf32>, vector<8x8xf32> -> vector<8x8xf32>
    %557 = vector.extract_strided_slice %509 {offsets = [0, 24], sizes = [8, 8], strides = [1, 1]} : vector<8x32xf32> to vector<8x8xf32>
    %558 = vector.extract_strided_slice %510 {offsets = [0, 24], sizes = [16, 8], strides = [1, 1]} : vector<16x32xf32> to vector<16x8xf32>
    %cst_209 = arith.constant dense<0.000000e+00> : vector<8x16xf32>
    %559 = tpu.matmul %557, %558, %cst_209 {dimension_numbers = #tpu.dot_dimension_numbers<[1], [1], [0], [0], [0, 0, 1, 0], [], []>} : vector<8x8xf32>, vector<16x8xf32>, vector<8x16xf32> -> vector<8x16xf32>
    %cst_210 = arith.constant dense<0xFF800000> : vector<8xf32>
    %560 = vector.multi_reduction <maximumf>, %559, %cst_210 [1] : vector<8x16xf32> to vector<8xf32>
    %561 = vector.shape_cast %560 : vector<8xf32> to vector<8x1xf32>
    %562 = vector.broadcast %561 : vector<8x1xf32> to vector<8x16xf32>
    %563 = arith.subf %559, %562 : vector<8x16xf32>
    %564 = math.exp %563 : vector<8x16xf32>
    %cst_211 = arith.constant dense<0.000000e+00> : vector<8xf32>
    %565 = vector.multi_reduction <add>, %564, %cst_211 [1] : vector<8x16xf32> to vector<8xf32>
    %566 = vector.shape_cast %565 : vector<8xf32> to vector<8x1xf32>
    %567 = tpu.reciprocal %566 {approx = true} : vector<8x1xf32> -> vector<8x1xf32>
    %568 = vector.broadcast %567 : vector<8x1xf32> to vector<8x16xf32>
    %569 = arith.mulf %564, %568 : vector<8x16xf32>
    %570 = vector.extract_strided_slice %511 {offsets = [0, 24], sizes = [16, 8], strides = [1, 1]} : vector<16x32xf32> to vector<16x8xf32>
    %cst_212 = arith.constant dense<0.000000e+00> : vector<8x8xf32>
    %571 = tpu.matmul %569, %570, %cst_212 {dimension_numbers = #tpu.dot_dimension_numbers<[1], [0], [0], [1], [0, 0, 1, 1], [], []>} : vector<8x16xf32>, vector<16x8xf32>, vector<8x8xf32> -> vector<8x8xf32>
    %572 = tpu.concatenate %526, %541, %556, %571 in 1 : vector<8x8xf32>, vector<8x8xf32>, vector<8x8xf32>, vector<8x8xf32> -> vector<8x32xf32>
    %573 = vector.extract_strided_slice %495 {offsets = [8, 0], sizes = [8, 32], strides = [1, 1]} : vector<16x32xf32> to vector<8x32xf32>
    %574 = vector.extract_strided_slice %503 {offsets = [16, 0], sizes = [16, 32], strides = [1, 1]} : vector<32x32xf32> to vector<16x32xf32>
    %575 = vector.extract_strided_slice %504 {offsets = [16, 0], sizes = [16, 32], strides = [1, 1]} : vector<32x32xf32> to vector<16x32xf32>
    %576 = vector.extract_strided_slice %573 {offsets = [0, 0], sizes = [8, 8], strides = [1, 1]} : vector<8x32xf32> to vector<8x8xf32>
    %577 = vector.extract_strided_slice %574 {offsets = [0, 0], sizes = [16, 8], strides = [1, 1]} : vector<16x32xf32> to vector<16x8xf32>
    %cst_213 = arith.constant dense<0.000000e+00> : vector<8x16xf32>
    %578 = tpu.matmul %576, %577, %cst_213 {dimension_numbers = #tpu.dot_dimension_numbers<[1], [1], [0], [0], [0, 0, 1, 0], [], []>} : vector<8x8xf32>, vector<16x8xf32>, vector<8x16xf32> -> vector<8x16xf32>
    %cst_214 = arith.constant dense<0xFF800000> : vector<8xf32>
    %579 = vector.multi_reduction <maximumf>, %578, %cst_214 [1] : vector<8x16xf32> to vector<8xf32>
    %580 = vector.shape_cast %579 : vector<8xf32> to vector<8x1xf32>
    %581 = vector.broadcast %580 : vector<8x1xf32> to vector<8x16xf32>
    %582 = arith.subf %578, %581 : vector<8x16xf32>
    %583 = math.exp %582 : vector<8x16xf32>
    %cst_215 = arith.constant dense<0.000000e+00> : vector<8xf32>
    %584 = vector.multi_reduction <add>, %583, %cst_215 [1] : vector<8x16xf32> to vector<8xf32>
    %585 = vector.shape_cast %584 : vector<8xf32> to vector<8x1xf32>
    %586 = tpu.reciprocal %585 {approx = true} : vector<8x1xf32> -> vector<8x1xf32>
    %587 = vector.broadcast %586 : vector<8x1xf32> to vector<8x16xf32>
    %588 = arith.mulf %583, %587 : vector<8x16xf32>
    %589 = vector.extract_strided_slice %575 {offsets = [0, 0], sizes = [16, 8], strides = [1, 1]} : vector<16x32xf32> to vector<16x8xf32>
    %cst_216 = arith.constant dense<0.000000e+00> : vector<8x8xf32>
    %590 = tpu.matmul %588, %589, %cst_216 {dimension_numbers = #tpu.dot_dimension_numbers<[1], [0], [0], [1], [0, 0, 1, 1], [], []>} : vector<8x16xf32>, vector<16x8xf32>, vector<8x8xf32> -> vector<8x8xf32>
    %591 = vector.extract_strided_slice %573 {offsets = [0, 8], sizes = [8, 8], strides = [1, 1]} : vector<8x32xf32> to vector<8x8xf32>
    %592 = vector.extract_strided_slice %574 {offsets = [0, 8], sizes = [16, 8], strides = [1, 1]} : vector<16x32xf32> to vector<16x8xf32>
    %cst_217 = arith.constant dense<0.000000e+00> : vector<8x16xf32>
    %593 = tpu.matmul %591, %592, %cst_217 {dimension_numbers = #tpu.dot_dimension_numbers<[1], [1], [0], [0], [0, 0, 1, 0], [], []>} : vector<8x8xf32>, vector<16x8xf32>, vector<8x16xf32> -> vector<8x16xf32>
    %cst_218 = arith.constant dense<0xFF800000> : vector<8xf32>
    %594 = vector.multi_reduction <maximumf>, %593, %cst_218 [1] : vector<8x16xf32> to vector<8xf32>
    %595 = vector.shape_cast %594 : vector<8xf32> to vector<8x1xf32>
    %596 = vector.broadcast %595 : vector<8x1xf32> to vector<8x16xf32>
    %597 = arith.subf %593, %596 : vector<8x16xf32>
    %598 = math.exp %597 : vector<8x16xf32>
    %cst_219 = arith.constant dense<0.000000e+00> : vector<8xf32>
    %599 = vector.multi_reduction <add>, %598, %cst_219 [1] : vector<8x16xf32> to vector<8xf32>
    %600 = vector.shape_cast %599 : vector<8xf32> to vector<8x1xf32>
    %601 = tpu.reciprocal %600 {approx = true} : vector<8x1xf32> -> vector<8x1xf32>
    %602 = vector.broadcast %601 : vector<8x1xf32> to vector<8x16xf32>
    %603 = arith.mulf %598, %602 : vector<8x16xf32>
    %604 = vector.extract_strided_slice %575 {offsets = [0, 8], sizes = [16, 8], strides = [1, 1]} : vector<16x32xf32> to vector<16x8xf32>
    %cst_220 = arith.constant dense<0.000000e+00> : vector<8x8xf32>
    %605 = tpu.matmul %603, %604, %cst_220 {dimension_numbers = #tpu.dot_dimension_numbers<[1], [0], [0], [1], [0, 0, 1, 1], [], []>} : vector<8x16xf32>, vector<16x8xf32>, vector<8x8xf32> -> vector<8x8xf32>
    %606 = vector.extract_strided_slice %573 {offsets = [0, 16], sizes = [8, 8], strides = [1, 1]} : vector<8x32xf32> to vector<8x8xf32>
    %607 = vector.extract_strided_slice %574 {offsets = [0, 16], sizes = [16, 8], strides = [1, 1]} : vector<16x32xf32> to vector<16x8xf32>
    %cst_221 = arith.constant dense<0.000000e+00> : vector<8x16xf32>
    %608 = tpu.matmul %606, %607, %cst_221 {dimension_numbers = #tpu.dot_dimension_numbers<[1], [1], [0], [0], [0, 0, 1, 0], [], []>} : vector<8x8xf32>, vector<16x8xf32>, vector<8x16xf32> -> vector<8x16xf32>
    %cst_222 = arith.constant dense<0xFF800000> : vector<8xf32>
    %609 = vector.multi_reduction <maximumf>, %608, %cst_222 [1] : vector<8x16xf32> to vector<8xf32>
    %610 = vector.shape_cast %609 : vector<8xf32> to vector<8x1xf32>
    %611 = vector.broadcast %610 : vector<8x1xf32> to vector<8x16xf32>
    %612 = arith.subf %608, %611 : vector<8x16xf32>
    %613 = math.exp %612 : vector<8x16xf32>
    %cst_223 = arith.constant dense<0.000000e+00> : vector<8xf32>
    %614 = vector.multi_reduction <add>, %613, %cst_223 [1] : vector<8x16xf32> to vector<8xf32>
    %615 = vector.shape_cast %614 : vector<8xf32> to vector<8x1xf32>
    %616 = tpu.reciprocal %615 {approx = true} : vector<8x1xf32> -> vector<8x1xf32>
    %617 = vector.broadcast %616 : vector<8x1xf32> to vector<8x16xf32>
    %618 = arith.mulf %613, %617 : vector<8x16xf32>
    %619 = vector.extract_strided_slice %575 {offsets = [0, 16], sizes = [16, 8], strides = [1, 1]} : vector<16x32xf32> to vector<16x8xf32>
    %cst_224 = arith.constant dense<0.000000e+00> : vector<8x8xf32>
    %620 = tpu.matmul %618, %619, %cst_224 {dimension_numbers = #tpu.dot_dimension_numbers<[1], [0], [0], [1], [0, 0, 1, 1], [], []>} : vector<8x16xf32>, vector<16x8xf32>, vector<8x8xf32> -> vector<8x8xf32>
    %621 = vector.extract_strided_slice %573 {offsets = [0, 24], sizes = [8, 8], strides = [1, 1]} : vector<8x32xf32> to vector<8x8xf32>
    %622 = vector.extract_strided_slice %574 {offsets = [0, 24], sizes = [16, 8], strides = [1, 1]} : vector<16x32xf32> to vector<16x8xf32>
    %cst_225 = arith.constant dense<0.000000e+00> : vector<8x16xf32>
    %623 = tpu.matmul %621, %622, %cst_225 {dimension_numbers = #tpu.dot_dimension_numbers<[1], [1], [0], [0], [0, 0, 1, 0], [], []>} : vector<8x8xf32>, vector<16x8xf32>, vector<8x16xf32> -> vector<8x16xf32>
    %cst_226 = arith.constant dense<0xFF800000> : vector<8xf32>
    %624 = vector.multi_reduction <maximumf>, %623, %cst_226 [1] : vector<8x16xf32> to vector<8xf32>
    %625 = vector.shape_cast %624 : vector<8xf32> to vector<8x1xf32>
    %626 = vector.broadcast %625 : vector<8x1xf32> to vector<8x16xf32>
    %627 = arith.subf %623, %626 : vector<8x16xf32>
    %628 = math.exp %627 : vector<8x16xf32>
    %cst_227 = arith.constant dense<0.000000e+00> : vector<8xf32>
    %629 = vector.multi_reduction <add>, %628, %cst_227 [1] : vector<8x16xf32> to vector<8xf32>
    %630 = vector.shape_cast %629 : vector<8xf32> to vector<8x1xf32>
    %631 = tpu.reciprocal %630 {approx = true} : vector<8x1xf32> -> vector<8x1xf32>
    %632 = vector.broadcast %631 : vector<8x1xf32> to vector<8x16xf32>
    %633 = arith.mulf %628, %632 : vector<8x16xf32>
    %634 = vector.extract_strided_slice %575 {offsets = [0, 24], sizes = [16, 8], strides = [1, 1]} : vector<16x32xf32> to vector<16x8xf32>
    %cst_228 = arith.constant dense<0.000000e+00> : vector<8x8xf32>
    %635 = tpu.matmul %633, %634, %cst_228 {dimension_numbers = #tpu.dot_dimension_numbers<[1], [0], [0], [1], [0, 0, 1, 1], [], []>} : vector<8x16xf32>, vector<16x8xf32>, vector<8x8xf32> -> vector<8x8xf32>
    %636 = tpu.concatenate %590, %605, %620, %635 in 1 : vector<8x8xf32>, vector<8x8xf32>, vector<8x8xf32>, vector<8x8xf32> -> vector<8x32xf32>
    %637 = tpu.concatenate %572, %636 in 0 : vector<8x32xf32>, vector<8x32xf32> -> vector<16x32xf32>
    %cst_229 = arith.constant dense<0.000000e+00> : vector<16x32xf32>
    %638 = tpu.matmul %637, %506, %cst_229 {dimension_numbers = #tpu.dot_dimension_numbers<[1], [0], [0], [1], [0, 0, 1, 1], [], []>} : vector<16x32xf32>, vector<32x32xf32>, vector<16x32xf32> -> vector<16x32xf32>
    %639 = arith.addf %488, %638 : vector<16x32xf32>
    %640 = vector.broadcast %508 : vector<1x32xf32> to vector<16x32xf32>
    %641 = arith.addf %639, %640 : vector<16x32xf32>
    %cst_230 = arith.constant dense<0.000000e+00> : vector<16x32xf32>
    %642 = tpu.matmul %0, %641, %cst_230 {dimension_numbers = #tpu.dot_dimension_numbers<[1], [0], [0], [1], [0, 0, 1, 1], [], []>} : vector<16x16xf32>, vector<16x32xf32>, vector<16x32xf32> -> vector<16x32xf32>
    %643 = arith.subf %641, %642 : vector<16x32xf32>
    %c1_231 = arith.constant 1 : index
    %c0_232 = arith.constant 0 : index
    %c0_233 = arith.constant 0 : index
    %644 = vector.load %arg15[%c1_231, %c0_232, %c0_233] : memref<2x32x32xf32, #tpu.memory_space<vmem>>, vector<1x32x32xf32>
    %645 = vector.shape_cast %644 : vector<1x32x32xf32> to vector<32x32xf32>
    %cst_234 = arith.constant dense<0.000000e+00> : vector<16x32xf32>
    %646 = tpu.matmul %643, %645, %cst_234 {dimension_numbers = #tpu.dot_dimension_numbers<[1], [0], [0], [1], [0, 0, 1, 1], [], []>} : vector<16x32xf32>, vector<32x32xf32>, vector<16x32xf32> -> vector<16x32xf32>
    %cst_235 = arith.constant 0.000000e+00 : f32
    %647 = vector.broadcast %cst_235 : f32 to vector<16x32xf32>
    %648 = arith.maximumf %646, %647 : vector<16x32xf32>
    %c1_236 = arith.constant 1 : index
    %c0_237 = arith.constant 0 : index
    %c0_238 = arith.constant 0 : index
    %649 = vector.load %arg16[%c1_236, %c0_237, %c0_238] : memref<2x32x32xf32, #tpu.memory_space<vmem>>, vector<1x32x32xf32>
    %650 = vector.shape_cast %649 : vector<1x32x32xf32> to vector<32x32xf32>
    %cst_239 = arith.constant dense<0.000000e+00> : vector<16x32xf32>
    %651 = tpu.matmul %648, %650, %cst_239 {dimension_numbers = #tpu.dot_dimension_numbers<[1], [0], [0], [1], [0, 0, 1, 1], [], []>} : vector<16x32xf32>, vector<32x32xf32>, vector<16x32xf32> -> vector<16x32xf32>
    %652 = arith.addf %643, %651 : vector<16x32xf32>
    %cst_240 = arith.constant dense<0.000000e+00> : vector<16x32xf32>
    %653 = tpu.matmul %0, %652, %cst_240 {dimension_numbers = #tpu.dot_dimension_numbers<[1], [0], [0], [1], [0, 0, 1, 1], [], []>} : vector<16x16xf32>, vector<16x32xf32>, vector<16x32xf32> -> vector<16x32xf32>
    %654 = arith.subf %652, %653 : vector<16x32xf32>
    %655 = arith.addf %487, %642 : vector<16x32xf32>
    %656 = arith.addf %655, %653 : vector<16x32xf32>
    %657 = vector.extract_strided_slice %656 {offsets = [0, 0], sizes = [8, 32], strides = [1, 1]} : vector<16x32xf32> to vector<8x32xf32>
    %c1_i32_241 = arith.constant 1 : i32
    %658 = tpu.dynamic_rotate %657 by %c1_i32_241 dim 0 : vector<8x32xf32>, i32 -> vector<8x32xf32>
    %659 = vector.extract_strided_slice %656 {offsets = [8, 0], sizes = [8, 32], strides = [1, 1]} : vector<16x32xf32> to vector<8x32xf32>
    %c1_i32_242 = arith.constant 1 : i32
    %660 = tpu.dynamic_rotate %659 by %c1_i32_242 dim 0 : vector<8x32xf32>, i32 -> vector<8x32xf32>
    %661 = tpu.concatenate %658, %660 in 0 : vector<8x32xf32>, vector<8x32xf32> -> vector<16x32xf32>
    %662 = vector.extract_strided_slice %656 {offsets = [0, 0], sizes = [8, 32], strides = [1, 1]} : vector<16x32xf32> to vector<8x32xf32>
    %c7_i32_243 = arith.constant 7 : i32
    %663 = tpu.dynamic_rotate %662 by %c7_i32_243 dim 0 : vector<8x32xf32>, i32 -> vector<8x32xf32>
    %664 = vector.extract_strided_slice %656 {offsets = [8, 0], sizes = [8, 32], strides = [1, 1]} : vector<16x32xf32> to vector<8x32xf32>
    %c7_i32_244 = arith.constant 7 : i32
    %665 = tpu.dynamic_rotate %664 by %c7_i32_244 dim 0 : vector<8x32xf32>, i32 -> vector<8x32xf32>
    %666 = tpu.concatenate %663, %665 in 0 : vector<8x32xf32>, vector<8x32xf32> -> vector<16x32xf32>
    %667 = tpu.concatenate %661, %656, %666 in 1 : vector<16x32xf32>, vector<16x32xf32>, vector<16x32xf32> -> vector<16x96xf32>
    %c1_245 = arith.constant 1 : index
    %c0_246 = arith.constant 0 : index
    %c0_247 = arith.constant 0 : index
    %668 = vector.load %arg17[%c1_245, %c0_246, %c0_247] : memref<2x96x4xf32, #tpu.memory_space<vmem>>, vector<1x96x4xf32>
    %669 = vector.shape_cast %668 : vector<1x96x4xf32> to vector<96x4xf32>
    %cst_248 = arith.constant dense<0.000000e+00> : vector<16x4xf32>
    %670 = tpu.matmul %667, %669, %cst_248 {dimension_numbers = #tpu.dot_dimension_numbers<[1], [0], [0], [1], [0, 0, 1, 1], [], []>} : vector<16x96xf32>, vector<96x4xf32>, vector<16x4xf32> -> vector<16x4xf32>
    %671 = arith.addf %339, %670 : vector<16x4xf32>
    %cst_249 = arith.constant dense<0.000000e+00> : vector<16xf32>
    %672 = vector.multi_reduction <add>, %654, %cst_249 [1] : vector<16x32xf32> to vector<16xf32>
    %673 = vector.shape_cast %672 : vector<16xf32> to vector<16x1xf32>
    %cst_250 = arith.constant 3.200000e+01 : f32
    %674 = vector.broadcast %cst_250 : f32 to vector<16x1xf32>
    %675 = arith.divf %673, %674 : vector<16x1xf32>
    %676 = vector.broadcast %675 : vector<16x1xf32> to vector<16x32xf32>
    %677 = arith.subf %654, %676 : vector<16x32xf32>
    %678 = arith.mulf %677, %677 : vector<16x32xf32>
    %cst_251 = arith.constant dense<0.000000e+00> : vector<16xf32>
    %679 = vector.multi_reduction <add>, %678, %cst_251 [1] : vector<16x32xf32> to vector<16xf32>
    %680 = vector.shape_cast %679 : vector<16xf32> to vector<16x1xf32>
    %cst_252 = arith.constant 3.200000e+01 : f32
    %681 = vector.broadcast %cst_252 : f32 to vector<16x1xf32>
    %682 = arith.divf %680, %681 : vector<16x1xf32>
    %cst_253 = arith.constant 9.99999974E-6 : f32
    %683 = vector.broadcast %cst_253 : f32 to vector<16x1xf32>
    %684 = arith.addf %682, %683 : vector<16x1xf32>
    %685 = math.rsqrt %684 : vector<16x1xf32>
    %686 = vector.broadcast %685 : vector<16x1xf32> to vector<16x32xf32>
    %687 = arith.mulf %677, %686 : vector<16x32xf32>
    %688 = vector.broadcast %1 : vector<1x32xf32> to vector<16x32xf32>
    %689 = arith.mulf %687, %688 : vector<16x32xf32>
    %690 = vector.broadcast %2 : vector<1x32xf32> to vector<16x32xf32>
    %691 = arith.addf %689, %690 : vector<16x32xf32>
    %c0_254 = arith.constant 0 : index
    %c0_255 = arith.constant 0 : index
    %692 = vector.load %arg4[%c0_254, %c0_255] : memref<16x16xf32, #tpu.memory_space<vmem>>, vector<16x16xf32>
    %cst_256 = arith.constant dense<0.000000e+00> : vector<16x32xf32>
    %693 = tpu.matmul %692, %691, %cst_256 {dimension_numbers = #tpu.dot_dimension_numbers<[1], [0], [0], [1], [0, 0, 1, 1], [], []>} : vector<16x16xf32>, vector<16x32xf32>, vector<16x32xf32> -> vector<16x32xf32>
    %694 = arith.subf %691, %693 : vector<16x32xf32>
    %cst_257 = arith.constant dense<0.000000e+00> : vector<16x4xf32>
    %695 = tpu.matmul %694, %3, %cst_257 {dimension_numbers = #tpu.dot_dimension_numbers<[1], [0], [0], [1], [0, 0, 1, 1], [], []>} : vector<16x32xf32>, vector<32x4xf32>, vector<16x4xf32> -> vector<16x4xf32>
    %696 = vector.broadcast %4 : vector<1x4xf32> to vector<16x4xf32>
    %697 = arith.addf %695, %696 : vector<16x4xf32>
    %698 = tpu.concatenate %697, %671 in 1 : vector<16x4xf32>, vector<16x4xf32> -> vector<16x8xf32>
    %c0_258 = arith.constant 0 : index
    %c0_259 = arith.constant 0 : index
    %699 = vector.load %arg22[%c0_258, %c0_259] : memref<16x8xf32, #tpu.memory_space<vmem>>, vector<16x8xf32>
    tpu.vector_store %arg22[%c0_258, %c0_259], %698 {strides = array<i32>} : memref<16x8xf32, #tpu.memory_space<vmem>>, vector<16x8xf32>,
    return
  }
}

</mosaic_0001>

<bundles_post_ra>
// kernel: decoder_forward.1
= control target key start
LH: loop header
LB: loop body
LE: loop exit
PB: predicated region body
PF: predicated region fallthrough
CT: control target
= control target key end

     0   :  { %s11559_s0 = inlined_call_operand.hbm [shape: f32[16,32], index: 0, kind: input, shape index: {}]   ;;  %s11560_s1 = inlined_call_operand.hbm [shape: f32[32,32], index: 1, kind: input, shape index: {}]   ;;  %s11561_s2 = inlined_call_operand.vmem [shape: f32[16,4], index: 2, kind: input, shape index: {}]   ;;  %s11562_s3 = inlined_call_operand.hbm [shape: f32[16,16], index: 3, kind: input, shape index: {}]   ;;  %s11563_s4 = inlined_call_operand.vmem [shape: f32[16,16], index: 4, kind: input, shape index: {}]   ;;  %s11564_s5 = inlined_call_operand.vmem [shape: f32[2,32,96], index: 5, kind: input, shape index: {}]   ;;  %s11565_s6 = inlined_call_operand.vmem [shape: f32[2,1,96], index: 6, kind: input, shape index: {}]   ;;  %s11566_s7 = inlined_call_operand.vmem [shape: f32[2,32,32], index: 7, kind: input, shape index: {}]   ;;  %s11567_s8 = inlined_call_operand.hbm [shape: f32[2,1,32], index: 8, kind: input, shape index: {}]   ;;  %s11568_s9 = inlined_call_operand.vmem [shape: f32[2,32,32], index: 9, kind: input, shape index: {}]   ;;  %s11569_s10 = inlined_call_operand.hbm [shape: f32[2,1,32], index: 10, kind: input, shape index: {}]   ;;  %s11570_s11 = inlined_call_operand.vmem [shape: f32[2,32,64], index: 11, kind: input, shape index: {}]   ;;  %s11571_s12 = inlined_call_operand.hbm [shape: f32[2,1,64], index: 12, kind: input, shape index: {}]   ;;  %s11572_s13 = inlined_call_operand.hbm [shape: f32[2,32,32], index: 13, kind: input, shape index: {}]   ;;  %s11573_s14 = inlined_call_operand.hbm [shape: f32[2,1,32], index: 14, kind: input, shape index: {}]   ;;  %s11574_s15 = inlined_call_operand.vmem [shape: f32[2,32,32], index: 15, kind: input, shape index: {}]   ;;  %s11575_s16 = inlined_call_operand.hbm [shape: f32[2,32,32], index: 16, kind: input, shape index: {}]   ;;  %s11576_s17 = inlined_call_operand.vmem [shape: f32[2,96,4], index: 17, kind: input, shape index: {}]   ;;  %s11577_s18 = inlined_call_operand.hbm [shape: f32[1,32], index: 18, kind: input, shape index: {}]   ;;  %s11578_s19 = inlined_call_operand.hbm [shape: f32[1,32], index: 19, kind: input, shape index: {}]   ;;  %s11579_s20 = inlined_call_operand.vmem [shape: f32[32,4], index: 20, kind: input, shape index: {}]   ;;  %s11580_s21 = inlined_call_operand.hbm [shape: f32[1,4], index: 21, kind: input, shape index: {}]   ;;  %s11581_s22 = inlined_call_operand.vmem [shape: f32[16,8], index: 22, kind: output, shape index: {}]  }
   0x1   :  { %11594 = sst [smem:[#allocation28_spill]] %s11559_s0 }
   0x2   :  { %11595 = sst [smem:[#allocation29_spill]] %s11560_s1 }
   0x3   :  { %11596 = sst [smem:[#allocation30_spill]] %s11561_s2 }
   0x4   :  { %11597 = sst [smem:[#allocation31_spill]] %s11562_s3 }
   0x5   :  { %11598 = sst [smem:[#allocation32_spill]] %s11563_s4 }
   0x6   :  { %11599 = sst [smem:[#allocation33_spill]] %s11564_s5 }
   0x7   :  { %11600 = sst [smem:[#allocation34_spill]] %s11565_s6 }
   0x8   :  { %11601 = sst [smem:[#allocation35_spill]] %s11581_s22 }
   0x9   :  { %27 = vsyncpa [#allocation3], 0 }
   0xa   :  { %28 = vsyncpa [#allocation5], 0 }
   0xb   :  { %29 = vsyncpa [#allocation8], 0 }
   0xc   :  { %30 = vsyncpa [#allocation11], 0 }
   0xd   :  { %31 = vsyncpa [#allocation14], 0 }
   0xe   :  { %32 = vsyncpa [#allocation17], 0 }
   0xf   :  { %33 = vsyncpa [#allocation20], 0  ;;  %s10096_s3 = smov [#allocation4]   ;;  %s10097_s29 = smov [#allocation7]  }
  0x10   :  { %s51_s28 = sshll.u32 %s10096_s3, 4  ;;  %s85_s30 = sshll.u32 %s10097_s29, 4  ;;  %s52_s28 = int_to_ptr.vmem [resolvable:$true] %s51_s28  ;;  %s10244_s30 = int_to_ptr.vmem [resolvable:$true] %s85_s30 }
  0x11   :  { %s11602_s23 = sld [smem:[#allocation29_spill]] }
  0x17   :  { %s9818_s1 = scalar_lea.hbm %s11602_s23, 512 }
  0x18   :  { %p9819_p0 = scmp.ne.s32.totalorder %s11602_s23, %s9818_s1  ;;  %p9822_p1 = scmp.lt.u32.totalorder %s9818_s1, %s11602_s23 }
  0x1a   :  { %p9824_p2 = pnand %p9822_p1, %p9819_p0 }
  0x1c   :  { %9827 = shalt.err (!%p9824_p2)
}
  0x1d   :  { %s9828_s26 = scalar_lea.vmem %s52_s28, 512  ;;  %p9833_p4 = scmp.lt.s32.totalorder %s52_s28, %s52_s28 }
  0x1e   :  { %p9829_p3 = scmp.ne.s32.totalorder %s52_s28, %s9828_s26  ;;  %p9834_p5 = scmp.lt.s32.totalorder %s9828_s26, %s9828_s26 }
  0x20   :  { %p9835_p6 = por %p9834_p5, %p9833_p4 }
  0x22   :  { %p9836_p7 = pnand %p9835_p6, %p9829_p3 }
  0x24   :  { %9839 = shalt.err (!%p9836_p7)
}
  0x25   :  { %s11589_s2 = smov 128   ;;  %s11591_s27 = smov 8  }
  0x26   :  { %57 = dma.hbm_to_vmem [thread:$0]  %s11602_s23, 512, %s52_s28, [#allocation5], %s11589_s2, %s11589_s2, %s11591_s27  }
  0x27   :  { %s9840_s1 = scalar_lea.hbm %s11567_s8, 32 }
  0x28   :  { %p9841_p8 = scmp.ne.s32.totalorder %s11567_s8, %s9840_s1  ;;  %p9844_p9 = scmp.lt.u32.totalorder %s9840_s1, %s11567_s8 }
  0x2a   :  { %p9846_p10 = pnand %p9844_p9, %p9841_p8 }
  0x2c   :  { %9849 = shalt.err (!%p9846_p10)
}
  0x2d   :  { %s9850_s26 = scalar_lea.vmem %s10244_s30, 32  ;;  %p9855_p12 = scmp.lt.s32.totalorder %s10244_s30, %s10244_s30 }
  0x2e   :  { %p9851_p11 = scmp.ne.s32.totalorder %s10244_s30, %s9850_s26  ;;  %p9856_p13 = scmp.lt.s32.totalorder %s9850_s26, %s9850_s26 }
  0x30   :  { %p9857_p0 = por %p9856_p13, %p9855_p12 }
  0x32   :  { %p9858_p1 = pnand %p9857_p0, %p9851_p11 }
  0x34   :  { %9861 = shalt.err (!%p9858_p1)
}
  0x35   :  { %s10100_s28 = smov 16   ;;  %s10101_s23 = smov 1  }
  0x36   :  { %91 = dma.hbm_to_vmem [thread:$0]  %s11567_s8, 32, %s10244_s30, [#allocation8], %s10100_s28, %s10100_s28, %s10101_s23  }
  0x37   :  { %s10102_s4 = smov [#allocation10]   ;;  %s10103_s1 = smov [#allocation13]  }
  0x38   :  { %s113_s0 = sshll.u32 %s10102_s4, 4  ;;  %s137_s5 = sshll.u32 %s10103_s1, 4  ;;  %s114_s0 = int_to_ptr.vmem [resolvable:$true] %s113_s0  ;;  %s10281_s5 = int_to_ptr.vmem [resolvable:$true] %s137_s5 }
  0x39   :  { %s9862_s25 = scalar_lea.hbm %s11571_s12, 32 }
  0x3a   :  { %p9863_p2 = scmp.ne.s32.totalorder %s11571_s12, %s9862_s25  ;;  %p9866_p3 = scmp.lt.u32.totalorder %s9862_s25, %s11571_s12 }
  0x3c   :  { %p9868_p4 = pnand %p9866_p3, %p9863_p2 }
  0x3e   :  { %9871 = shalt.err (!%p9868_p4)
}
  0x3f   :  { %s9872_s8 = scalar_lea.vmem %s114_s0, 32  ;;  %p9877_p6 = scmp.lt.s32.totalorder %s114_s0, %s114_s0 }
  0x40   :  { %p9873_p5 = scmp.ne.s32.totalorder %s114_s0, %s9872_s8  ;;  %p9878_p7 = scmp.lt.s32.totalorder %s9872_s8, %s9872_s8 }
  0x42   :  { %p9879_p8 = por %p9878_p7, %p9877_p6 }
  0x44   :  { %p9880_p9 = pnand %p9879_p8, %p9873_p5 }
  0x46   :  { %9883 = shalt.err (!%p9880_p9)
}
  0x47   :  { %119 = dma.hbm_to_vmem [thread:$0]  %s11571_s12, 32, %s114_s0, [#allocation11], %s10100_s28, %s10100_s28, %s10101_s23  }
  0x48   :  { %s9884_s22 = scalar_lea.hbm %s11573_s14, 32 }
  0x49   :  { %p9885_p10 = scmp.ne.s32.totalorder %s11573_s14, %s9884_s22  ;;  %p9888_p11 = scmp.lt.u32.totalorder %s9884_s22, %s11573_s14 }
  0x4b   :  { %p9890_p12 = pnand %p9888_p11, %p9885_p10 }
  0x4d   :  { %9893 = shalt.err (!%p9890_p12)
}
  0x4e   :  { %s9894_s6 = scalar_lea.vmem %s10281_s5, 32  ;;  %p9899_p0 = scmp.lt.s32.totalorder %s10281_s5, %s10281_s5 }
  0x4f   :  { %p9895_p13 = scmp.ne.s32.totalorder %s10281_s5, %s9894_s6  ;;  %p9900_p1 = scmp.lt.s32.totalorder %s9894_s6, %s9894_s6 }
  0x51   :  { %p9901_p2 = por %p9900_p1, %p9899_p0 }
  0x53   :  { %p9902_p3 = pnand %p9901_p2, %p9895_p13 }
  0x55   :  { %9905 = shalt.err (!%p9902_p3)
}
  0x56   :  { %143 = dma.hbm_to_vmem [thread:$0]  %s11573_s14, 32, %s10281_s5, [#allocation14], %s10100_s28, %s10100_s28, %s10101_s23  }
  0x57   :  { %s10104_s25 = smov [#allocation16]   ;;  %s10105_s8 = smov [#allocation2]  }
  0x58   :  { %s166_s26 = sshll.u32 %s10104_s25, 4  ;;  %s39_s30 = sshll.u32 %s10105_s8, 4  ;;  %s167_s26 = int_to_ptr.vmem [resolvable:$true] %s166_s26  ;;  %s10318_s30 = int_to_ptr.vmem [resolvable:$true] %s39_s30 }
  0x59   :  { %s9906_s29 = scalar_lea.hbm %s11577_s18, 16 }
  0x5a   :  { %p9907_p4 = scmp.ne.s32.totalorder %s11577_s18, %s9906_s29  ;;  %p9910_p5 = scmp.lt.u32.totalorder %s9906_s29, %s11577_s18 }
  0x5c   :  { %p9912_p6 = pnand %p9910_p5, %p9907_p4 }
  0x5e   :  { %9915 = shalt.err (!%p9912_p6)
}
  0x5f   :  { %s9916_s14 = scalar_lea.vmem %s167_s26, 16  ;;  %s9920_s5 = scalar_lea.vmem %s167_s26, 32 }
  0x60   :  { %p9917_p7 = scmp.ne.s32.totalorder %s167_s26, %s9916_s14  ;;  %p9921_p8 = scmp.lt.s32.totalorder %s167_s26, %s167_s26 }
  0x61   :  { %p9922_p9 = scmp.lt.s32.totalorder %s9920_s5, %s9916_s14 }
  0x63   :  { %p9923_p10 = por %p9922_p9, %p9921_p8 }
  0x65   :  { %p9924_p11 = pnand %p9923_p10, %p9917_p7 }
  0x67   :  { %9927 = shalt.err (!%p9924_p11)
}
  0x68   :  { %169 = dma.hbm_to_vmem [thread:$0]  %s11577_s18, 16, %s167_s26, [#allocation17]  }
  0x69   :  { %s11603_s25 = sld [smem:[#allocation28_spill]] }
  0x6f   :  { %s9928_s8 = scalar_lea.hbm %s11603_s25, 256 }
  0x70   :  { %p9929_p12 = scmp.ne.s32.totalorder %s11603_s25, %s9928_s8  ;;  %p9932_p13 = scmp.lt.u32.totalorder %s9928_s8, %s11603_s25 }
  0x72   :  { %p9934_p0 = pnand %p9932_p13, %p9929_p12 }
  0x74   :  { %9937 = shalt.err (!%p9934_p0)
}
  0x75   :  { %s9938_s27 = scalar_lea.vmem %s10318_s30, 256  ;;  %p9943_p2 = scmp.lt.s32.totalorder %s10318_s30, %s10318_s30 }
  0x76   :  { %p9939_p1 = scmp.ne.s32.totalorder %s10318_s30, %s9938_s27  ;;  %p9944_p3 = scmp.lt.s32.totalorder %s9938_s27, %s9938_s27 }
  0x78   :  { %p9945_p4 = por %p9944_p3, %p9943_p2 }
  0x7a   :  { %p9946_p5 = pnand %p9945_p4, %p9939_p1 }
  0x7c   :  { %9949 = shalt.err (!%p9946_p5)
}
  0x7d   :  { %s11604_s18 = smov 8   ;;  %s11605_s26 = smov 128  }
  0x7e   :  { %45 = dma.hbm_to_vmem [thread:$0]  %s11603_s25, 256, %s10318_s30, [#allocation3], %s11605_s26, %s11605_s26, %s11604_s18  }
  0x7f   :  { %s10106_s14 = smov [#allocation6]   ;;  %s10107_s24 = smov [#allocation9]  }
  0x80   :  { %s65_s5 = sshll.u32 %s10106_s14, 4  ;;  %s99_s6 = sshll.u32 %s10107_s24, 4  ;;  %s66_s5 = int_to_ptr.vmem [resolvable:$true] %s65_s5  ;;  %s10352_s6 = int_to_ptr.vmem [resolvable:$true] %s99_s6 }
  0x81   :  { %s11606_s8 = sld [smem:[#allocation31_spill]] }
  0x87   :  { %s9950_s3 = scalar_lea.hbm %s11606_s8, 256 }
  0x88   :  { %p9951_p6 = scmp.ne.s32.totalorder %s11606_s8, %s9950_s3  ;;  %p9954_p7 = scmp.lt.u32.totalorder %s9950_s3, %s11606_s8 }
  0x8a   :  { %p9956_p8 = pnand %p9954_p7, %p9951_p6 }
  0x8c   :  { %9959 = shalt.err (!%p9956_p8)
}
  0x8d   :  { %s9960_s30 = scalar_lea.vmem %s66_s5, 256  ;;  %p9965_p10 = scmp.lt.s32.totalorder %s66_s5, %s66_s5 }
  0x8e   :  { %p9961_p9 = scmp.ne.s32.totalorder %s66_s5, %s9960_s30  ;;  %p9966_p11 = scmp.lt.s32.totalorder %s9960_s30, %s9960_s30 }
  0x90   :  { %p9967_p12 = por %p9966_p11, %p9965_p10 }
  0x92   :  { %p9968_p13 = pnand %p9967_p12, %p9961_p9 }
  0x94   :  { %9971 = shalt.err (!%p9968_p13)
}
  0x95   :  { %71 = dma.hbm_to_vmem [thread:$0]  %s11606_s8, 256, %s66_s5, [#allocation5], %s11605_s26, %s11605_s26, %s11604_s18  }
  0x96   :  { %s9972_s24 = scalar_lea.hbm %s11569_s10, 32 }
  0x97   :  { %p9973_p0 = scmp.ne.s32.totalorder %s11569_s10, %s9972_s24  ;;  %p9976_p1 = scmp.lt.u32.totalorder %s9972_s24, %s11569_s10 }
  0x99   :  { %p9978_p2 = pnand %p9976_p1, %p9973_p0 }
  0x9b   :  { %9981 = shalt.err (!%p9978_p2)
}
  0x9c   :  { %s9982_s29 = scalar_lea.vmem %s10352_s6, 32  ;;  %p9987_p4 = scmp.lt.s32.totalorder %s10352_s6, %s10352_s6 }
  0x9d   :  { %p9983_p3 = scmp.ne.s32.totalorder %s10352_s6, %s9982_s29  ;;  %p9988_p5 = scmp.lt.s32.totalorder %s9982_s29, %s9982_s29 }
  0x9f   :  { %p9989_p6 = por %p9988_p5, %p9987_p4 }
  0xa1   :  { %p9990_p7 = pnand %p9989_p6, %p9983_p3 }
  0xa3   :  { %9993 = shalt.err (!%p9990_p7)
}
  0xa4   :  { %105 = dma.hbm_to_vmem [thread:$0]  %s11569_s10, 32, %s10352_s6, [#allocation8], %s10100_s28, %s10100_s28, %s10101_s23  }
  0xa5   :  { %s10108_s22 = smov [#allocation12]   ;;  %s10109_s30 = smov [#allocation15]  }
  0xa6   :  { %s125_s27 = sshll.u32 %s10108_s22, 4  ;;  %s151_s25 = sshll.u32 %s10109_s30, 4  ;;  %s126_s27 = int_to_ptr.vmem [resolvable:$true] %s125_s27  ;;  %s10389_s25 = int_to_ptr.vmem [resolvable:$true] %s151_s25 }
  0xa7   :  { %s9994_s14 = scalar_lea.hbm %s11572_s13, 1024 }
  0xa8   :  { %p9995_p8 = scmp.ne.s32.totalorder %s11572_s13, %s9994_s14  ;;  %p9998_p9 = scmp.lt.u32.totalorder %s9994_s14, %s11572_s13 }
  0xaa   :  { %p10000_p10 = pnand %p9998_p9, %p9995_p8 }
  0xac   :  { %10003 = shalt.err (!%p10000_p10)
}
  0xad   :  { %s10004_s10 = scalar_lea.vmem %s126_s27, 1024  ;;  %p10009_p12 = scmp.lt.s32.totalorder %s126_s27, %s126_s27 }
  0xae   :  { %p10005_p11 = scmp.ne.s32.totalorder %s126_s27, %s10004_s10  ;;  %p10010_p13 = scmp.lt.s32.totalorder %s10004_s10, %s10004_s10 }
  0xb0   :  { %p10011_p0 = por %p10010_p13, %p10009_p12 }
  0xb2   :  { %p10012_p1 = pnand %p10011_p0, %p10005_p11 }
  0xb4   :  { %10015 = shalt.err (!%p10012_p1)
}
  0xb5   :  { %131 = dma.hbm_to_vmem [thread:$0]  %s11572_s13, 1024, %s126_s27, [#allocation11], %s11605_s26, %s11605_s26, %s11604_s18  }
  0xb6   :  { %s10016_s5 = scalar_lea.hbm %s11575_s16, 1024 }
  0xb7   :  { %p10017_p2 = scmp.ne.s32.totalorder %s11575_s16, %s10016_s5  ;;  %p10020_p3 = scmp.lt.u32.totalorder %s10016_s5, %s11575_s16 }
  0xb9   :  { %p10022_p4 = pnand %p10020_p3, %p10017_p2 }
  0xbb   :  { %10025 = shalt.err (!%p10022_p4)
}
  0xbc   :  { %s10026_s1 = scalar_lea.vmem %s10389_s25, 1024  ;;  %p10031_p6 = scmp.lt.s32.totalorder %s10389_s25, %s10389_s25 }
  0xbd   :  { %p10027_p5 = scmp.ne.s32.totalorder %s10389_s25, %s10026_s1  ;;  %p10032_p7 = scmp.lt.s32.totalorder %s10026_s1, %s10026_s1 }
  0xbf   :  { %p10033_p8 = por %p10032_p7, %p10031_p6 }
  0xc1   :  { %p10034_p9 = pnand %p10033_p8, %p10027_p5 }
  0xc3   :  { %10037 = shalt.err (!%p10034_p9)
}
  0xc4   :  { %157 = dma.hbm_to_vmem [thread:$0]  %s11575_s16, 1024, %s10389_s25, [#allocation14], %s11605_s26, %s11605_s26, %s11604_s18  }
  0xc5   :  { %s10110_s14 = smov [#allocation18]   ;;  %s10111_s12 = smov [#allocation19]  }
  0xc6   :  { %s176_s24 = sshll.u32 %s10110_s14, 4  ;;  %s188_s0 = sshll.u32 %s10111_s12, 4  ;;  %s177_s24 = int_to_ptr.vmem [resolvable:$true] %s176_s24  ;;  %s189_s0 = int_to_ptr.vmem [resolvable:$true] %s188_s0 }
  0xc7   :  { %s10038_s23 = scalar_lea.hbm %s11578_s19, 16 }
  0xc8   :  { %p10039_p10 = scmp.ne.s32.totalorder %s11578_s19, %s10038_s23  ;;  %p10042_p11 = scmp.lt.u32.totalorder %s10038_s23, %s11578_s19 }
  0xca   :  { %p10044_p12 = pnand %p10042_p11, %p10039_p10 }
  0xcc   :  { %10047 = shalt.err (!%p10044_p12)
}
  0xcd   :  { %s10048_s16 = scalar_lea.vmem %s177_s24, 16  ;;  %s10052_s26 = scalar_lea.vmem %s177_s24, 32 }
  0xce   :  { %p10049_p13 = scmp.ne.s32.totalorder %s177_s24, %s10048_s16  ;;  %p10053_p0 = scmp.lt.s32.totalorder %s177_s24, %s177_s24 }
  0xcf   :  { %p10054_p1 = scmp.lt.s32.totalorder %s10052_s26, %s10048_s16 }
  0xd1   :  { %p10055_p2 = por %p10054_p1, %p10053_p0 }
  0xd3   :  { %p10056_p3 = pnand %p10055_p2, %p10049_p13 }
  0xd5   :  { %10059 = shalt.err (!%p10056_p3)
}
  0xd6   :  { %179 = dma.hbm_to_vmem [thread:$0]  %s11578_s19, 16, %s177_s24, [#allocation17]  }
  0xd7   :  { %s10060_s4 = scalar_lea.hbm %s11580_s21, 16 }
  0xd8   :  { %p10061_p4 = scmp.ne.s32.totalorder %s11580_s21, %s10060_s4  ;;  %p10064_p5 = scmp.lt.u32.totalorder %s10060_s4, %s11580_s21 }
  0xda   :  { %p10066_p6 = pnand %p10064_p5, %p10061_p4 }
  0xdc   :  { %10069 = shalt.err (!%p10066_p6)
}
  0xdd   :  { %s10070_s12 = scalar_lea.vmem %s189_s0, 16  ;;  %s10074_s3 = scalar_lea.vmem %s189_s0, 32 }
  0xde   :  { %p10071_p7 = scmp.ne.s32.totalorder %s189_s0, %s10070_s12  ;;  %p10075_p8 = scmp.lt.s32.totalorder %s189_s0, %s189_s0 }
  0xdf   :  { %p10076_p9 = scmp.lt.s32.totalorder %s10074_s3, %s10070_s12 }
  0xe1   :  { %p10077_p10 = por %p10076_p9, %p10075_p8 }
  0xe3   :  { %p10078_p11 = pnand %p10077_p10, %p10071_p7 }
  0xe5   :  { %10081 = shalt.err (!%p10078_p11)
}
  0xe6   :  { %191 = dma.hbm_to_vmem [thread:$0]  %s11580_s21, 16, %s189_s0, [#allocation20]  }
  0xe7   :  { %10082 = dma.done.wait [#allocation3], 256  }
  0xe8   :  { %10083 = vsyncadd [#allocation3], 4294967040 }
  0xe9   :  { %10084 = dma.done.wait [#allocation5], 768  }
  0xea   :  { %10085 = vsyncadd [#allocation5], 4294966528 }
  0xeb   :  { %10086 = dma.done.wait [#allocation8], 64  }
  0xec   :  { %10087 = vsyncadd [#allocation8], 4294967232 }
  0xed   :  { %10088 = dma.done.wait [#allocation11], 1056  }
  0xee   :  { %10089 = vsyncadd [#allocation11], 4294966240 }
  0xef   :  { %10090 = dma.done.wait [#allocation14], 1056  }
  0xf0   :  { %10091 = vsyncadd [#allocation14], 4294966240 }
  0xf1   :  { %10092 = dma.done.wait [#allocation17], 32  }
  0xf2   :  { %10093 = vsyncadd [#allocation17], 4294967264 }
  0xf3   :  { %10094 = dma.done.wait [#allocation20], 16  }
  0xf4   :  { %10095 = vsyncadd [#allocation20], 4294967280  ;;  %vm256_vm0 = vcmask 261120   ;;  %s11607_s6 = sld [smem:[#allocation33_spill]]  ;;  %v10462_v5 = vld [vmem:[#allocation2] sm:$0xff]  ;;  %v10466_v7 = vld [vmem:[#allocation2 + $0x8] sm:$0xff] }
  0xf5   :  { %8545 = vmatprep.mubr.msk.f32.mxu1 %vm256_vm0, %v10462_v5  ;;  %v10112_v8 = vmov 0.0   ;;  %vm10113_vm1 = vmmov 0   ;;  %s11608_s8 = sld [smem:[#allocation34_spill]]  ;;  %s10114_s22 = smov 64   ;;  %vm346_vm2 = vcmask 64512   ;;  %vm1016_vm3 = vcmask 130048  }
  0xf6   :  { %8553 = vmatprep.subr.mxu0 %v10112_v8  ;;  %8555 = vmatprep.mubr.msk.f32.mxu0 %vm10113_vm1, %v10112_v8  ;;  %s10115_s30 = smov 96   ;;  %s10116_s4 = smov 88   ;;  %vm1018_vm4 = vcmask 195584   ;;  %vm10702_vm5 = vmpackc.low %vm346_vm2, %vm346_vm2  ;;  %vm3918_vm6 = vcmask 523264   ;;  %vm3933_vm7 = vcmask 785408   ;;  %vm8001_vm8 = vcmask 31744  }
  0xf7   :  { %s10117_s1 = smov 120   ;;  %s10118_s13 = smov 80  }
  0xf8   :  { %s10119_s27 = smov 112   ;;  %s10120_s14 = smov 104  }
  0xf9   :  { %s10121_s12 = smov 72   ;;  %s10122_s3 = smov 48  }
  0xfa   :  { %v245_v0 = vld [vmem:[%s11607_s6] sm:$0xff]  ;;  %v246_v1 = vld [vmem:[%s11607_s6 + $0x8] sm:$0xff]  ;;  %v247_v2 = vld [vmem:[%s11607_s6 + $0x10] sm:$0xff]  ;;  %s10123_s19 = smov 40   ;;  %s10124_s24 = smov 56  }
  0xfb   :  { %v9195_v3 = vpack.c.bf16 %v246_v1, %v245_v0  ;;  %v248_v4 = vld [vmem:[%s11607_s6 + $0x18] sm:$0xff]  ;;  %v8017_v9 = vld [vmem:[%s11608_s8] ss:$0 sm:$0xff]  ;;  %s10125_s26 = smov 24   ;;  %s10127_s29 = smov 32  }
  0xfc   :  { %v9199_v6 = vpack.c.bf16 %v248_v4, %v247_v2  ;;  %s11613_s10 = sld [smem:[#allocation35_spill]] }
  0xfd   :  { %9196 = vmatprep.subr.bf16.mxu1 %v9195_v3 }
  0xfe   :  { %9198 = vmatpush3.bf16.msra.mxu1 %v9195_v3 }
  0xff   :  { %9200 = vmatprep.subr.bf16.mxu1 %v9199_v6 }
 0x102   :  { %9202 = vmatpush3.bf16.msra.mxu1 %v9199_v6 }
 0x103   :  { %8548 = vmatprep.subr.mxu1 %v10112_v8 }
 0x105   :  { %8546 = vmatmul.mubr.msk.f32.vlgmr.msra.gmra.mrb[0].mxu1 %vm256_vm0, %v10466_v7 }
 0x106   :  { %8550 = vmatprep.mubr.msk.f32.mxu1 %vm10113_vm1, %v10112_v8 }
 0x1d8   :  { %v8547_v10 = vpop.f32.mrb[0].mxu1 }
 0x1d9   :  { %v10479_v11 = vadd.f32 %v8547_v10, %v8017_v9  ;;  %v329_v12 = vpop.f32.mrb[1].mxu1 }
 0x1da   :  { %v10481_v13 = vadd.f32 %v8017_v9, %v329_v12 }
 0x1dc   :  { %432 = vrot.lane.b32.xlu1 %v10481_v13, %s10114_s22  ;;  %344 = vrot.lane.b32.xlu0 %v10481_v13, %s10115_s30 }
 0x1e0   :  { %510 = vrot.lane.b32.xlu1 %v10481_v13, %s10116_s4 }
 0x1e4   :  { %508 = vrot.lane.b32.xlu1 %v10481_v13, %s10117_s1 }
 0x1e8   :  { %675 = vrot.lane.b32.xlu1 %v10481_v13, %s10118_s13 }
 0x1ec   :  { %673 = vrot.lane.b32.xlu1 %v10481_v13, %s10119_s27 }
 0x1f0   :  { %838 = vrot.lane.b32.xlu1 %v10481_v13, %s10120_s14 }
 0x24e   :  { %v433_v14 = vpop.permute.xlu1 %432  ;;  %v345_v15 = vpop.permute.xlu0 %344 }
 0x24f   :  { %8549 = vmatpush3.xpose.msk.msra.mxu1 %vm346_vm2, %v345_v15  ;;  %8554 = vmatpush3.msra.mxu0 %v433_v14 }
 0x250   :  { %8558 = vmatprep.subr.mxu0 %v10112_v8  ;;  %8563 = vmatprep.subr.mxu1 %v10112_v8 }
 0x252   :  { %8551 = vmatmul.mubr.msk.f32.vlgmr.msra.gmra.mrb[2].mxu1 %vm346_vm2, %v10481_v13  ;;  %v511_v24 = vpop.permute.xlu1 %510 }
 0x253   :  { %8565 = vmatprep.mubr.msk.f32.mxu1 %vm10113_vm1, %v10112_v8 }
 0x256   :  { %v509_v25 = vpop.permute.xlu1 %508 }
 0x25a   :  { %v676_v26 = vpop.permute.xlu1 %675 }
 0x25e   :  { %v674_v27 = vpop.permute.xlu1 %673 }
 0x262   :  { %v839_v28 = vpop.permute.xlu1 %838 }
 0x325   :  { %v417_v16 = vpop.f32.mrb[2].mxu1 }
 0x326   :  { %v8552_v17 = vpop.f32.mrb[3].mxu1  ;;  %v421_v18 = vsel %vm346_vm2, %v417_v16, -inf }
 0x327   :  { %422 = vmax.xlane.f32.xlu0 %v421_v18 }
 0x33d   :  { %840 = vrot.lane.b32.xlu0 %v10481_v13, %s10121_s12 }
 0x341   :  { %1349 = vrot.lane.b32.xlu0 %v10479_v11, %s10119_s27 }
 0x345   :  { %1514 = vrot.lane.b32.xlu0 %v10479_v11, %s10120_s14 }
 0x3b4   :  { %v423_v19 = vpop.xlane.xlu0 %422 }
 0x3b5   :  { %v424_v20 = vsub.f32 %v417_v16, %v423_v19 }
 0x3b7   :  { %v425_v21 = vmul.f32 1.442695, %v424_v20 }
 0x3b8   :  { %v841_v34 = vpop.permute.xlu0 %840 }
 0x3b9   :  { %9680 = vpow2.f32 %v425_v21 }
 0x3bc   :  { %v1350_v37 = vpop.permute.xlu0 %1349 }
 0x3c0   :  { %v1515_v39 = vpop.permute.xlu0 %1514 }
 0x3c3   :  { %v9681_v22 = vpop.eup %9680 }
 0x3c4   :  { %v427_v23 = vsel %vm346_vm2, %v9681_v22, 0.0 }
 0x3c5   :  { %428 = vadd.xlane.f32.xlu1 %v427_v23 }
 0x3d6   :  { %1021 = vrot.lane.b32.xlu1 %v10479_v11, %s10115_s30 }
 0x3da   :  { %1186 = vrot.lane.b32.xlu1 %v10479_v11, %s10116_s4 }
 0x3de   :  { %1184 = vrot.lane.b32.xlu1 %v10479_v11, %s10117_s1 }
 0x3e2   :  { %1351 = vrot.lane.b32.xlu1 %v10479_v11, %s10118_s13 }
 0x3e6   :  { %1516 = vrot.lane.b32.xlu1 %v10479_v11, %s10121_s12 }
 0x452   :  { %v429_v29 = vpop.xlane.xlu1 %428 }
 0x453   :  { %9682 = vrcp.f32 %v429_v29 }
 0x456   :  { %v1022_v32 = vpop.permute.xlu1 %1021 }
 0x45a   :  { %v1187_v33 = vpop.permute.xlu1 %1186 }
 0x45d   :  { %v9683_v30 = vpop.eup %9682 }
 0x45e   :  { %v431_v31 = vmul.f32 %v9683_v30, %v9681_v22  ;;  %v1185_v35 = vpop.permute.xlu1 %1184 }
 0x460   :  { %8556 = vmatmul.mubr.msk.f32.vlgmr.msra.gmra.mrb[0].mxu0 %vm346_vm2, %v431_v31 }
 0x461   :  { %8559 = vmatpush3.xpose.msk.msra.mxu0 %vm346_vm2, %v511_v24  ;;  %8560 = vmatprep.mubr.msk.f32.mxu0 %vm10113_vm1, %v10112_v8 }
 0x462   :  { %8568 = vmatprep.subr.mxu0 %v10112_v8  ;;  %v1352_v36 = vpop.permute.xlu1 %1351 }
 0x464   :  { %8561 = vmatmul.mubr.msk.f32.vlgmr.msra.gmra.mrb[2].mxu0 %vm346_vm2, %v509_v25 }
 0x465   :  { %8569 = vmatpush3.xpose.msk.msra.mxu0 %vm346_vm2, %v676_v26  ;;  %8570 = vmatprep.mubr.msk.f32.mxu0 %vm10113_vm1, %v10112_v8 }
 0x466   :  { %8578 = vmatprep.subr.mxu0 %v10112_v8  ;;  %v1517_v38 = vpop.permute.xlu1 %1516 }
 0x468   :  { %8571 = vmatmul.mubr.msk.f32.vlgmr.msra.gmra.mrb[4].mxu0 %vm346_vm2, %v674_v27 }
 0x469   :  { %8579 = vmatpush3.xpose.msk.msra.mxu0 %vm346_vm2, %v841_v34  ;;  %8580 = vmatprep.mubr.msk.f32.mxu0 %vm10113_vm1, %v10112_v8 }
 0x46a   :  { %8588 = vmatprep.subr.mxu0 %v10112_v8 }
 0x46c   :  { %8581 = vmatmul.mubr.msk.f32.vlgmr.msra.gmra.mrb[6].mxu0 %vm346_vm2, %v839_v28 }
 0x46d   :  { %8589 = vmatpush3.xpose.msk.msra.mxu0 %vm346_vm2, %v1022_v32  ;;  %8590 = vmatprep.mubr.msk.f32.mxu0 %vm10113_vm1, %v10112_v8 }
 0x46e   :  { %8598 = vmatprep.subr.mxu0 %v10112_v8 }
 0x470   :  { %8591 = vmatmul.mubr.msk.f32.vlgmr.msra.gmra.mrb[8].mxu0 %vm346_vm2, %v10479_v11 }
 0x471   :  { %8599 = vmatpush3.xpose.msk.msra.mxu0 %vm346_vm2, %v1187_v33  ;;  %8600 = vmatprep.mubr.msk.f32.mxu0 %vm10113_vm1, %v10112_v8 }
 0x472   :  { %8608 = vmatprep.subr.mxu0 %v10112_v8 }
 0x474   :  { %8601 = vmatmul.mubr.msk.f32.vlgmr.msra.gmra.mrb[10].mxu0 %vm346_vm2, %v1185_v35 }
 0x475   :  { %8609 = vmatpush3.xpose.msk.msra.mxu0 %vm346_vm2, %v1352_v36  ;;  %8610 = vmatprep.mubr.msk.f32.mxu0 %vm10113_vm1, %v10112_v8 }
 0x476   :  { %8618 = vmatprep.subr.mxu0 %v10112_v8 }
 0x478   :  { %8611 = vmatmul.mubr.msk.f32.vlgmr.msra.gmra.mrb[12].mxu0 %vm346_vm2, %v1350_v37 }
 0x479   :  { %8619 = vmatpush3.xpose.msk.msra.mxu0 %vm346_vm2, %v1517_v38  ;;  %8620 = vmatprep.mubr.msk.f32.mxu0 %vm10113_vm1, %v10112_v8 }
 0x47c   :  { %8621 = vmatmul.mubr.msk.f32.vlgmr.msra.gmra.mrb[14].mxu0 %vm346_vm2, %v1515_v39 }
 0x533   :  { %v10558_v40 = vpop.f32.mrb[0].mxu0 }
 0x534   :  { %v8557_v41 = vpop.f32.mrb[1].mxu0 }
 0x537   :  { %v582_v42 = vpop.f32.mrb[2].mxu0 }
 0x538   :  { %v8562_v43 = vpop.f32.mrb[3].mxu0  ;;  %v586_v44 = vsel %vm346_vm2, %v582_v42, -inf }
 0x539   :  { %587 = vmax.xlane.f32.xlu1 %v586_v44 }
 0x53b   :  { %v747_v45 = vpop.f32.mrb[4].mxu0 }
 0x53c   :  { %v8572_v46 = vpop.f32.mrb[5].mxu0  ;;  %v751_v47 = vsel %vm346_vm2, %v747_v45, -inf }
 0x53d   :  { %752 = vmax.xlane.f32.xlu0 %v751_v47 }
 0x53f   :  { %v912_v48 = vpop.f32.mrb[6].mxu0 }
 0x540   :  { %v8582_v49 = vpop.f32.mrb[7].mxu0  ;;  %v916_v50 = vsel %vm346_vm2, %v912_v48, -inf }
 0x541   :  { %917 = vmax.xlane.f32.xlu0 %v916_v50 }
 0x543   :  { %v1093_v51 = vpop.f32.mrb[8].mxu0 }
 0x544   :  { %v8592_v52 = vpop.f32.mrb[9].mxu0  ;;  %v1097_v53 = vsel %vm346_vm2, %v1093_v51, -inf }
 0x545   :  { %1098 = vmax.xlane.f32.xlu1 %v1097_v53 }
 0x547   :  { %v1258_v54 = vpop.f32.mrb[10].mxu0 }
 0x548   :  { %v8602_v55 = vpop.f32.mrb[11].mxu0  ;;  %v1262_v56 = vsel %vm346_vm2, %v1258_v54, -inf }
 0x549   :  { %1263 = vmax.xlane.f32.xlu0 %v1262_v56 }
 0x54b   :  { %v1423_v57 = vpop.f32.mrb[12].mxu0 }
 0x54c   :  { %v8612_v58 = vpop.f32.mrb[13].mxu0  ;;  %v1427_v59 = vsel %vm346_vm2, %v1423_v57, -inf }
 0x54d   :  { %1428 = vmax.xlane.f32.xlu1 %v1427_v59 }
 0x54f   :  { %v1588_v60 = vpop.f32.mrb[14].mxu0 }
 0x550   :  { %v8622_v61 = vpop.f32.mrb[15].mxu0  ;;  %v1592_v62 = vsel %vm346_vm2, %v1588_v60, -inf }
 0x551   :  { %1593 = vmax.xlane.f32.xlu0 %v1592_v62 }
 0x55e   :  { %762 = vrot.lane.b32.xlu1 %v10481_v13, %s10122_s3 }
 0x562   :  { %927 = vrot.lane.b32.xlu1 %v10481_v13, %s10123_s19 }
 0x567   :  { %597 = vrot.lane.b32.xlu0 %v10481_v13, %s10124_s24 }
 0x5c6   :  { %v588_v63 = vpop.xlane.xlu1 %587 }
 0x5c7   :  { %v589_v0 = vsub.f32 %v582_v42, %v588_v63 }
 0x5c9   :  { %v590_v1 = vmul.f32 1.442695, %v589_v0 }
 0x5ca   :  { %v753_v2 = vpop.xlane.xlu0 %752 }
 0x5cb   :  { %9684 = vpow2.f32 %v590_v1  ;;  %v754_v3 = vsub.f32 %v747_v45, %v753_v2 }
 0x5cd   :  { %v755_v4 = vmul.f32 1.442695, %v754_v3 }
 0x5ce   :  { %v918_v9 = vpop.xlane.xlu0 %917 }
 0x5cf   :  { %9686 = vpow2.f32 %v755_v4  ;;  %v919_v17 = vsub.f32 %v912_v48, %v918_v9  ;;  %v338_v9 = vld [vmem:[%s11566_s7] sm:$0xff] }
 0x5d1   :  { %v920_v20 = vmul.f32 1.442695, %v919_v17 }
 0x5d2   :  { %v1099_v18 = vpop.xlane.xlu1 %1098 }
 0x5d3   :  { %v1100_v19 = vsub.f32 %v1093_v51, %v1099_v18  ;;  %9688 = vpow2.f32 %v920_v20 }
 0x5d5   :  { %v9685_v6 = vpop.eup %9684  ;;  %v1101_v23 = vmul.f32 1.442695, %v1100_v19 }
 0x5d6   :  { %v592_v10 = vsel %vm346_vm2, %v9685_v6, 0.0  ;;  %v1264_v14 = vpop.xlane.xlu0 %1263 }
 0x5d7   :  { %593 = vadd.xlane.f32.xlu1 %v592_v10  ;;  %v1265_v21 = vsub.f32 %v1258_v54, %v1264_v14  ;;  %9690 = vpow2.f32 %v1101_v23  ;;  %v339_v10 = vld [vmem:[%s11566_s7 + $0x8] sm:$0xff] }
 0x5d9   :  { %v9687_v12 = vpop.eup %9686  ;;  %v1266_v25 = vmul.f32 1.442695, %v1265_v21 }
 0x5da   :  { %v757_v15 = vsel %vm346_vm2, %v9687_v12, 0.0  ;;  %v1429_v22 = vpop.xlane.xlu1 %1428 }
 0x5db   :  { %758 = vadd.xlane.f32.xlu0 %v757_v15  ;;  %v1430_v24 = vsub.f32 %v1423_v57, %v1429_v22  ;;  %9692 = vpow2.f32 %v1266_v25  ;;  %v340_v15 = vld [vmem:[%s11566_s7 + $0x10] sm:$0xff] }
 0x5dd   :  { %v1431_v27 = vmul.f32 1.442695, %v1430_v24  ;;  %v9689_v29 = vpop.eup %9688 }
 0x5de   :  { %v1594_v16 = vpop.xlane.xlu0 %1593  ;;  %v922_v31 = vsel %vm346_vm2, %v9689_v29, 0.0  ;;  %v763_v39 = vpop.permute.xlu1 %762 }
 0x5df   :  { %v1595_v26 = vsub.f32 %v1588_v60, %v1594_v16  ;;  %9694 = vpow2.f32 %v1431_v27  ;;  %v341_v16 = vld [vmem:[%s11566_s7 + $0x18] sm:$0xff] }
 0x5e0   :  { %v9207_v17 = vpack.c.bf16 %v341_v16, %v340_v15  ;;  %v8049_v16 = vld [vmem:[#allocation9] ss:$0 sm:$0xff] }
 0x5e1   :  { %v1596_v28 = vmul.f32 1.442695, %v1595_v26  ;;  %v9691_v30 = vpop.eup %9690 }
 0x5e2   :  { %v598_v13 = vpop.permute.xlu0 %597  ;;  %v1103_v34 = vsel %vm346_vm2, %v9691_v30, 0.0  ;;  %v928_v41 = vpop.permute.xlu1 %927 }
 0x5e3   :  { %8564 = vmatpush3.msra.mxu1 %v598_v13  ;;  %9696 = vpow2.f32 %v1596_v28 }
 0x5e4   :  { %8573 = vmatprep.subr.mxu1 %v10112_v8 }
 0x5e5   :  { %v9693_v32 = vpop.eup %9692 }
 0x5e6   :  { %v1268_v35 = vsel %vm346_vm2, %v9693_v32, 0.0 }
 0x5e8   :  { %1273 = vrot.lane.b32.xlu1 %v10479_v11, %s10124_s24 }
 0x5e9   :  { %v9695_v33 = vpop.eup %9694 }
 0x5ea   :  { %v1433_v37 = vsel %vm346_vm2, %v9695_v33, 0.0 }
 0x5ed   :  { %v10583_v36 = vpop.eup %9696 }
 0x5ee   :  { %v1598_v38 = vsel %vm346_vm2, %v10583_v36, 0.0 }
 0x5f1   :  { %1108 = vrot.lane.b32.xlu0 %v10479_v11, %s10114_s22 }
 0x60c   :  { %923 = vadd.xlane.f32.xlu1 %v922_v31 }
 0x610   :  { %1104 = vadd.xlane.f32.xlu0 %v1103_v34  ;;  %1269 = vadd.xlane.f32.xlu1 %v1268_v35 }
 0x614   :  { %1434 = vadd.xlane.f32.xlu0 %v1433_v37  ;;  %1599 = vadd.xlane.f32.xlu1 %v1598_v38  ;;  %v10644_v38 = vld [vmem:[#allocation6] sm:$0xff] }
 0x625   :  { %1603 = vrot.lane.b32.xlu1 %v10479_v11, %s10123_s19 }
 0x62a   :  { %1438 = vrot.lane.b32.xlu0 %v10479_v11, %s10122_s3 }
 0x664   :  { %v594_v42 = vpop.xlane.xlu1 %593 }
 0x665   :  { %9698 = vrcp.f32 %v594_v42 }
 0x668   :  { %v759_v43 = vpop.xlane.xlu0 %758  ;;  %v1274_v11 = vpop.permute.xlu1 %1273 }
 0x669   :  { %9700 = vrcp.f32 %v759_v43  ;;  %v1963_v43 = vld [vmem:[%s11570_s11 + $0x18] sm:$0xff] }
 0x66c   :  { %v1109_v48 = vpop.permute.xlu0 %1108 }
 0x66f   :  { %v9699_v44 = vpop.eup %9698 }
 0x670   :  { %v596_v45 = vmul.f32 %v9699_v44, %v9685_v6  ;;  %v239_v44 = vld [vmem:[#allocation4] sm:$0xff] }
 0x672   :  { %8566 = vmatmul.mubr.msk.f32.vlgmr.msra.gmra.mrb[4].mxu1 %vm346_vm2, %v596_v45 }
 0x673   :  { %v9701_v46 = vpop.eup %9700  ;;  %8574 = vmatpush3.msra.mxu1 %v763_v39  ;;  %8575 = vmatprep.mubr.msk.f32.mxu1 %vm10113_vm1, %v10112_v8  ;;  %v1961_v39 = vld [vmem:[%s11570_s11 + $0x8] sm:$0xff] }
 0x674   :  { %8583 = vmatprep.subr.mxu1 %v10112_v8  ;;  %v761_v47 = vmul.f32 %v9701_v46, %v9687_v12  ;;  %v9203_v12 = vpack.c.bf16 %v339_v10, %v338_v9  ;;  %v240_v46 = vld [vmem:[#allocation4 + $0x8] sm:$0xff] }
 0x676   :  { %8576 = vmatmul.mubr.msk.f32.vlgmr.msra.gmra.mrb[6].mxu1 %vm346_vm2, %v761_v47  ;;  %9204 = vmatprep.subr.bf16.mxu0 %v9203_v12  ;;  %v8046_v47 = vld [vmem:[#allocation7] ss:$0 sm:$0xff] }
 0x677   :  { %8584 = vmatpush3.msra.mxu1 %v928_v41  ;;  %8585 = vmatprep.mubr.msk.f32.mxu1 %vm10113_vm1, %v10112_v8  ;;  %v1962_v41 = vld [vmem:[%s11570_s11 + $0x10] sm:$0xff] }
 0x678   :  { %8593 = vmatprep.subr.mxu1 %v10112_v8  ;;  %9206 = vmatpush3.bf16.msra.mxu0 %v9203_v12  ;;  %v9227_v45 = vpack.c.bf16 %v1963_v43, %v1962_v41 }
 0x679   :  { %9208 = vmatprep.subr.bf16.mxu0 %v9207_v17 }
 0x67c   :  { %9210 = vmatpush3.bf16.msra.mxu0 %v9207_v17 }
 0x699   :  { %v924_v49 = vpop.xlane.xlu1 %923 }
 0x69a   :  { %9702 = vrcp.f32 %v924_v49 }
 0x69d   :  { %v1105_v50 = vpop.xlane.xlu0 %1104  ;;  %v1270_v51 = vpop.xlane.xlu1 %1269 }
 0x69e   :  { %9704 = vrcp.f32 %v1105_v50 }
 0x69f   :  { %9706 = vrcp.f32 %v1270_v51 }
 0x6a1   :  { %v1435_v52 = vpop.xlane.xlu0 %1434  ;;  %v1600_v55 = vpop.xlane.xlu1 %1599 }
 0x6a2   :  { %9708 = vrcp.f32 %v1435_v52  ;;  %v1868_v52 = vld [vmem:[%s11568_s9] sm:$0xff] }
 0x6a3   :  { %9710 = vrcp.f32 %v1600_v55 }
 0x6a4   :  { %v9703_v53 = vpop.eup %9702 }
 0x6a5   :  { %v926_v54 = vmul.f32 %v9703_v53, %v9689_v29  ;;  %v1439_v61 = vpop.permute.xlu0 %1438  ;;  %v1604_v0 = vpop.permute.xlu1 %1603  ;;  %v1869_v53 = vld [vmem:[%s11568_s9 + $0x8] sm:$0xff] }
 0x6a7   :  { %8586 = vmatmul.mubr.msk.f32.vlgmr.msra.gmra.mrb[8].mxu1 %vm346_vm2, %v926_v54 }
 0x6a8   :  { %8594 = vmatpush3.msra.mxu1 %v1109_v48  ;;  %8595 = vmatprep.mubr.msk.f32.mxu1 %vm10113_vm1, %v10112_v8  ;;  %v9705_v56 = vpop.eup %9704 }
 0x6a9   :  { %8603 = vmatprep.subr.mxu1 %v10112_v8  ;;  %v1107_v57 = vmul.f32 %v9705_v56, %v9691_v30  ;;  %v9707_v58 = vpop.eup %9706  ;;  %v9215_v56 = vpack.c.bf16 %v1869_v53, %v1868_v52 }
 0x6aa   :  { %v1272_v59 = vmul.f32 %v9707_v58, %v9693_v32 }
 0x6ab   :  { %8596 = vmatmul.mubr.msk.f32.vlgmr.msra.gmra.mrb[10].mxu1 %vm346_vm2, %v1107_v57  ;;  %v10670_v57 = vld [vmem:[#allocation6 + $0x8] sm:$0xff] }
 0x6ac   :  { %8604 = vmatpush3.msra.mxu1 %v1274_v11  ;;  %8605 = vmatprep.mubr.msk.f32.mxu1 %vm10113_vm1, %v10112_v8  ;;  %v9709_v60 = vpop.eup %9708 }
 0x6ad   :  { %8613 = vmatprep.subr.mxu1 %v10112_v8  ;;  %v1437_v62 = vmul.f32 %v9709_v60, %v9695_v33  ;;  %v9711_v63 = vpop.eup %9710  ;;  %v10682_v60 = vld [vmem:[#allocation10] ss:$0 sm:$0xff] }
 0x6ae   :  { %v1602_v1 = vmul.f32 %v9711_v63, %v10583_v36 }
 0x6af   :  { %8606 = vmatmul.mubr.msk.f32.vlgmr.msra.gmra.mrb[12].mxu1 %vm346_vm2, %v1272_v59  ;;  %v10126_v59 = vmov 0.0|0.0  }
 0x6b0   :  { %8614 = vmatpush3.msra.mxu1 %v1439_v61  ;;  %8615 = vmatprep.mubr.msk.f32.mxu1 %vm10113_vm1, %v10112_v8 }
 0x6b1   :  { %8623 = vmatprep.subr.mxu1 %v10112_v8 }
 0x6b3   :  { %8616 = vmatmul.mubr.msk.f32.vlgmr.msra.gmra.mrb[14].mxu1 %vm346_vm2, %v1437_v62 }
 0x6b4   :  { %8624 = vmatpush3.msra.mxu1 %v1604_v0  ;;  %8625 = vmatprep.mubr.msk.f32.mxu1 %vm10113_vm1, %v10112_v8 }
 0x6b7   :  { %8626 = vmatmul.mubr.msk.f32.vlgmr.msra.gmra.mrb[16].mxu1 %vm346_vm2, %v1602_v1 }
 0x6b8   :  { %8643 = vmatprep.mubr.msk.f32.mxu1 %vm1016_vm3, %v10644_v38 }
 0x745   :  { %v669_v2 = vpop.f32.mrb[4].mxu1 }
 0x746   :  { %1004 = vrot.lane.b32.xlu0 %v669_v2, %s11604_s18  ;;  %v8567_v3 = vpop.f32.mrb[5].mxu1 }
 0x749   :  { %v834_v4 = vpop.f32.mrb[6].mxu1 }
 0x74a   :  { %1008 = vrot.lane.b32.xlu1 %v834_v4, %s10100_s28  ;;  %v8577_v6 = vpop.f32.mrb[7].mxu1 }
 0x77a   :  { %v999_v14 = vpop.f32.mrb[8].mxu1 }
 0x77b   :  { %1012 = vrot.lane.b32.xlu1 %v999_v14, %s10125_s26  ;;  %v8587_v13 = vpop.f32.mrb[9].mxu1 }
 0x77e   :  { %v1180_v18 = vpop.f32.mrb[10].mxu1 }
 0x77f   :  { %v8597_v19 = vpop.f32.mrb[11].mxu1 }
 0x782   :  { %v1345_v20 = vpop.f32.mrb[12].mxu1 }
 0x783   :  { %1680 = vrot.lane.b32.xlu0 %v1345_v20, %s11604_s18  ;;  %v8607_v21 = vpop.f32.mrb[13].mxu1 }
 0x786   :  { %v1510_v22 = vpop.f32.mrb[14].mxu1 }
 0x787   :  { %1684 = vrot.lane.b32.xlu0 %v1510_v22, %s10100_s28  ;;  %v8617_v23 = vpop.f32.mrb[15].mxu1 }
 0x78a   :  { %v1675_v24 = vpop.f32.mrb[16].mxu1 }
 0x78b   :  { %1688 = vrot.lane.b32.xlu1 %v1675_v24, %s10125_s26  ;;  %v8627_v25 = vpop.f32.mrb[17].mxu1 }
 0x7b8   :  { %v1005_v26 = vpop.permute.xlu0 %1004 }
 0x7b9   :  { %v1015_v28 = vsel %vm346_vm2, %v10558_v40, %v1005_v26  ;;  %v1960_v40 = vld [vmem:[%s11570_s11] sm:$0xff] }
 0x7ba   :  { %v9223_v42 = vpack.c.bf16 %v1961_v39, %v1960_v40 }
 0x7bc   :  { %v1009_v27 = vpop.permute.xlu1 %1008  ;;  %9224 = vmatprep.subr.bf16.mxu0 %v9223_v42 }
 0x7bd   :  { %v1017_v29 = vsel %vm1016_vm3, %v1015_v28, %v1009_v27 }
 0x7ed   :  { %v1013_v30 = vpop.permute.xlu1 %1012 }
 0x7ee   :  { %v1019_v31 = vsel %vm1018_vm4, %v1017_v29, %v1013_v30 }
 0x7ef   :  { %8636 = vmatprep.mubr.msk.f32.mxu0 %vm256_vm0, %v1019_v31 }
 0x7f5   :  { %v1681_v32 = vpop.permute.xlu0 %1680 }
 0x7f6   :  { %v1691_v34 = vsel %vm346_vm2, %v1180_v18, %v1681_v32 }
 0x7f9   :  { %v1685_v33 = vpop.permute.xlu0 %1684 }
 0x7fa   :  { %v1692_v35 = vsel %vm1016_vm3, %v1691_v34, %v1685_v33  ;;  %v241_v33 = vld [vmem:[#allocation4 + $0x10] sm:$0xff]  ;;  %v242_v34 = vld [vmem:[#allocation4 + $0x18] sm:$0xff] }
 0x7fd   :  { %v1689_v36 = vpop.permute.xlu1 %1688 }
 0x7fe   :  { %v1693_v37 = vsel %vm1018_vm4, %v1692_v35, %v1689_v36 }
 0x7ff   :  { %8637 = vmatmul.mubr.msk.f32.vlgmr.msra.gmra.mrb[16].mxu0 %vm256_vm0, %v1693_v37 }
 0x800   :  { %8665 = vmatprep.mubr.msk.f32.mxu0 %vm256_vm0, %v239_v44  ;;  %9226 = vmatpush3.bf16.msra.mxu0 %v9223_v42 }
 0x801   :  { %9228 = vmatprep.subr.bf16.mxu0 %v9227_v45 }
 0x804   :  { %9230 = vmatpush3.bf16.msra.mxu0 %v9227_v45 }
 0x805   :  { %9235 = vmatprep.subr.bf16.mxu0 %v10126_v59 }
 0x807   :  { %8666 = vmatmul.mubr.msk.f32.vlgmr.msra.gmra.mrb[18].mxu0 %vm256_vm0, %v240_v46 }
 0x808   :  { %8668 = vmatprep.mubr.msk.f32.mxu0 %vm256_vm0, %v241_v33 }
 0x80b   :  { %8669 = vmatmul.mubr.msk.f32.gmra.mrb[20].mxu0 %vm256_vm0, %v242_v34 }
 0x80c   :  { %8682 = vmatprep.mubr.msk.f32.mxu0 %vm10113_vm1, %v10112_v8 }
 0x8d2   :  { %v8638_v11 = vpop.f32.mrb[16].mxu0 }
 0x8d3   :  { %v1776_v48 = vadd.f32 %v8638_v11, %v10466_v7  ;;  %v1766_v49 = vpop.f32.mrb[17].mxu0  ;;  %v1871_v7 = vld [vmem:[%s11568_s9 + $0x18] sm:$0xff] }
 0x8d4   :  { %v1775_v50 = vadd.f32 %v1766_v49, %v10462_v5  ;;  %v1870_v5 = vld [vmem:[%s11568_s9 + $0x10] sm:$0xff] }
 0x8d5   :  { %v1784_v51 = vadd.f32 %v8046_v47, %v1776_v48  ;;  %v9219_v58 = vpack.c.bf16 %v1871_v7, %v1870_v5 }
 0x8d6   :  { %v1783_v54 = vadd.f32 %v8046_v47, %v1775_v50 }
 0x8d8   :  { %v9211_v55 = vpack.c.bf16 %v1784_v51, %v1783_v54 }
 0x8da   :  { %9212 = vmatprep.subr.bf16.mxu1 %v9211_v55  ;;  %v8667_v61 = vpop.f32.mrb[18].mxu0 }
 0x8db   :  { %9214 = vmatpush3.bf16.msra.mxu1 %v9211_v55  ;;  %v2055_v62 = vadd.f32 %v8667_v61, %v10682_v60  ;;  %v2049_v63 = vpop.f32.mrb[19].mxu0 }
 0x8dc   :  { %9216 = vmatprep.subr.bf16.mxu1 %v9215_v56  ;;  %v2050_v0 = vadd.f32 %v10682_v60, %v2049_v63 }
 0x8de   :  { %8644 = vmatmul.mubr.msk.f32.vlgmr.msra.gmra.mrb[18].mxu1 %vm1016_vm3, %v10670_v57  ;;  %v10686_v1 = vpack.i.bf16 %v2055_v62, %v2050_v0  ;;  %v9232_v6 = vpack.c.bf16 %v2055_v62, %v2050_v0  ;;  %v8670_v11 = vpop.f32.mrb[20].mxu0 }
 0x8df   :  { %9218 = vmatpush3.bf16.msra.mxu1 %v9215_v56  ;;  %v2059_v48 = vpop.f32.mrb[21].mxu0  ;;  %v10762_v62 = vadd.f32 %v8670_v11, %v10682_v60 }
 0x8e0   :  { %9220 = vmatprep.subr.bf16.mxu1 %v9219_v58  ;;  %9541 = vrot.lane.b32.xlu0 %v10686_v1, %s10117_s1  ;;  %v10765_v63 = vadd.f32 %v10682_v60, %v2059_v48 }
 0x8e2   :  { %v10769_v0 = vpack.i.bf16 %v10762_v62, %v10765_v63 }
 0x8e3   :  { %9222 = vmatpush3.bf16.msra.mxu1 %v9219_v58 }
 0x8e4   :  { %9231 = vmatprep.subr.bf16.mxu1 %v10126_v59 }
 0x952   :  { %v9542_v12 = vpop.permute.xlu0 %9541 }
 0x953   :  { %v9544_v14 = vunpack.i.h.bf16 %v9542_v12  ;;  %v9543_v15 = vunpack.i.l.bf16 %v9542_v12 }
 0x955   :  { %v9239_v19 = vpack.c.bf16 %v9544_v14, %v9543_v15 }
 0x9b1   :  { %v10690_v2 = vpop.f32.mrb[18].mxu1 }
 0x9b2   :  { %v10692_v3 = vpop.f32.mrb[19].mxu1  ;;  %v10698_v9 = vsub.f32 %v1784_v51, %v10690_v2 }
 0x9b3   :  { %v10695_v4 = vsub.f32 %v1783_v54, %v10692_v3 }
 0x9b5   :  { %8654 = vmatprep.mubr.msk.f32.mxu1 %vm256_vm0, %v10695_v4 }
 0x9b6   :  { %8655 = vmatmul.mubr.msk.f32.vlgmr.msra.gmra.mrb[20].mxu1 %vm256_vm0, %v10698_v9 }
 0x9b7   :  { %9234 = vmatpush3.bf16.xpose.msk.msra.mxu1 %vm10702_vm5, %v9232_v6  ;;  %8675 = vmatprep.mubr.msk.f32.mxu1 %vm10113_vm1, %v10112_v8  ;;  %v9260_v6 = vpack.c.bf16 %v10762_v62, %v10765_v63 }
 0x9b8   :  { %9238 = vmatprep.subr.bf16.mxu1 %v10126_v59 }
 0xa89   :  { %v8656_v13 = vpop.f32.mrb[20].mxu1 }
 0xa8a   :  { %v10715_v17 = vadd.f32 %v8656_v13, %v8049_v16  ;;  %v1951_v18 = vpop.f32.mrb[21].mxu1 }
 0xa8b   :  { %v10717_v20 = vadd.f32 %v8049_v16, %v1951_v18 }
 0xa8d   :  { %2242 = vrot.lane.b32.xlu1 %v10717_v20, %s10117_s1  ;;  %8676 = vmatmul.mubr.msk.f32.vlgmr.msra.gmra.mrb[22].mxu1 %vm346_vm2, %v10717_v20 }
 0xa8e   :  { %9241 = vmatpush3.bf16.xpose.msk.msra.mxu1 %vm10702_vm5, %v9239_v19  ;;  %8689 = vmatprep.mubr.msk.f32.mxu1 %vm10113_vm1, %v10112_v8 }
 0xa8f   :  { %9249 = vmatprep.subr.bf16.mxu1 %v10126_v59 }
 0xaff   :  { %v2243_v21 = vpop.permute.xlu1 %2242 }
 0xb00   :  { %8690 = vmatmul.mubr.msk.f32.vlgmr.msra.gmra.mrb[24].mxu1 %vm346_vm2, %v2243_v21 }
 0xb01   :  { %8710 = vmatprep.mubr.msk.f32.mxu1 %vm10113_vm1, %v10112_v8 }
 0xb60   :  { %v2148_v22 = vpop.f32.mrb[22].mxu1 }
 0xb61   :  { %v8677_v23 = vpop.f32.mrb[23].mxu1  ;;  %v2152_v24 = vsel %vm1016_vm3, %v2148_v22, -inf }
 0xb62   :  { %2153 = vmax.xlane.f32.xlu0 %v2152_v24 }
 0xbd3   :  { %v2320_v25 = vpop.f32.mrb[24].mxu1 }
 0xbd4   :  { %v8691_v26 = vpop.f32.mrb[25].mxu1  ;;  %v2324_v27 = vsel %vm1016_vm3, %v2320_v25, -inf }
 0xbd5   :  { %2325 = vmax.xlane.f32.xlu1 %v2324_v27 }
 0xbe6   :  { %9546 = vrot.lane.b32.xlu1 %v10686_v1, %s10115_s30 }
 0xbea   :  { %9556 = vrot.lane.b32.xlu1 %v10686_v1, %s10119_s27 }
 0xbee   :  { %2414 = vrot.lane.b32.xlu1 %v10717_v20, %s10119_s27 }
 0xbef   :  { %v2154_v28 = vpop.xlane.xlu0 %2153 }
 0xbf0   :  { %v2155_v29 = vsub.f32 %v2148_v22, %v2154_v28 }
 0xbf2   :  { %v2156_v30 = vmul.f32 1.442695, %v2155_v29 }
 0xbf4   :  { %9712 = vpow2.f32 %v2156_v30 }
 0xbfe   :  { %v9713_v31 = vpop.eup %9712 }
 0xbff   :  { %v2158_v32 = vsel %vm1016_vm3, %v9713_v31, 0.0 }
 0xc00   :  { %2159 = vadd.xlane.f32.xlu0 %v2158_v32 }
 0xc62   :  { %v2326_v35 = vpop.xlane.xlu1 %2325 }
 0xc63   :  { %v2327_v36 = vsub.f32 %v2320_v25, %v2326_v35 }
 0xc65   :  { %v2328_v37 = vmul.f32 1.442695, %v2327_v36 }
 0xc66   :  { %v9547_v40 = vpop.permute.xlu1 %9546 }
 0xc67   :  { %9714 = vpow2.f32 %v2328_v37  ;;  %v9549_v39 = vunpack.i.h.bf16 %v9547_v40  ;;  %v9548_v41 = vunpack.i.l.bf16 %v9547_v40 }
 0xc69   :  { %v9236_v42 = vpack.c.bf16 %v9549_v39, %v9548_v41 }
 0xc6a   :  { %v9557_v54 = vpop.permute.xlu1 %9556 }
 0xc6b   :  { %9237 = vmatpush3.bf16.msra.mxu0 %v9236_v42  ;;  %v9559_v56 = vunpack.i.h.bf16 %v9557_v54  ;;  %v9558_v5 = vunpack.i.l.bf16 %v9557_v54 }
 0xc6c   :  { %9242 = vmatprep.subr.bf16.mxu0 %v10126_v59 }
 0xc6d   :  { %v9246_v58 = vpack.c.bf16 %v9559_v56, %v9558_v5 }
 0xc6e   :  { %v2415_v61 = vpop.permute.xlu1 %2414 }
 0xc71   :  { %v9715_v43 = vpop.eup %9714 }
 0xc72   :  { %v2330_v44 = vsel %vm1016_vm3, %v9715_v43, 0.0 }
 0xc73   :  { %2331 = vadd.xlane.f32.xlu0 %v2330_v44 }
 0xc89   :  { %9551 = vrot.lane.b32.xlu0 %v10686_v1, %s10116_s4 }
 0xc8d   :  { %v2160_v45 = vpop.xlane.xlu0 %2159 }
 0xc8e   :  { %9716 = vrcp.f32 %v2160_v45 }
 0xc98   :  { %v9717_v46 = vpop.eup %9716 }
 0xc99   :  { %v2162_v47 = vmul.f32 %v9717_v46, %v9713_v31 }
 0xc9b   :  { %8683 = vmatmul.mubr.msk.f32.vlgmr.msra.gmra.mrb[22].mxu0 %vm1016_vm3, %v2162_v47 }
 0xc9c   :  { %8696 = vmatprep.mubr.msk.f32.mxu0 %vm10113_vm1, %v10112_v8 }
 0xd00   :  { %v2332_v49 = vpop.xlane.xlu0 %2331 }
 0xd01   :  { %9718 = vrcp.f32 %v2332_v49 }
 0xd04   :  { %v9552_v50 = vpop.permute.xlu0 %9551 }
 0xd05   :  { %v9554_v51 = vunpack.i.h.bf16 %v9552_v50  ;;  %v9553_v52 = vunpack.i.l.bf16 %v9552_v50 }
 0xd07   :  { %v9243_v53 = vpack.c.bf16 %v9554_v51, %v9553_v52 }
 0xd09   :  { %9244 = vmatpush3.bf16.msra.mxu0 %v9243_v53 }
 0xd0a   :  { %9245 = vmatprep.subr.bf16.mxu0 %v10126_v59 }
 0xd0b   :  { %v9719_v55 = vpop.eup %9718 }
 0xd0c   :  { %v2334_v7 = vmul.f32 %v9719_v55, %v9715_v43 }
 0xd0e   :  { %8697 = vmatmul.mubr.msk.f32.vlgmr.msra.gmra.mrb[24].mxu0 %vm1016_vm3, %v2334_v7 }
 0xd0f   :  { %8703 = vmatprep.mubr.msk.f32.mxu0 %vm10113_vm1, %v10112_v8 }
 0xd12   :  { %9248 = vmatpush3.bf16.xpose.msk.msra.mxu0 %vm10702_vm5, %v9246_v58 }
 0xd13   :  { %9256 = vmatprep.subr.bf16.mxu0 %v10126_v59 }
 0xd19   :  { %8704 = vmatmul.mubr.msk.f32.vlgmr.msra.gmra.mrb[26].mxu0 %vm346_vm2, %v2415_v61 }
 0xd1a   :  { %8724 = vmatprep.mubr.msk.f32.mxu0 %vm10113_vm1, %v10112_v8 }
 0xd6e   :  { %v10773_v12 = vpop.f32.mrb[22].mxu0 }
 0xd6f   :  { %v8684_v14 = vpop.f32.mrb[23].mxu0 }
 0xde1   :  { %v10775_v15 = vpop.f32.mrb[24].mxu0 }
 0xde2   :  { %v8698_v16 = vpop.f32.mrb[25].mxu0 }
 0xdec   :  { %v2492_v13 = vpop.f32.mrb[26].mxu0 }
 0xded   :  { %v8705_v18 = vpop.f32.mrb[27].mxu0  ;;  %v2496_v19 = vsel %vm1016_vm3, %v2492_v13, -inf }
 0xdee   :  { %2497 = vmax.xlane.f32.xlu0 %v2496_v19 }
 0xe04   :  { %9561 = vrot.lane.b32.xlu0 %v10686_v1, %s10118_s13 }
 0xe08   :  { %2586 = vrot.lane.b32.xlu0 %v10717_v20, %s10120_s14 }
 0xe7b   :  { %v2498_v60 = vpop.xlane.xlu0 %2497 }
 0xe7c   :  { %v2499_v21 = vsub.f32 %v2492_v13, %v2498_v60 }
 0xe7e   :  { %v2500_v22 = vmul.f32 1.442695, %v2499_v21 }
 0xe7f   :  { %v9562_v23 = vpop.permute.xlu0 %9561 }
 0xe80   :  { %9720 = vpow2.f32 %v2500_v22  ;;  %v9564_v24 = vunpack.i.h.bf16 %v9562_v23  ;;  %v9563_v25 = vunpack.i.l.bf16 %v9562_v23 }
 0xe82   :  { %v9250_v26 = vpack.c.bf16 %v9564_v24, %v9563_v25 }
 0xe83   :  { %v2587_v35 = vpop.permute.xlu0 %2586 }
 0xe84   :  { %9251 = vmatpush3.bf16.msra.mxu1 %v9250_v26 }
 0xe85   :  { %9252 = vmatprep.subr.bf16.mxu1 %v10126_v59 }
 0xe8a   :  { %v9721_v27 = vpop.eup %9720 }
 0xe8b   :  { %v2502_v28 = vsel %vm1016_vm3, %v9721_v27, 0.0 }
 0xe8c   :  { %2503 = vadd.xlane.f32.xlu1 %v2502_v28 }
 0xe9d   :  { %9566 = vrot.lane.b32.xlu1 %v10686_v1, %s10120_s14 }
 0xf19   :  { %v2504_v29 = vpop.xlane.xlu1 %2503 }
 0xf1a   :  { %9722 = vrcp.f32 %v2504_v29 }
 0xf1d   :  { %v9567_v20 = vpop.permute.xlu1 %9566 }
 0xf1e   :  { %v9569_v30 = vunpack.i.h.bf16 %v9567_v20  ;;  %v9568_v31 = vunpack.i.l.bf16 %v9567_v20 }
 0xf20   :  { %v9253_v34 = vpack.c.bf16 %v9569_v30, %v9568_v31 }
 0xf24   :  { %v9723_v32 = vpop.eup %9722 }
 0xf25   :  { %v2506_v33 = vmul.f32 %v9723_v32, %v9721_v27 }
 0xf27   :  { %8711 = vmatmul.mubr.msk.f32.vlgmr.msra.gmra.mrb[26].mxu1 %vm1016_vm3, %v2506_v33 }
 0xf28   :  { %9255 = vmatpush3.bf16.xpose.msk.msra.mxu1 %vm10702_vm5, %v9253_v34  ;;  %8717 = vmatprep.mubr.msk.f32.mxu1 %vm10113_vm1, %v10112_v8 }
 0xf29   :  { %9263 = vmatprep.subr.bf16.mxu1 %v10126_v59 }
 0xf2f   :  { %8718 = vmatmul.mubr.msk.f32.vlgmr.msra.gmra.mrb[28].mxu1 %vm346_vm2, %v2587_v35 }
 0xf30   :  { %8738 = vmatprep.mubr.msk.f32.mxu1 %vm10113_vm1, %v10112_v8 }
 0xffa   :  { %v10795_v36 = vpop.f32.mrb[26].mxu1 }
 0xffb   :  { %v8712_v37 = vpop.f32.mrb[27].mxu1 }
0x1002   :  { %v2664_v40 = vpop.f32.mrb[28].mxu1 }
0x1003   :  { %v8719_v39 = vpop.f32.mrb[29].mxu1  ;;  %v2668_v41 = vsel %vm1016_vm3, %v2664_v40, -inf }
0x1004   :  { %2669 = vmax.xlane.f32.xlu1 %v2668_v41 }
0x1091   :  { %v2670_v42 = vpop.xlane.xlu1 %2669 }
0x1092   :  { %v2671_v43 = vsub.f32 %v2664_v40, %v2670_v42 }
0x1094   :  { %v2672_v44 = vmul.f32 1.442695, %v2671_v43 }
0x1096   :  { %9724 = vpow2.f32 %v2672_v44 }
0x10a0   :  { %v9725_v45 = vpop.eup %9724 }
0x10a1   :  { %v2674_v46 = vsel %vm1016_vm3, %v9725_v45, 0.0 }
0x10a2   :  { %2675 = vadd.xlane.f32.xlu0 %v2674_v46 }
0x10b8   :  { %9571 = vrot.lane.b32.xlu0 %v10686_v1, %s10121_s12 }
0x10bc   :  { %9581 = vrot.lane.b32.xlu0 %v10769_v0, %s10117_s1 }
0x10c0   :  { %2942 = vrot.lane.b32.xlu0 %v10715_v17, %s10117_s1 }
0x112f   :  { %v2676_v47 = vpop.xlane.xlu0 %2675 }
0x1130   :  { %9726 = vrcp.f32 %v2676_v47 }
0x1133   :  { %v9572_v11 = vpop.permute.xlu0 %9571 }
0x1134   :  { %v9574_v48 = vunpack.i.h.bf16 %v9572_v11  ;;  %v9573_v49 = vunpack.i.l.bf16 %v9572_v11 }
0x1136   :  { %v9257_v50 = vpack.c.bf16 %v9574_v48, %v9573_v49 }
0x1137   :  { %v9582_v18 = vpop.permute.xlu0 %9581 }
0x1138   :  { %9258 = vmatpush3.bf16.msra.mxu0 %v9257_v50  ;;  %v9584_v60 = vunpack.i.h.bf16 %v9582_v18  ;;  %v9583_v21 = vunpack.i.l.bf16 %v9582_v18 }
0x1139   :  { %9259 = vmatprep.subr.bf16.mxu0 %v10126_v59 }
0x113a   :  { %v9727_v51 = vpop.eup %9726  ;;  %v9267_v23 = vpack.c.bf16 %v9584_v60, %v9583_v21 }
0x113b   :  { %v2678_v52 = vmul.f32 %v9727_v51, %v9725_v45  ;;  %v2943_v24 = vpop.permute.xlu0 %2942 }
0x113d   :  { %8725 = vmatmul.mubr.msk.f32.vlgmr.msra.gmra.mrb[28].mxu0 %vm1016_vm3, %v2678_v52 }
0x113e   :  { %8731 = vmatprep.mubr.msk.f32.mxu0 %vm10113_vm1, %v10112_v8 }
0x1141   :  { %9262 = vmatpush3.bf16.xpose.msk.msra.mxu0 %vm10702_vm5, %v9260_v6 }
0x1142   :  { %9270 = vmatprep.subr.bf16.mxu0 %v10126_v59 }
0x1148   :  { %8732 = vmatmul.mubr.msk.f32.vlgmr.msra.gmra.mrb[30].mxu0 %vm346_vm2, %v10715_v17 }
0x1149   :  { %8752 = vmatprep.mubr.msk.f32.mxu0 %vm10113_vm1, %v10112_v8 }
0x1210   :  { %v10819_v1 = vpop.f32.mrb[28].mxu0 }
0x1211   :  { %v8726_v53 = vpop.f32.mrb[29].mxu0 }
0x121b   :  { %v2848_v54 = vpop.f32.mrb[30].mxu0 }
0x121c   :  { %v8733_v55 = vpop.f32.mrb[31].mxu0  ;;  %v2852_v56 = vsel %vm1016_vm3, %v2848_v54, -inf }
0x121d   :  { %2853 = vmax.xlane.f32.xlu1 %v2852_v56 }
0x12aa   :  { %v2854_v5 = vpop.xlane.xlu1 %2853 }
0x12ab   :  { %v2855_v7 = vsub.f32 %v2848_v54, %v2854_v5 }
0x12ad   :  { %v2856_v58 = vmul.f32 1.442695, %v2855_v7 }
0x12af   :  { %9728 = vpow2.f32 %v2856_v58 }
0x12b9   :  { %v9729_v61 = vpop.eup %9728 }
0x12ba   :  { %v2858_v62 = vsel %vm1016_vm3, %v9729_v61, 0.0 }
0x12bb   :  { %2859 = vadd.xlane.f32.xlu1 %v2858_v62 }
0x12cc   :  { %9576 = vrot.lane.b32.xlu1 %v10769_v0, %s10115_s30 }
0x1348   :  { %v2860_v63 = vpop.xlane.xlu1 %2859 }
0x1349   :  { %9730 = vrcp.f32 %v2860_v63 }
0x134c   :  { %v9577_v6 = vpop.permute.xlu1 %9576 }
0x134d   :  { %v9579_v14 = vunpack.i.h.bf16 %v9577_v6  ;;  %v9578_v16 = vunpack.i.l.bf16 %v9577_v6 }
0x134f   :  { %v9264_v13 = vpack.c.bf16 %v9579_v14, %v9578_v16 }
0x1351   :  { %9265 = vmatpush3.bf16.msra.mxu1 %v9264_v13 }
0x1352   :  { %9266 = vmatprep.subr.bf16.mxu1 %v10126_v59 }
0x1353   :  { %v9731_v19 = vpop.eup %9730 }
0x1354   :  { %v2862_v22 = vmul.f32 %v9731_v19, %v9729_v61 }
0x1356   :  { %8739 = vmatmul.mubr.msk.f32.vlgmr.msra.gmra.mrb[30].mxu1 %vm1016_vm3, %v2862_v22 }
0x1357   :  { %8745 = vmatprep.mubr.msk.f32.mxu1 %vm10113_vm1, %v10112_v8 }
0x135a   :  { %9269 = vmatpush3.bf16.xpose.msk.msra.mxu1 %vm10702_vm5, %v9267_v23 }
0x135b   :  { %9277 = vmatprep.subr.bf16.mxu1 %v10126_v59 }
0x1361   :  { %8746 = vmatmul.mubr.msk.f32.vlgmr.msra.gmra.mrb[32].mxu1 %vm346_vm2, %v2943_v24 }
0x1362   :  { %8766 = vmatprep.mubr.msk.f32.mxu1 %vm10113_vm1, %v10112_v8 }
0x1429   :  { %v10835_v25 = vpop.f32.mrb[30].mxu1 }
0x142a   :  { %v8740_v26 = vpop.f32.mrb[31].mxu1 }
0x1434   :  { %v3020_v27 = vpop.f32.mrb[32].mxu1 }
0x1435   :  { %v8747_v28 = vpop.f32.mrb[33].mxu1  ;;  %v3024_v29 = vsel %vm1016_vm3, %v3020_v27, -inf }
0x1436   :  { %3025 = vmax.xlane.f32.xlu1 %v3024_v29 }
0x1447   :  { %9591 = vrot.lane.b32.xlu1 %v10769_v0, %s10119_s27 }
0x144b   :  { %3114 = vrot.lane.b32.xlu1 %v10715_v17, %s10119_s27 }
0x14c3   :  { %v3026_v20 = vpop.xlane.xlu1 %3025 }
0x14c4   :  { %v3027_v30 = vsub.f32 %v3020_v27, %v3026_v20 }
0x14c6   :  { %v3028_v31 = vmul.f32 1.442695, %v3027_v30 }
0x14c7   :  { %v9592_v41 = vpop.permute.xlu1 %9591 }
0x14c8   :  { %9732 = vpow2.f32 %v3028_v31  ;;  %v9594_v43 = vunpack.i.h.bf16 %v9592_v41  ;;  %v9593_v44 = vunpack.i.l.bf16 %v9592_v41  ;;  %v2069_v41 = vld [vmem:[#allocation12 + $0x8] sm:$0xff] }
0x14ca   :  { %v9274_v46 = vpack.c.bf16 %v9594_v43, %v9593_v44  ;;  %v2071_v44 = vld [vmem:[#allocation12 + $0x18] sm:$0xff] }
0x14cb   :  { %v3115_v47 = vpop.permute.xlu1 %3114 }
0x14d2   :  { %v9733_v32 = vpop.eup %9732 }
0x14d3   :  { %v3030_v33 = vsel %vm1016_vm3, %v9733_v32, 0.0 }
0x14d4   :  { %3031 = vadd.xlane.f32.xlu0 %v3030_v33 }
0x14ea   :  { %9586 = vrot.lane.b32.xlu0 %v10769_v0, %s10116_s4 }
0x1561   :  { %v3032_v34 = vpop.xlane.xlu0 %3031 }
0x1562   :  { %9734 = vrcp.f32 %v3032_v34 }
0x1565   :  { %v9587_v35 = vpop.permute.xlu0 %9586 }
0x1566   :  { %v9589_v37 = vunpack.i.h.bf16 %v9587_v35  ;;  %v9588_v40 = vunpack.i.l.bf16 %v9587_v35 }
0x1568   :  { %v9271_v39 = vpack.c.bf16 %v9589_v37, %v9588_v40 }
0x156a   :  { %9272 = vmatpush3.bf16.msra.mxu0 %v9271_v39  ;;  %v2068_v39 = vld [vmem:[#allocation12] sm:$0xff] }
0x156b   :  { %9273 = vmatprep.subr.bf16.mxu0 %v10126_v59  ;;  %v9287_v43 = vpack.c.bf16 %v2069_v41, %v2068_v39  ;;  %v8107_v39 = vld [vmem:[%s11608_s8 + $0x1] ss:$0 sm:$0xff] }
0x156c   :  { %v9735_v42 = vpop.eup %9734 }
0x156d   :  { %v3034_v45 = vmul.f32 %v9735_v42, %v9733_v32  ;;  %v2070_v42 = vld [vmem:[#allocation12 + $0x10] sm:$0xff] }
0x156f   :  { %8753 = vmatmul.mubr.msk.f32.vlgmr.msra.gmra.mrb[32].mxu0 %vm1016_vm3, %v3034_v45  ;;  %v9291_v45 = vpack.c.bf16 %v2071_v44, %v2070_v42 }
0x1570   :  { %8759 = vmatprep.mubr.msk.f32.mxu0 %vm10113_vm1, %v10112_v8 }
0x1573   :  { %9276 = vmatpush3.bf16.xpose.msk.msra.mxu0 %vm10702_vm5, %v9274_v46 }
0x1574   :  { %9284 = vmatprep.subr.bf16.mxu0 %v10126_v59 }
0x157a   :  { %8760 = vmatmul.mubr.msk.f32.vlgmr.msra.gmra.mrb[34].mxu0 %vm346_vm2, %v3115_v47 }
0x157b   :  { %8780 = vmatprep.mubr.msk.f32.mxu0 %vm10113_vm1, %v10112_v8 }
0x1642   :  { %v3110_v11 = vpop.f32.mrb[32].mxu0 }
0x1643   :  { %v8754_v48 = vpop.f32.mrb[33].mxu0 }
0x164d   :  { %v3192_v49 = vpop.f32.mrb[34].mxu0 }
0x164e   :  { %v8761_v50 = vpop.f32.mrb[35].mxu0  ;;  %v3196_v51 = vsel %vm1016_vm3, %v3192_v49, -inf }
0x164f   :  { %3197 = vmax.xlane.f32.xlu0 %v3196_v51 }
0x1665   :  { %9596 = vrot.lane.b32.xlu0 %v10769_v0, %s10118_s13 }
0x1669   :  { %3286 = vrot.lane.b32.xlu0 %v10715_v17, %s10120_s14 }
0x16dc   :  { %v3198_v52 = vpop.xlane.xlu0 %3197 }
0x16dd   :  { %v3199_v53 = vsub.f32 %v3192_v49, %v3198_v52  ;;  %v8091_v52 = vld [vmem:[#allocation13] ss:$0 sm:$0xff] }
0x16df   :  { %v3200_v54 = vmul.f32 1.442695, %v3199_v53 }
0x16e0   :  { %v9597_v55 = vpop.permute.xlu0 %9596 }
0x16e1   :  { %9736 = vpow2.f32 %v3200_v54  ;;  %v9599_v56 = vunpack.i.h.bf16 %v9597_v55  ;;  %v9598_v5 = vunpack.i.l.bf16 %v9597_v55 }
0x16e3   :  { %v9278_v7 = vpack.c.bf16 %v9599_v56, %v9598_v5 }
0x16e4   :  { %v3287_v18 = vpop.permute.xlu0 %3286 }
0x16e5   :  { %9279 = vmatpush3.bf16.msra.mxu1 %v9278_v7  ;;  %v3641_v7 = vld [vmem:[%s11574_s15] sm:$0xff] }
0x16e6   :  { %9280 = vmatprep.subr.bf16.mxu1 %v10126_v59 }
0x16eb   :  { %v9737_v58 = vpop.eup %9736 }
0x16ec   :  { %v3202_v61 = vsel %vm1016_vm3, %v9737_v58, 0.0 }
0x16ed   :  { %3203 = vadd.xlane.f32.xlu1 %v3202_v61 }
0x16fe   :  { %9601 = vrot.lane.b32.xlu1 %v10769_v0, %s10120_s14 }
0x177a   :  { %v3204_v62 = vpop.xlane.xlu1 %3203 }
0x177b   :  { %9738 = vrcp.f32 %v3204_v62 }
0x177e   :  { %v9602_v17 = vpop.permute.xlu1 %9601 }
0x177f   :  { %v9604_v63 = vunpack.i.h.bf16 %v9602_v17  ;;  %v9603_v6 = vunpack.i.l.bf16 %v9602_v17 }
0x1781   :  { %v9281_v13 = vpack.c.bf16 %v9604_v63, %v9603_v6  ;;  %v3728_v63 = vld [vmem:[#allocation15] sm:$0xff]  ;;  %v3729_v6 = vld [vmem:[#allocation15 + $0x8] sm:$0xff] }
0x1785   :  { %v9739_v14 = vpop.eup %9738 }
0x1786   :  { %v3206_v16 = vmul.f32 %v9739_v14, %v9737_v58  ;;  %v9307_v14 = vpack.c.bf16 %v3729_v6, %v3728_v63 }
0x1788   :  { %8767 = vmatmul.mubr.msk.f32.vlgmr.msra.gmra.mrb[34].mxu1 %vm1016_vm3, %v3206_v16 }
0x1789   :  { %9283 = vmatpush3.bf16.xpose.msk.msra.mxu1 %vm10702_vm5, %v9281_v13  ;;  %8773 = vmatprep.mubr.msk.f32.mxu1 %vm10113_vm1, %v10112_v8 }
0x1790   :  { %8774 = vmatmul.mubr.msk.f32.vlgmr.msra.gmra.mrb[36].mxu1 %vm346_vm2, %v3287_v18 }
0x1791   :  { %8798 = vmatprep.mubr.msk.f32.mxu1 %vm1016_vm3, %v10644_v38 }
0x185b   :  { %v3282_v19 = vpop.f32.mrb[34].mxu1 }
0x185c   :  { %v8768_v60 = vpop.f32.mrb[35].mxu1 }
0x1863   :  { %v3364_v21 = vpop.f32.mrb[36].mxu1 }
0x1864   :  { %v8775_v22 = vpop.f32.mrb[37].mxu1  ;;  %v3368_v23 = vsel %vm1016_vm3, %v3364_v21, -inf }
0x1865   :  { %3369 = vmax.xlane.f32.xlu1 %v3368_v23  ;;  %v3730_v22 = vld [vmem:[#allocation15 + $0x10] sm:$0xff]  ;;  %v3731_v23 = vld [vmem:[#allocation15 + $0x18] sm:$0xff] }
0x1876   :  { %2759 = vrot.lane.b32.xlu1 %v10775_v15, %s11604_s18 }
0x187a   :  { %2763 = vrot.lane.b32.xlu1 %v10795_v36, %s10100_s28 }
0x187e   :  { %2767 = vrot.lane.b32.xlu1 %v10819_v1, %s10125_s26 }
0x18f2   :  { %v3370_v24 = vpop.xlane.xlu1 %3369 }
0x18f3   :  { %v3371_v26 = vsub.f32 %v3364_v21, %v3370_v24  ;;  %v9311_v24 = vpack.c.bf16 %v3731_v23, %v3730_v22 }
0x18f5   :  { %v3372_v27 = vmul.f32 1.442695, %v3371_v26 }
0x18f6   :  { %v2760_v15 = vpop.permute.xlu1 %2759 }
0x18f7   :  { %9740 = vpow2.f32 %v3372_v27  ;;  %v2770_v35 = vsel %vm346_vm2, %v10773_v12, %v2760_v15 }
0x18fa   :  { %v2764_v1 = vpop.permute.xlu1 %2763 }
0x18fe   :  { %v2768_v34 = vpop.permute.xlu1 %2767 }
0x1901   :  { %v9741_v28 = vpop.eup %9740 }
0x1902   :  { %v3374_v29 = vsel %vm1016_vm3, %v9741_v28, 0.0 }
0x1903   :  { %3375 = vadd.xlane.f32.xlu0 %v3374_v29 }
0x1919   :  { %9606 = vrot.lane.b32.xlu0 %v10769_v0, %s10121_s12  ;;  %v2771_v0 = vsel %vm1016_vm3, %v2770_v35, %v2764_v1 }
0x191a   :  { %v2772_v40 = vsel %vm1018_vm4, %v2771_v0, %v2768_v34 }
0x191d   :  { %3459 = vrot.lane.b32.xlu0 %v3110_v11, %s11604_s18 }
0x1921   :  { %3463 = vrot.lane.b32.xlu0 %v3282_v19, %s10100_s28 }
0x1990   :  { %v3376_v36 = vpop.xlane.xlu0 %3375 }
0x1991   :  { %9742 = vrcp.f32 %v3376_v36  ;;  %v8103_v36 = vld [vmem:[%s11607_s6 + $0x28] sm:$0xff] }
0x1994   :  { %v9607_v20 = vpop.permute.xlu0 %9606 }
0x1995   :  { %v9609_v30 = vunpack.i.h.bf16 %v9607_v20  ;;  %v9608_v31 = vunpack.i.l.bf16 %v9607_v20 }
0x1997   :  { %v9285_v32 = vpack.c.bf16 %v9609_v30, %v9608_v31  ;;  %v8104_v31 = vld [vmem:[%s11607_s6 + $0x30] sm:$0xff] }
0x1998   :  { %v3460_v47 = vpop.permute.xlu0 %3459 }
0x1999   :  { %9286 = vmatpush3.bf16.msra.mxu0 %v9285_v32  ;;  %v3470_v48 = vsel %vm346_vm2, %v10835_v25, %v3460_v47  ;;  %v3642_v25 = vld [vmem:[%s11574_s15 + $0x8] sm:$0xff]  ;;  %v8105_v32 = vld [vmem:[%s11607_s6 + $0x38] sm:$0xff] }
0x199a   :  { %9288 = vmatprep.subr.bf16.mxu0 %v9287_v43  ;;  %v9299_v62 = vpack.c.bf16 %v3642_v25, %v3641_v7  ;;  %v3927_v7 = vld [vmem:[%s11576_s17 + $0x30] sm:$0xff]  ;;  %v3928_v25 = vld [vmem:[%s11576_s17 + $0x38] sm:$0xff] }
0x199b   :  { %v9743_v33 = vpop.eup %9742 }
0x199c   :  { %v3378_v37 = vmul.f32 %v9743_v33, %v9741_v28  ;;  %v3464_v11 = vpop.permute.xlu0 %3463  ;;  %v9347_v33 = vpack.c.bf16 %v8105_v32, %v8104_v31 }
0x199d   :  { %v3471_v49 = vsel %vm1016_vm3, %v3470_v48, %v3464_v11 }
0x199e   :  { %8781 = vmatmul.mubr.msk.f32.vlgmr.msra.gmra.mrb[36].mxu0 %vm1016_vm3, %v3378_v37 }
0x199f   :  { %8791 = vmatprep.mubr.msk.f32.mxu0 %vm256_vm0, %v2772_v40  ;;  %9290 = vmatpush3.bf16.msra.mxu0 %v9287_v43 }
0x19a0   :  { %9292 = vmatprep.subr.bf16.mxu0 %v9291_v45 }
0x19a3   :  { %9294 = vmatpush3.bf16.msra.mxu0 %v9291_v45 }
0x19a4   :  { %9308 = vmatprep.subr.bf16.mxu0 %v9307_v14 }
0x1a71   :  { %v3454_v12 = vpop.f32.mrb[36].mxu0 }
0x1a72   :  { %3467 = vrot.lane.b32.xlu1 %v3454_v12, %s10125_s26  ;;  %v8782_v46 = vpop.f32.mrb[37].mxu0 }
0x1ae4   :  { %v3468_v50 = vpop.permute.xlu1 %3467 }
0x1ae5   :  { %v3472_v51 = vsel %vm1018_vm4, %v3471_v49, %v3468_v50  ;;  %v3921_v49 = vld [vmem:[%s11576_s17] sm:$0xff]  ;;  %v3922_v50 = vld [vmem:[%s11576_s17 + $0x8] sm:$0xff] }
0x1ae6   :  { %8792 = vmatmul.mubr.msk.f32.vlgmr.msra.gmra.mrb[38].mxu0 %vm256_vm0, %v3472_v51  ;;  %v3923_v51 = vld [vmem:[%s11576_s17 + $0x10] sm:$0xff] }
0x1ae7   :  { %9310 = vmatpush3.bf16.msra.mxu0 %v9307_v14 }
0x1ae8   :  { %9312 = vmatprep.subr.bf16.mxu0 %v9311_v24 }
0x1aeb   :  { %9314 = vmatpush3.bf16.msra.mxu0 %v9311_v24 }
0x1bb9   :  { %v8793_v53 = vpop.f32.mrb[38].mxu0 }
0x1bba   :  { %v3555_v54 = vadd.f32 %v8793_v53, %v10698_v9  ;;  %v3545_v55 = vpop.f32.mrb[39].mxu0  ;;  %v3644_v9 = vld [vmem:[%s11574_s15 + $0x18] sm:$0xff] }
0x1bbb   :  { %v3554_v56 = vadd.f32 %v3545_v55, %v10695_v4  ;;  %v3643_v4 = vld [vmem:[%s11574_s15 + $0x10] sm:$0xff]  ;;  %v3924_v53 = vld [vmem:[%s11576_s17 + $0x18] sm:$0xff]  ;;  %v3925_v55 = vld [vmem:[%s11576_s17 + $0x20] sm:$0xff] }
0x1bbc   :  { %v3563_v5 = vadd.f32 %v8091_v52, %v3555_v54  ;;  %v9303_v17 = vpack.c.bf16 %v3644_v9, %v3643_v4  ;;  %v9323_v54 = vpack.c.bf16 %v3924_v53, %v3923_v51  ;;  %v3931_v9 = vld [vmem:[%s11576_s17 + $0x50] sm:$0xff] }
0x1bbd   :  { %v3562_v58 = vadd.f32 %v8091_v52, %v3554_v56  ;;  %v9319_v52 = vpack.c.bf16 %v3922_v50, %v3921_v49  ;;  %v3926_v56 = vld [vmem:[%s11576_s17 + $0x28] sm:$0xff] }
0x1bbf   :  { %v9295_v61 = vpack.c.bf16 %v3563_v5, %v3562_v58  ;;  %9320 = vmatprep.subr.bf16.mxu0 %v9319_v52 }
0x1bc1   :  { %9296 = vmatprep.subr.bf16.mxu1 %v9295_v61 }
0x1bc2   :  { %9298 = vmatpush3.bf16.msra.mxu1 %v9295_v61  ;;  %v3929_v61 = vld [vmem:[%s11576_s17 + $0x40] sm:$0xff] }
0x1bc3   :  { %9300 = vmatprep.subr.bf16.mxu1 %v9299_v62 }
0x1bc5   :  { %8799 = vmatmul.mubr.msk.f32.vlgmr.msra.gmra.mrb[38].mxu1 %vm1016_vm3, %v10670_v57 }
0x1bc6   :  { %9302 = vmatpush3.bf16.msra.mxu1 %v9299_v62  ;;  %v3930_v62 = vld [vmem:[%s11576_s17 + $0x48] sm:$0xff] }
0x1bc7   :  { %9304 = vmatprep.subr.bf16.mxu1 %v9303_v17  ;;  %v9335_v4 = vpack.c.bf16 %v3930_v62, %v3929_v61 }
0x1bca   :  { %9306 = vmatpush3.bf16.msra.mxu1 %v9303_v17  ;;  %v3932_v17 = vld [vmem:[%s11576_s17 + $0x58] sm:$0xff] }
0x1bcb   :  { %v9339_v63 = vpack.c.bf16 %v3932_v17, %v3931_v9 }
0x1c98   :  { %v8800_v16 = vpop.f32.mrb[38].mxu1 }
0x1c99   :  { %v3893_v13 = vadd.f32 %v8800_v16, %v10690_v2  ;;  %v3630_v18 = vpop.f32.mrb[39].mxu1  ;;  %v3640_v21 = vsub.f32 %v3563_v5, %v8800_v16  ;;  %v9327_v5 = vpack.c.bf16 %v3926_v56, %v3925_v55 }
0x1c9a   :  { %v3639_v19 = vsub.f32 %v3562_v58, %v3630_v18  ;;  %v3892_v60 = vadd.f32 %v3630_v18, %v10692_v3  ;;  %v9331_v58 = vpack.c.bf16 %v3928_v25, %v3927_v7 }
0x1c9c   :  { %8809 = vmatprep.mubr.msk.f32.mxu1 %vm256_vm0, %v3639_v19 }
0x1c9d   :  { %8810 = vmatmul.mubr.msk.f32.vlgmr.msra.gmra.mrb[40].mxu1 %vm256_vm0, %v3640_v21 }
0x1c9e   :  { %8827 = vmatprep.mubr.msk.f32.mxu1 %vm1016_vm3, %v10644_v38  ;;  %v8102_v38 = vld [vmem:[%s11607_s6 + $0x20] sm:$0xff] }
0x1c9f   :  { %v9343_v30 = vpack.c.bf16 %v8103_v36, %v8102_v38 }
0x1d70   :  { %v8811_v26 = vpop.f32.mrb[40].mxu1 }
0x1d71   :  { %v3717_v27 = vpop.f32.mrb[41].mxu1  ;;  %v3727_v28 = vmax.f32 %v8811_v26, 0.0 }
0x1d72   :  { %v3726_v2 = vmax.f32 %v3717_v27, 0.0 }
0x1d74   :  { %8820 = vmatprep.mubr.msk.f32.mxu0 %vm256_vm0, %v3726_v2 }
0x1d75   :  { %8821 = vmatmul.mubr.msk.f32.vlgmr.msra.gmra.mrb[40].mxu0 %vm256_vm0, %v3727_v28 }
0x1d76   :  { %9322 = vmatpush3.bf16.msra.mxu0 %v9319_v52 }
0x1d77   :  { %9324 = vmatprep.subr.bf16.mxu0 %v9323_v54 }
0x1d7a   :  { %9326 = vmatpush3.bf16.msra.mxu0 %v9323_v54 }
0x1d7b   :  { %9328 = vmatprep.subr.bf16.mxu0 %v9327_v5 }
0x1d7e   :  { %9330 = vmatpush3.bf16.msra.mxu0 %v9327_v5 }
0x1d7f   :  { %9332 = vmatprep.subr.bf16.mxu0 %v9331_v58 }
0x1d82   :  { %9334 = vmatpush3.bf16.msra.mxu0 %v9331_v58 }
0x1d83   :  { %9336 = vmatprep.subr.bf16.mxu0 %v9335_v4 }
0x1d86   :  { %9338 = vmatpush3.bf16.msra.mxu0 %v9335_v4 }
0x1d87   :  { %9340 = vmatprep.subr.bf16.mxu0 %v9339_v63 }
0x1d8a   :  { %9342 = vmatpush3.bf16.msra.mxu0 %v9339_v63 }
0x1d8b   :  { %8888 = vmatprep.subr.mxu0 %v10112_v8 }
0x1e48   :  { %v8822_v3 = vpop.f32.mrb[40].mxu0 }
0x1e49   :  { %v3814_v29 = vadd.f32 %v8822_v3, %v3640_v21  ;;  %v3804_v15 = vpop.f32.mrb[41].mxu0 }
0x1e4a   :  { %v3813_v20 = vadd.f32 %v3804_v15, %v3639_v19 }
0x1e4c   :  { %v9315_v1 = vpack.c.bf16 %v3814_v29, %v3813_v20 }
0x1e4e   :  { %9316 = vmatprep.subr.bf16.mxu1 %v9315_v1 }
0x1e4f   :  { %9318 = vmatpush3.bf16.msra.mxu1 %v9315_v1 }
0x1e50   :  { %9344 = vmatprep.subr.bf16.mxu1 %v9343_v30 }
0x1e52   :  { %8828 = vmatmul.mubr.msk.f32.vlgmr.msra.gmra.mrb[42].mxu1 %vm1016_vm3, %v10670_v57 }
0x1e53   :  { %9346 = vmatpush3.bf16.msra.mxu1 %v9343_v30 }
0x1e54   :  { %9348 = vmatprep.subr.bf16.mxu1 %v9347_v33 }
0x1e57   :  { %9350 = vmatpush3.bf16.msra.mxu1 %v9347_v33 }
0x1e58   :  { %8868 = vmatprep.subr.mxu1 %v10112_v8 }
0x1f25   :  { %v8829_v34 = vpop.f32.mrb[42].mxu1 }
0x1f26   :  { %v10935_v35 = vadd.f32 %v8829_v34, %v3893_v13  ;;  %v3881_v37 = vpop.f32.mrb[43].mxu1  ;;  %v10941_v40 = vsub.f32 %v3814_v29, %v8829_v34 }
0x1f27   :  { %v10937_v0 = vsub.f32 %v3813_v20, %v3881_v37  ;;  %v10939_v57 = vadd.f32 %v3892_v60, %v3881_v37 }
0x1f28   :  { %v3899_v26 = vrot.slane %v10935_v35, 1  ;;  %v3897_v3 = vrot.slane %v10935_v35, 7 }
0x1f29   :  { %8865 = vmatprep.mubr.msk.f32.mxu1 %vm256_vm0, %v10937_v0  ;;  %v3898_v48 = vrot.slane %v10939_v57, 1  ;;  %v3896_v19 = vrot.slane %v10939_v57, 7 }
0x1f2a   :  { %8866 = vmatmul.mubr.msk.f32.vlgmr.msra.gmra.mrb[44].mxu1 %vm256_vm0, %v10941_v40 }
0x1f2b   :  { %8870 = vmatprep.mubr.msk.f32.mxu1 %vm10113_vm1, %v10112_v8 }
0x1ffd   :  { %v8867_v41 = vpop.f32.mrb[44].mxu1 }
0x1ffe   :  { %v10952_v42 = vadd.f32 %v8867_v41, %v8107_v39  ;;  %v4102_v43 = vpop.f32.mrb[45].mxu1 }
0x1fff   :  { %v10954_v44 = vadd.f32 %v8107_v39, %v4102_v43 }
0x2001   :  { %4119 = vrot.lane.b32.xlu0 %v10954_v44, %s10115_s30 }
0x2005   :  { %4206 = vrot.lane.b32.xlu0 %v10954_v44, %s10114_s22 }
0x2009   :  { %3904 = vrot.lane.b32.xlu0 %v10935_v35, %s10127_s29 }
0x2073   :  { %v4120_v45 = vpop.permute.xlu0 %4119 }
0x2074   :  { %8869 = vmatpush3.xpose.msk.msra.mxu1 %vm346_vm2, %v4120_v45 }
0x2075   :  { %8873 = vmatprep.subr.mxu1 %v10112_v8 }
0x2077   :  { %8871 = vmatmul.mubr.msk.f32.vlgmr.msra.gmra.mrb[46].mxu1 %vm346_vm2, %v10954_v44  ;;  %v4207_v12 = vpop.permute.xlu0 %4206 }
0x2078   :  { %8874 = vmatpush3.msra.mxu1 %v4207_v12  ;;  %8875 = vmatprep.mubr.msk.f32.mxu1 %vm10113_vm1, %v10112_v8 }
0x2079   :  { %8878 = vmatprep.subr.mxu1 %v10112_v8 }
0x207b   :  { %v3905_v27 = vpop.permute.xlu0 %3904 }
0x207c   :  { %v3917_v29 = vsel %vm256_vm0, %v3897_v3, %v3905_v27 }
0x214a   :  { %v4191_v46 = vpop.f32.mrb[46].mxu1 }
0x214b   :  { %v8872_v47 = vpop.f32.mrb[47].mxu1  ;;  %v4195_v11 = vsel %vm346_vm2, %v4191_v46, -inf }
0x214c   :  { %4196 = vmax.xlane.f32.xlu1 %v4195_v11 }
0x215d   :  { %3902 = vrot.lane.b32.xlu1 %v10939_v57, %s10127_s29 }
0x2161   :  { %4284 = vrot.lane.b32.xlu1 %v10954_v44, %s10116_s4 }
0x2165   :  { %3910 = vrot.lane.b32.xlu1 %v3898_v48, %s10114_s22 }
0x2169   :  { %4282 = vrot.lane.b32.xlu1 %v10954_v44, %s10117_s1 }
0x216d   :  { %4447 = vrot.lane.b32.xlu1 %v10954_v44, %s10119_s27 }
0x2171   :  { %4612 = vrot.lane.b32.xlu1 %v10954_v44, %s10120_s14 }
0x2175   :  { %4958 = vrot.lane.b32.xlu1 %v10952_v42, %s10116_s4 }
0x2179   :  { %5123 = vrot.lane.b32.xlu1 %v10952_v42, %s10118_s13 }
0x217d   :  { %5288 = vrot.lane.b32.xlu1 %v10952_v42, %s10121_s12 }
0x21d9   :  { %v4197_v6 = vpop.xlane.xlu1 %4196 }
0x21da   :  { %v4198_v14 = vsub.f32 %v4191_v46, %v4197_v6 }
0x21dc   :  { %v4199_v16 = vmul.f32 1.442695, %v4198_v14 }
0x21dd   :  { %v3903_v13 = vpop.permute.xlu1 %3902 }
0x21de   :  { %9744 = vpow2.f32 %v4199_v16  ;;  %v3916_v60 = vsel %vm256_vm0, %v3896_v19, %v3903_v13 }
0x21e1   :  { %v4285_v18 = vpop.permute.xlu1 %4284 }
0x21e5   :  { %v3911_v21 = vpop.permute.xlu1 %3910 }
0x21e6   :  { %v3919_v22 = vsel %vm3918_vm6, %v3916_v60, %v3911_v21 }
0x21e7   :  { %8854 = vmatprep.mubr.msk.f32.mxu0 %vm3933_vm7, %v3919_v22 }
0x21e8   :  { %v9745_v23 = vpop.eup %9744 }
0x21e9   :  { %v4201_v24 = vsel %vm346_vm2, %v9745_v23, 0.0  ;;  %v4283_v2 = vpop.permute.xlu1 %4282 }
0x21ea   :  { %4202 = vadd.xlane.f32.xlu0 %v4201_v24 }
0x21ed   :  { %v4448_v15 = vpop.permute.xlu1 %4447 }
0x21f1   :  { %v4613_v1 = vpop.permute.xlu1 %4612 }
0x21f5   :  { %v4959_v33 = vpop.permute.xlu1 %4958 }
0x21f9   :  { %v5124_v37 = vpop.permute.xlu1 %5123 }
0x21fd   :  { %v5289_v39 = vpop.permute.xlu1 %5288 }
0x2200   :  { %3912 = vrot.lane.b32.xlu0 %v3899_v26, %s10114_s22 }
0x2204   :  { %4449 = vrot.lane.b32.xlu0 %v10954_v44, %s10118_s13 }
0x2208   :  { %4614 = vrot.lane.b32.xlu0 %v10954_v44, %s10121_s12 }
0x220c   :  { %4793 = vrot.lane.b32.xlu0 %v10952_v42, %s10115_s30 }
0x2210   :  { %4956 = vrot.lane.b32.xlu0 %v10952_v42, %s10117_s1 }
0x2214   :  { %5121 = vrot.lane.b32.xlu0 %v10952_v42, %s10119_s27 }
0x2218   :  { %5286 = vrot.lane.b32.xlu0 %v10952_v42, %s10120_s14 }
0x2277   :  { %v4203_v28 = vpop.xlane.xlu0 %4202 }
0x2278   :  { %9746 = vrcp.f32 %v4203_v28 }
0x227b   :  { %v3913_v38 = vpop.permute.xlu0 %3912 }
0x227c   :  { %v3920_v36 = vsel %vm3918_vm6, %v3917_v29, %v3913_v38 }
0x227d   :  { %8855 = vmatmul.mubr.msk.f32.vlgmr.msra.gmra.mrb[42].mxu0 %vm3933_vm7, %v3920_v36 }
0x227e   :  { %8890 = vmatprep.mubr.msk.f32.mxu0 %vm10113_vm1, %v10112_v8 }
0x227f   :  { %v4450_v20 = vpop.permute.xlu0 %4449 }
0x2280   :  { %8889 = vmatpush3.xpose.msk.msra.mxu0 %vm346_vm2, %v4450_v20 }
0x2281   :  { %8898 = vmatprep.subr.mxu0 %v10112_v8 }
0x2282   :  { %v9747_v30 = vpop.eup %9746 }
0x2283   :  { %v4205_v31 = vmul.f32 %v9747_v30, %v9745_v23  ;;  %8891 = vmatmul.mubr.msk.f32.vlgmr.msra.gmra.mrb[44].mxu0 %vm346_vm2, %v4448_v15  ;;  %v4615_v32 = vpop.permute.xlu0 %4614 }
0x2284   :  { %8899 = vmatpush3.xpose.msk.msra.mxu0 %vm346_vm2, %v4615_v32  ;;  %8900 = vmatprep.mubr.msk.f32.mxu0 %vm10113_vm1, %v10112_v8 }
0x2285   :  { %8876 = vmatmul.mubr.msk.f32.vlgmr.msra.gmra.mrb[48].mxu1 %vm346_vm2, %v4205_v31  ;;  %8908 = vmatprep.subr.mxu0 %v10112_v8 }
0x2286   :  { %8879 = vmatpush3.xpose.msk.msra.mxu1 %vm346_vm2, %v4285_v18  ;;  %8880 = vmatprep.mubr.msk.f32.mxu1 %vm10113_vm1, %v10112_v8 }
0x2287   :  { %8901 = vmatmul.mubr.msk.f32.vlgmr.msra.gmra.mrb[46].mxu0 %vm346_vm2, %v4613_v1  ;;  %v4794_v34 = vpop.permute.xlu0 %4793  ;;  %8883 = vmatprep.subr.mxu1 %v10112_v8 }
0x2288   :  { %8909 = vmatpush3.xpose.msk.msra.mxu0 %vm346_vm2, %v4794_v34  ;;  %8910 = vmatprep.mubr.msk.f32.mxu0 %vm10113_vm1, %v10112_v8 }
0x2289   :  { %8881 = vmatmul.mubr.msk.f32.vlgmr.msra.gmra.mrb[50].mxu1 %vm346_vm2, %v4283_v2  ;;  %8918 = vmatprep.subr.mxu0 %v10112_v8 }
0x228a   :  { %8885 = vmatprep.mubr.msk.f32.mxu1 %vm10113_vm1, %v10112_v8 }
0x228b   :  { %8911 = vmatmul.mubr.msk.f32.vlgmr.msra.gmra.mrb[48].mxu0 %vm346_vm2, %v10952_v42  ;;  %v4957_v35 = vpop.permute.xlu0 %4956 }
0x228c   :  { %8919 = vmatpush3.xpose.msk.msra.mxu0 %vm346_vm2, %v4959_v33  ;;  %8920 = vmatprep.mubr.msk.f32.mxu0 %vm10113_vm1, %v10112_v8 }
0x228d   :  { %8928 = vmatprep.subr.mxu0 %v10112_v8 }
0x228f   :  { %8921 = vmatmul.mubr.msk.f32.vlgmr.msra.gmra.mrb[50].mxu0 %vm346_vm2, %v4957_v35  ;;  %v5122_v57 = vpop.permute.xlu0 %5121 }
0x2290   :  { %8929 = vmatpush3.xpose.msk.msra.mxu0 %vm346_vm2, %v5124_v37  ;;  %8930 = vmatprep.mubr.msk.f32.mxu0 %vm10113_vm1, %v10112_v8 }
0x2291   :  { %8938 = vmatprep.subr.mxu0 %v10112_v8 }
0x2293   :  { %8931 = vmatmul.mubr.msk.f32.vlgmr.msra.gmra.mrb[52].mxu0 %vm346_vm2, %v5122_v57  ;;  %v5287_v41 = vpop.permute.xlu0 %5286 }
0x2294   :  { %8939 = vmatpush3.xpose.msk.msra.mxu0 %vm346_vm2, %v5289_v39  ;;  %8940 = vmatprep.mubr.msk.f32.mxu0 %vm10113_vm1, %v10112_v8 }
0x2297   :  { %8941 = vmatmul.mubr.msk.f32.vlgmr.msra.gmra.mrb[54].mxu0 %vm346_vm2, %v5287_v41 }
0x2356   :  { %v4521_v43 = vpop.f32.mrb[44].mxu0 }
0x2357   :  { %v8892_v45 = vpop.f32.mrb[45].mxu0  ;;  %v4525_v12 = vsel %vm346_vm2, %v4521_v43, -inf }
0x2358   :  { %v11087_v46 = vpop.f32.mrb[48].mxu1  ;;  %4526 = vmax.xlane.f32.xlu0 %v4525_v12 }
0x2359   :  { %v8877_v47 = vpop.f32.mrb[49].mxu1 }
0x235a   :  { %v4686_v11 = vpop.f32.mrb[46].mxu0 }
0x235b   :  { %v8902_v48 = vpop.f32.mrb[47].mxu0  ;;  %v4690_v49 = vsel %vm346_vm2, %v4686_v11, -inf }
0x235c   :  { %v11090_v50 = vpop.f32.mrb[50].mxu1  ;;  %4691 = vmax.xlane.f32.xlu0 %v4690_v49 }
0x235d   :  { %v8882_v51 = vpop.f32.mrb[51].mxu1  ;;  %v4360_v52 = vsel %vm346_vm2, %v11090_v50, -inf }
0x235e   :  { %4361 = vmax.xlane.f32.xlu1 %v4360_v52  ;;  %v4865_v53 = vpop.f32.mrb[48].mxu0 }
0x235f   :  { %v8912_v54 = vpop.f32.mrb[49].mxu0  ;;  %v4869_v55 = vsel %vm346_vm2, %v4865_v53, -inf }
0x2362   :  { %4870 = vmax.xlane.f32.xlu1 %v4869_v55  ;;  %v5030_v56 = vpop.f32.mrb[50].mxu0 }
0x2363   :  { %v8922_v5 = vpop.f32.mrb[51].mxu0  ;;  %v5034_v7 = vsel %vm346_vm2, %v5030_v56, -inf }
0x2364   :  { %5035 = vmax.xlane.f32.xlu0 %v5034_v7 }
0x2366   :  { %v5195_v25 = vpop.f32.mrb[52].mxu0 }
0x2367   :  { %v8932_v58 = vpop.f32.mrb[53].mxu0  ;;  %v5199_v61 = vsel %vm346_vm2, %v5195_v25, -inf }
0x2368   :  { %5200 = vmax.xlane.f32.xlu1 %v5199_v61 }
0x236a   :  { %v5360_v62 = vpop.f32.mrb[54].mxu0 }
0x236b   :  { %v8942_v4 = vpop.f32.mrb[55].mxu0  ;;  %v5364_v9 = vsel %vm346_vm2, %v5360_v62, -inf }
0x236c   :  { %5365 = vmax.xlane.f32.xlu0 %v5364_v9 }
0x23e5   :  { %v4527_v17 = vpop.xlane.xlu0 %4526 }
0x23e6   :  { %v4528_v63 = vsub.f32 %v4521_v43, %v4527_v17 }
0x23e8   :  { %v4529_v6 = vmul.f32 1.442695, %v4528_v63 }
0x23e9   :  { %v4692_v14 = vpop.xlane.xlu0 %4691 }
0x23ea   :  { %9748 = vpow2.f32 %v4529_v6  ;;  %v4693_v16 = vsub.f32 %v4686_v11, %v4692_v14 }
0x23eb   :  { %v4362_v13 = vpop.xlane.xlu1 %4361 }
0x23ec   :  { %v4694_v18 = vmul.f32 1.442695, %v4693_v16  ;;  %v4363_v19 = vsub.f32 %v11090_v50, %v4362_v13  ;;  %v11169_v13 = vld [vmem:[#allocation6] sm:$0xff] }
0x23ee   :  { %9750 = vpow2.f32 %v4694_v18  ;;  %v4364_v39 = vmul.f32 1.442695, %v4363_v19 }
0x23ef   :  { %v4871_v60 = vpop.xlane.xlu1 %4870 }
0x23f0   :  { %v4872_v21 = vsub.f32 %v4865_v53, %v4871_v60  ;;  %v8110_v60 = vld [vmem:[%s11566_s7 + $0x20] sm:$0xff] }
0x23f1   :  { %v5036_v22 = vpop.xlane.xlu0 %5035 }
0x23f2   :  { %v4873_v23 = vmul.f32 1.442695, %v4872_v21  ;;  %v5037_v24 = vsub.f32 %v5030_v56, %v5036_v22  ;;  %v8111_v21 = vld [vmem:[%s11566_s7 + $0x28] sm:$0xff] }
0x23f4   :  { %v11099_v26 = vpop.eup %9748  ;;  %9752 = vpow2.f32 %v4873_v23  ;;  %v5038_v27 = vmul.f32 1.442695, %v5037_v24  ;;  %v9351_v23 = vpack.c.bf16 %v8111_v21, %v8110_v60 }
0x23f5   :  { %v5201_v2 = vpop.xlane.xlu1 %5200  ;;  %v4531_v28 = vsel %vm346_vm2, %v11099_v26, 0.0 }
0x23f6   :  { %9754 = vpow2.f32 %v5038_v27  ;;  %v5202_v3 = vsub.f32 %v5195_v25, %v5201_v2  ;;  %4532 = vadd.xlane.f32.xlu0 %v4531_v28  ;;  %9352 = vmatprep.subr.bf16.mxu0 %v9351_v23  ;;  %v8113_v27 = vld [vmem:[%s11566_s7 + $0x38] sm:$0xff] }
0x23f7   :  { %9354 = vmatpush3.bf16.msra.mxu0 %v9351_v23 }
0x23f8   :  { %v11103_v29 = vpop.eup %9750  ;;  %v5203_v15 = vmul.f32 1.442695, %v5202_v3 }
0x23f9   :  { %v5366_v38 = vpop.xlane.xlu0 %5365  ;;  %v4696_v36 = vsel %vm346_vm2, %v11103_v29, 0.0 }
0x23fa   :  { %9756 = vpow2.f32 %v5203_v15  ;;  %v5367_v20 = vsub.f32 %v5360_v62, %v5366_v38  ;;  %4697 = vadd.xlane.f32.xlu1 %v4696_v36 }
0x23fc   :  { %v5368_v1 = vmul.f32 1.442695, %v5367_v20 }
0x23fe   :  { %v11107_v30 = vpop.eup %9752  ;;  %9758 = vpow2.f32 %v5368_v1 }
0x23ff   :  { %v4875_v31 = vsel %vm346_vm2, %v11107_v30, 0.0  ;;  %9760 = vpow2.f32 %v4364_v39 }
0x2400   :  { %v11111_v32 = vpop.eup %9754  ;;  %4876 = vadd.xlane.f32.xlu0 %v4875_v31 }
0x2401   :  { %v5040_v33 = vsel %vm346_vm2, %v11111_v32, 0.0 }
0x2402   :  { %5041 = vadd.xlane.f32.xlu1 %v5040_v33 }
0x2404   :  { %v11115_v34 = vpop.eup %9756 }
0x2405   :  { %v5205_v35 = vsel %vm346_vm2, %v11115_v34, 0.0 }
0x2406   :  { %5206 = vadd.xlane.f32.xlu0 %v5205_v35 }
0x2408   :  { %v11119_v37 = vpop.eup %9758 }
0x2409   :  { %v5370_v57 = vsel %vm346_vm2, %v11119_v37, 0.0  ;;  %v9761_v41 = vpop.eup %9760 }
0x240a   :  { %5371 = vadd.xlane.f32.xlu1 %v5370_v57  ;;  %v4366_v43 = vsel %vm346_vm2, %v9761_v41, 0.0 }
0x241b   :  { %4536 = vrot.lane.b32.xlu1 %v10954_v44, %s10122_s3 }
0x241c   :  { %4371 = vrot.lane.b32.xlu0 %v10954_v44, %s10124_s24 }
0x2420   :  { %4880 = vrot.lane.b32.xlu0 %v10952_v42, %s10114_s22 }
0x2424   :  { %5210 = vrot.lane.b32.xlu0 %v10952_v42, %s10122_s3 }
0x243f   :  { %4367 = vadd.xlane.f32.xlu1 %v4366_v43 }
0x2450   :  { %4701 = vrot.lane.b32.xlu1 %v10954_v44, %s10123_s19 }
0x2454   :  { %5045 = vrot.lane.b32.xlu1 %v10952_v42, %s10124_s24 }
0x2458   :  { %5375 = vrot.lane.b32.xlu1 %v10952_v42, %s10123_s19 }
0x2483   :  { %v4533_v45 = vpop.xlane.xlu0 %4532 }
0x2487   :  { %v4698_v48 = vpop.xlane.xlu1 %4697 }
0x248d   :  { %v4877_v12 = vpop.xlane.xlu0 %4876 }
0x248f   :  { %v5042_v49 = vpop.xlane.xlu1 %5041 }
0x2493   :  { %v5207_v47 = vpop.xlane.xlu0 %5206 }
0x2497   :  { %v4372_v11 = vpop.permute.xlu0 %4371  ;;  %v5372_v50 = vpop.xlane.xlu1 %5371 }
0x2498   :  { %8884 = vmatpush3.msra.mxu1 %v4372_v11  ;;  %v9813_v11 = vld [vmem:[#allocation4] sm:$0xff] }
0x2499   :  { %8893 = vmatprep.subr.mxu1 %v10112_v8 }
0x249b   :  { %v4537_v51 = vpop.permute.xlu1 %4536  ;;  %v4881_v25 = vpop.permute.xlu0 %4880 }
0x249f   :  { %v5211_v17 = vpop.permute.xlu0 %5210 }
0x24cc   :  { %v4368_v52 = vpop.xlane.xlu1 %4367 }
0x24cd   :  { %9762 = vrcp.f32 %v4368_v52 }
0x24ce   :  { %9764 = vrcp.f32 %v4533_v45 }
0x24cf   :  { %9766 = vrcp.f32 %v4698_v48  ;;  %v8151_v48 = vld [vmem:[%s11570_s11 + $0x28] sm:$0xff] }
0x24d0   :  { %9768 = vrcp.f32 %v4877_v12  ;;  %v4702_v56 = vpop.permute.xlu1 %4701 }
0x24d1   :  { %9770 = vrcp.f32 %v5042_v49  ;;  %v8152_v49 = vld [vmem:[%s11570_s11 + $0x30] sm:$0xff] }
0x24d2   :  { %9772 = vrcp.f32 %v5207_v47 }
0x24d3   :  { %9774 = vrcp.f32 %v5372_v50 }
0x24d4   :  { %v5046_v62 = vpop.permute.xlu1 %5045 }
0x24d7   :  { %v9763_v44 = vpop.eup %9762 }
0x24d8   :  { %v4370_v53 = vmul.f32 %v9763_v44, %v9761_v41  ;;  %v9765_v54 = vpop.eup %9764  ;;  %v5376_v14 = vpop.permute.xlu1 %5375  ;;  %v9814_v44 = vld [vmem:[#allocation4 + $0x8] sm:$0xff] }
0x24d9   :  { %v4535_v42 = vmul.f32 %v9765_v54, %v11099_v26  ;;  %v9767_v55 = vpop.eup %9766  ;;  %v8112_v26 = vld [vmem:[%s11566_s7 + $0x30] sm:$0xff]  ;;  %v9816_v54 = vld [vmem:[#allocation4 + $0x18] sm:$0xff] }
0x24da   :  { %8886 = vmatmul.mubr.msk.f32.vlgmr.msra.gmra.mrb[52].mxu1 %vm346_vm2, %v4370_v53  ;;  %v4700_v5 = vmul.f32 %v9767_v55, %v11103_v29  ;;  %v9769_v7 = vpop.eup %9768  ;;  %v9355_v28 = vpack.c.bf16 %v8113_v27, %v8112_v26  ;;  %v9815_v53 = vld [vmem:[#allocation4 + $0x10] sm:$0xff] }
0x24db   :  { %8894 = vmatpush3.msra.mxu1 %v4537_v51  ;;  %8895 = vmatprep.mubr.msk.f32.mxu1 %vm10113_vm1, %v10112_v8  ;;  %v4879_v58 = vmul.f32 %v9769_v7, %v11107_v30  ;;  %v9771_v61 = vpop.eup %9770  ;;  %v8153_v51 = vld [vmem:[%s11570_s11 + $0x38] sm:$0xff] }
0x24dc   :  { %8903 = vmatprep.subr.mxu1 %v10112_v8  ;;  %v5044_v4 = vmul.f32 %v9771_v61, %v11111_v32  ;;  %v9773_v9 = vpop.eup %9772  ;;  %9356 = vmatprep.subr.bf16.mxu0 %v9355_v28  ;;  %v9375_v52 = vpack.c.bf16 %v8153_v51, %v8152_v49  ;;  %v8144_v61 = vld [vmem:[%s11568_s9 + $0x28] sm:$0xff] }
0x24dd   :  { %v5209_v63 = vmul.f32 %v9773_v9, %v11115_v34  ;;  %v9775_v6 = vpop.eup %9774  ;;  %9358 = vmatpush3.bf16.msra.mxu0 %v9355_v28 }
0x24de   :  { %8896 = vmatmul.mubr.msk.f32.vlgmr.msra.gmra.mrb[54].mxu1 %vm346_vm2, %v4535_v42  ;;  %v5374_v16 = vmul.f32 %v9775_v6, %v11119_v37  ;;  %v8140_v42 = vld [vmem:[#allocation7 + $0x1] ss:$0 sm:$0xff]  ;;  %v11238_v6 = vld [vmem:[#allocation10 + $0x1] ss:$0 sm:$0xff] }
0x24df   :  { %8904 = vmatpush3.msra.mxu1 %v4702_v56  ;;  %8905 = vmatprep.mubr.msk.f32.mxu1 %vm10113_vm1, %v10112_v8 }
0x24e0   :  { %8913 = vmatprep.subr.mxu1 %v10112_v8 }
0x24e2   :  { %8906 = vmatmul.mubr.msk.f32.vlgmr.msra.gmra.mrb[56].mxu1 %vm346_vm2, %v4700_v5 }
0x24e3   :  { %8914 = vmatpush3.msra.mxu1 %v4881_v25  ;;  %8915 = vmatprep.mubr.msk.f32.mxu1 %vm10113_vm1, %v10112_v8 }
0x24e4   :  { %8923 = vmatprep.subr.mxu1 %v10112_v8 }
0x24e6   :  { %8916 = vmatmul.mubr.msk.f32.vlgmr.msra.gmra.mrb[58].mxu1 %vm346_vm2, %v4879_v58  ;;  %v8143_v58 = vld [vmem:[%s11568_s9 + $0x20] sm:$0xff] }
0x24e7   :  { %8924 = vmatpush3.msra.mxu1 %v5046_v62  ;;  %8925 = vmatprep.mubr.msk.f32.mxu1 %vm10113_vm1, %v10112_v8  ;;  %v9363_v9 = vpack.c.bf16 %v8144_v61, %v8143_v58 }
0x24e8   :  { %8933 = vmatprep.subr.mxu1 %v10112_v8 }
0x24ea   :  { %8926 = vmatmul.mubr.msk.f32.vlgmr.msra.gmra.mrb[60].mxu1 %vm346_vm2, %v5044_v4 }
0x24eb   :  { %8934 = vmatpush3.msra.mxu1 %v5211_v17  ;;  %8935 = vmatprep.mubr.msk.f32.mxu1 %vm10113_vm1, %v10112_v8  ;;  %v11227_v17 = vld [vmem:[#allocation6 + $0x8] sm:$0xff] }
0x24ec   :  { %8943 = vmatprep.subr.mxu1 %v10112_v8 }
0x24ee   :  { %8936 = vmatmul.mubr.msk.f32.vlgmr.msra.gmra.mrb[62].mxu1 %vm346_vm2, %v5209_v63 }
0x24ef   :  { %8944 = vmatpush3.msra.mxu1 %v5376_v14  ;;  %8945 = vmatprep.mubr.msk.f32.mxu1 %vm10113_vm1, %v10112_v8 }
0x24f2   :  { %8946 = vmatmul.mubr.msk.f32.vlgmr.msra.gmra.mrb[64].mxu1 %vm346_vm2, %v5374_v16 }
0x24f3   :  { %8963 = vmatprep.mubr.msk.f32.mxu1 %vm1016_vm3, %v11169_v13 }
0x25ad   :  { %v4443_v18 = vpop.f32.mrb[52].mxu1 }
0x25ae   :  { %4778 = vrot.lane.b32.xlu0 %v4443_v18, %s11604_s18  ;;  %v8887_v19 = vpop.f32.mrb[53].mxu1 }
0x25b1   :  { %v4608_v22 = vpop.f32.mrb[54].mxu1 }
0x25b2   :  { %4782 = vrot.lane.b32.xlu1 %v4608_v22, %s10100_s28  ;;  %v8897_v24 = vpop.f32.mrb[55].mxu1 }
0x25b5   :  { %v4773_v2 = vpop.f32.mrb[56].mxu1 }
0x25b6   :  { %4786 = vrot.lane.b32.xlu1 %v4773_v2, %s10125_s26  ;;  %v8907_v3 = vpop.f32.mrb[57].mxu1 }
0x25b7   :  { %v8147_v3 = vld [vmem:[#allocation9 + $0x1] ss:$0 sm:$0xff] }
0x25b9   :  { %v4952_v29 = vpop.f32.mrb[58].mxu1 }
0x25ba   :  { %v8917_v15 = vpop.f32.mrb[59].mxu1 }
0x25bd   :  { %v5117_v38 = vpop.f32.mrb[60].mxu1 }
0x25be   :  { %5452 = vrot.lane.b32.xlu0 %v5117_v38, %s11604_s18  ;;  %v8927_v36 = vpop.f32.mrb[61].mxu1 }
0x25c1   :  { %v5282_v20 = vpop.f32.mrb[62].mxu1 }
0x25c2   :  { %5456 = vrot.lane.b32.xlu0 %v5282_v20, %s10100_s28  ;;  %v8937_v1 = vpop.f32.mrb[63].mxu1 }
0x25c5   :  { %v5447_v30 = vpop.f32.mrb[64].mxu1 }
0x25c6   :  { %5460 = vrot.lane.b32.xlu1 %v5447_v30, %s10125_s26  ;;  %v8947_v31 = vpop.f32.mrb[65].mxu1 }
0x2620   :  { %v4779_v32 = vpop.permute.xlu0 %4778 }
0x2621   :  { %v4789_v34 = vsel %vm346_vm2, %v11087_v46, %v4779_v32  ;;  %v8150_v46 = vld [vmem:[%s11570_s11 + $0x20] sm:$0xff]  ;;  %s10128_s11 = smov 4  }
0x2622   :  { %v9371_v50 = vpack.c.bf16 %v8151_v48, %v8150_v46 }
0x2624   :  { %v4783_v33 = vpop.permute.xlu1 %4782  ;;  %9372 = vmatprep.subr.bf16.mxu0 %v9371_v50 }
0x2625   :  { %v4790_v35 = vsel %vm1016_vm3, %v4789_v34, %v4783_v33 }
0x2628   :  { %v4787_v37 = vpop.permute.xlu1 %4786 }
0x2629   :  { %v4791_v57 = vsel %vm1018_vm4, %v4790_v35, %v4787_v37 }
0x262a   :  { %8956 = vmatprep.mubr.msk.f32.mxu0 %vm256_vm0, %v4791_v57 }
0x2630   :  { %v5453_v39 = vpop.permute.xlu0 %5452 }
0x2631   :  { %v5463_v43 = vsel %vm346_vm2, %v4952_v29, %v5453_v39 }
0x2634   :  { %v5457_v41 = vpop.permute.xlu0 %5456 }
0x2635   :  { %v5464_v45 = vsel %vm1016_vm3, %v5463_v43, %v5457_v41 }
0x2638   :  { %v5461_v12 = vpop.permute.xlu1 %5460 }
0x2639   :  { %v5465_v47 = vsel %vm1018_vm4, %v5464_v45, %v5461_v12 }
0x263a   :  { %8957 = vmatmul.mubr.msk.f32.vlgmr.msra.gmra.mrb[56].mxu0 %vm256_vm0, %v5465_v47 }
0x263b   :  { %8985 = vmatprep.mubr.msk.f32.mxu0 %vm256_vm0, %v9813_v11  ;;  %9374 = vmatpush3.bf16.msra.mxu0 %v9371_v50 }
0x263c   :  { %9376 = vmatprep.subr.bf16.mxu0 %v9375_v52 }
0x263f   :  { %9378 = vmatpush3.bf16.msra.mxu0 %v9375_v52 }
0x2640   :  { %9383 = vmatprep.subr.bf16.mxu0 %v10126_v59 }
0x2642   :  { %8986 = vmatmul.mubr.msk.f32.vlgmr.msra.gmra.mrb[58].mxu0 %vm256_vm0, %v9814_v44 }
0x2643   :  { %8988 = vmatprep.mubr.msk.f32.mxu0 %vm256_vm0, %v9815_v53 }
0x2646   :  { %8989 = vmatmul.mubr.msk.f32.gmra.mrb[60].mxu0 %vm256_vm0, %v9816_v54 }
0x2647   :  { %9002 = vmatprep.mubr.msk.f32.mxu0 %vm10113_vm1, %v10112_v8 }
0x270d   :  { %v8958_v55 = vpop.f32.mrb[56].mxu0 }
0x270e   :  { %v5548_v56 = vadd.f32 %v8958_v55, %v10941_v40  ;;  %v5538_v5 = vpop.f32.mrb[57].mxu0  ;;  %v8146_v40 = vld [vmem:[%s11568_s9 + $0x38] sm:$0xff] }
0x270f   :  { %v5547_v7 = vadd.f32 %v5538_v5, %v10937_v0  ;;  %v8145_v0 = vld [vmem:[%s11568_s9 + $0x30] sm:$0xff] }
0x2710   :  { %v5556_v25 = vadd.f32 %v8140_v42, %v5548_v56  ;;  %v9367_v63 = vpack.c.bf16 %v8146_v40, %v8145_v0 }
0x2711   :  { %v5555_v62 = vadd.f32 %v8140_v42, %v5547_v7 }
0x2713   :  { %v9359_v4 = vpack.c.bf16 %v5556_v25, %v5555_v62 }
0x2715   :  { %9360 = vmatprep.subr.bf16.mxu1 %v9359_v4  ;;  %v8987_v14 = vpop.f32.mrb[58].mxu0 }
0x2716   :  { %9362 = vmatpush3.bf16.msra.mxu1 %v9359_v4  ;;  %v5813_v16 = vadd.f32 %v8987_v14, %v11238_v6  ;;  %v5807_v18 = vpop.f32.mrb[59].mxu0 }
0x2717   :  { %9364 = vmatprep.subr.bf16.mxu1 %v9363_v9  ;;  %v5808_v19 = vadd.f32 %v11238_v6, %v5807_v18 }
0x2719   :  { %8964 = vmatmul.mubr.msk.f32.vlgmr.msra.gmra.mrb[66].mxu1 %vm1016_vm3, %v11227_v17  ;;  %v11242_v60 = vpack.i.bf16 %v5813_v16, %v5808_v19  ;;  %v9380_v24 = vpack.c.bf16 %v5813_v16, %v5808_v19  ;;  %v8990_v54 = vpop.f32.mrb[60].mxu0 }
0x271a   :  { %9366 = vmatpush3.bf16.msra.mxu1 %v9363_v9  ;;  %v5817_v42 = vpop.f32.mrb[61].mxu0 }
0x271b   :  { %9368 = vmatprep.subr.bf16.mxu1 %v9367_v63  ;;  %9611 = vrot.lane.b32.xlu0 %v11242_v60, %s10117_s1  ;;  %v11311_v14 = vadd.f32 %v11238_v6, %v5817_v42 }
0x271e   :  { %9370 = vmatpush3.bf16.msra.mxu1 %v9367_v63  ;;  %v11308_v63 = vadd.f32 %v8990_v54, %v11238_v6 }
0x271f   :  { %9379 = vmatprep.subr.bf16.mxu1 %v10126_v59 }
0x2720   :  { %v11315_v16 = vpack.i.bf16 %v11308_v63, %v11311_v14  ;;  %v9408_v18 = vpack.c.bf16 %v11308_v63, %v11311_v14 }
0x278d   :  { %v9612_v27 = vpop.permute.xlu0 %9611 }
0x278e   :  { %v9614_v2 = vunpack.i.h.bf16 %v9612_v27  ;;  %v9613_v28 = vunpack.i.l.bf16 %v9612_v27 }
0x2790   :  { %v9387_v36 = vpack.c.bf16 %v9614_v2, %v9613_v28 }
0x27ec   :  { %v11246_v21 = vpop.f32.mrb[66].mxu1 }
0x27ed   :  { %v11248_v22 = vpop.f32.mrb[67].mxu1  ;;  %v11254_v26 = vsub.f32 %v5556_v25, %v11246_v21 }
0x27ee   :  { %v11251_v23 = vsub.f32 %v5555_v62, %v11248_v22 }
0x27f0   :  { %8974 = vmatprep.mubr.msk.f32.mxu1 %vm256_vm0, %v11251_v23 }
0x27f1   :  { %8975 = vmatmul.mubr.msk.f32.vlgmr.msra.gmra.mrb[68].mxu1 %vm256_vm0, %v11254_v26 }
0x27f2   :  { %9382 = vmatpush3.bf16.xpose.msk.msra.mxu1 %vm10702_vm5, %v9380_v24  ;;  %8995 = vmatprep.mubr.msk.f32.mxu1 %vm10113_vm1, %v10112_v8 }
0x27f3   :  { %9386 = vmatprep.subr.bf16.mxu1 %v10126_v59 }
0x28c4   :  { %v8976_v29 = vpop.f32.mrb[68].mxu1 }
0x28c5   :  { %v11265_v15 = vadd.f32 %v8976_v29, %v8147_v3  ;;  %v5719_v38 = vpop.f32.mrb[69].mxu1 }
0x28c6   :  { %v11267_v20 = vadd.f32 %v8147_v3, %v5719_v38 }
0x28c8   :  { %6002 = vrot.lane.b32.xlu1 %v11267_v20, %s10117_s1  ;;  %8996 = vmatmul.mubr.msk.f32.vlgmr.msra.gmra.mrb[70].mxu1 %vm346_vm2, %v11267_v20 }
0x28c9   :  { %9389 = vmatpush3.bf16.xpose.msk.msra.mxu1 %vm10702_vm5, %v9387_v36  ;;  %9009 = vmatprep.mubr.msk.f32.mxu1 %vm10113_vm1, %v10112_v8 }
0x28ca   :  { %9397 = vmatprep.subr.bf16.mxu1 %v10126_v59 }
0x293a   :  { %v6003_v1 = vpop.permute.xlu1 %6002 }
0x293b   :  { %9010 = vmatmul.mubr.msk.f32.vlgmr.msra.gmra.mrb[72].mxu1 %vm346_vm2, %v6003_v1 }
0x293c   :  { %9030 = vmatprep.mubr.msk.f32.mxu1 %vm10113_vm1, %v10112_v8 }
0x299b   :  { %v5908_v30 = vpop.f32.mrb[70].mxu1 }
0x299c   :  { %v8997_v31 = vpop.f32.mrb[71].mxu1  ;;  %v5912_v32 = vsel %vm1016_vm3, %v5908_v30, -inf }
0x299d   :  { %5913 = vmax.xlane.f32.xlu0 %v5912_v32 }
0x2a0e   :  { %v6080_v33 = vpop.f32.mrb[72].mxu1 }
0x2a0f   :  { %v9011_v34 = vpop.f32.mrb[73].mxu1  ;;  %v6084_v35 = vsel %vm1016_vm3, %v6080_v33, -inf }
0x2a10   :  { %6085 = vmax.xlane.f32.xlu1 %v6084_v35 }
0x2a21   :  { %9616 = vrot.lane.b32.xlu1 %v11242_v60, %s10115_s30 }
0x2a25   :  { %9626 = vrot.lane.b32.xlu1 %v11242_v60, %s10119_s27 }
0x2a29   :  { %6174 = vrot.lane.b32.xlu1 %v11267_v20, %s10119_s27 }
0x2a2a   :  { %v5914_v37 = vpop.xlane.xlu0 %5913 }
0x2a2b   :  { %v5915_v57 = vsub.f32 %v5908_v30, %v5914_v37 }
0x2a2d   :  { %v5916_v39 = vmul.f32 1.442695, %v5915_v57 }
0x2a2f   :  { %9776 = vpow2.f32 %v5916_v39 }
0x2a39   :  { %v9777_v41 = vpop.eup %9776 }
0x2a3a   :  { %v5918_v43 = vsel %vm1016_vm3, %v9777_v41, 0.0 }
0x2a3b   :  { %5919 = vadd.xlane.f32.xlu0 %v5918_v43 }
0x2a9d   :  { %v6086_v45 = vpop.xlane.xlu1 %6085 }
0x2a9e   :  { %v6087_v12 = vsub.f32 %v6080_v33, %v6086_v45 }
0x2aa0   :  { %v6088_v47 = vmul.f32 1.442695, %v6087_v12 }
0x2aa1   :  { %v9617_v11 = vpop.permute.xlu1 %9616 }
0x2aa2   :  { %9778 = vpow2.f32 %v6088_v47  ;;  %v9619_v46 = vunpack.i.h.bf16 %v9617_v11  ;;  %v9618_v48 = vunpack.i.l.bf16 %v9617_v11 }
0x2aa4   :  { %v9384_v49 = vpack.c.bf16 %v9619_v46, %v9618_v48 }
0x2aa5   :  { %v9627_v58 = vpop.permute.xlu1 %9626 }
0x2aa6   :  { %9385 = vmatpush3.bf16.msra.mxu0 %v9384_v49  ;;  %v9629_v62 = vunpack.i.h.bf16 %v9627_v58  ;;  %v9628_v4 = vunpack.i.l.bf16 %v9627_v58 }
0x2aa7   :  { %9390 = vmatprep.subr.bf16.mxu0 %v10126_v59 }
0x2aa8   :  { %v9394_v0 = vpack.c.bf16 %v9629_v62, %v9628_v4 }
0x2aa9   :  { %v6175_v40 = vpop.permute.xlu1 %6174 }
0x2aac   :  { %v9779_v50 = vpop.eup %9778 }
0x2aad   :  { %v6090_v51 = vsel %vm1016_vm3, %v9779_v50, 0.0 }
0x2aae   :  { %6091 = vadd.xlane.f32.xlu0 %v6090_v51 }
0x2ac4   :  { %9621 = vrot.lane.b32.xlu0 %v11242_v60, %s10116_s4 }
0x2ac8   :  { %v5920_v52 = vpop.xlane.xlu0 %5919 }
0x2ac9   :  { %9780 = vrcp.f32 %v5920_v52 }
0x2ad3   :  { %v9781_v44 = vpop.eup %9780 }
0x2ad4   :  { %v5922_v53 = vmul.f32 %v9781_v44, %v9777_v41 }
0x2ad6   :  { %9003 = vmatmul.mubr.msk.f32.vlgmr.msra.gmra.mrb[62].mxu0 %vm1016_vm3, %v5922_v53 }
0x2ad7   :  { %9016 = vmatprep.mubr.msk.f32.mxu0 %vm10113_vm1, %v10112_v8 }
0x2b3b   :  { %v6092_v55 = vpop.xlane.xlu0 %6091 }
0x2b3c   :  { %9782 = vrcp.f32 %v6092_v55 }
0x2b3f   :  { %v9622_v56 = vpop.permute.xlu0 %9621 }
0x2b40   :  { %v9624_v5 = vunpack.i.h.bf16 %v9622_v56  ;;  %v9623_v7 = vunpack.i.l.bf16 %v9622_v56 }
0x2b42   :  { %v9391_v25 = vpack.c.bf16 %v9624_v5, %v9623_v7 }
0x2b44   :  { %9392 = vmatpush3.bf16.msra.mxu0 %v9391_v25 }
0x2b45   :  { %9393 = vmatprep.subr.bf16.mxu0 %v10126_v59 }
0x2b46   :  { %v9783_v61 = vpop.eup %9782 }
0x2b47   :  { %v6094_v9 = vmul.f32 %v9783_v61, %v9779_v50 }
0x2b49   :  { %9017 = vmatmul.mubr.msk.f32.vlgmr.msra.gmra.mrb[64].mxu0 %vm1016_vm3, %v6094_v9 }
0x2b4a   :  { %9023 = vmatprep.mubr.msk.f32.mxu0 %vm10113_vm1, %v10112_v8 }
0x2b4d   :  { %9396 = vmatpush3.bf16.xpose.msk.msra.mxu0 %vm10702_vm5, %v9394_v0 }
0x2b4e   :  { %9404 = vmatprep.subr.bf16.mxu0 %v10126_v59 }
0x2b54   :  { %9024 = vmatmul.mubr.msk.f32.vlgmr.msra.gmra.mrb[66].mxu0 %vm346_vm2, %v6175_v40 }
0x2b55   :  { %9044 = vmatprep.mubr.msk.f32.mxu0 %vm10113_vm1, %v10112_v8 }
0x2ba9   :  { %v11319_v19 = vpop.f32.mrb[62].mxu0 }
0x2baa   :  { %v9004_v24 = vpop.f32.mrb[63].mxu0 }
0x2c1c   :  { %v11321_v27 = vpop.f32.mrb[64].mxu0 }
0x2c1d   :  { %v9018_v2 = vpop.f32.mrb[65].mxu0 }
0x2c27   :  { %v6252_v28 = vpop.f32.mrb[66].mxu0 }
0x2c28   :  { %v9025_v3 = vpop.f32.mrb[67].mxu0  ;;  %v6256_v29 = vsel %vm1016_vm3, %v6252_v28, -inf }
0x2c29   :  { %6257 = vmax.xlane.f32.xlu0 %v6256_v29 }
0x2c3f   :  { %9631 = vrot.lane.b32.xlu0 %v11242_v60, %s10118_s13 }
0x2c43   :  { %6346 = vrot.lane.b32.xlu0 %v11267_v20, %s10120_s14 }
0x2cb6   :  { %v6258_v6 = vpop.xlane.xlu0 %6257 }
0x2cb7   :  { %v6259_v38 = vsub.f32 %v6252_v28, %v6258_v6 }
0x2cb9   :  { %v6260_v36 = vmul.f32 1.442695, %v6259_v38 }
0x2cba   :  { %v9632_v1 = vpop.permute.xlu0 %9631 }
0x2cbb   :  { %9784 = vpow2.f32 %v6260_v36  ;;  %v9634_v30 = vunpack.i.h.bf16 %v9632_v1  ;;  %v9633_v31 = vunpack.i.l.bf16 %v9632_v1 }
0x2cbd   :  { %v9398_v32 = vpack.c.bf16 %v9634_v30, %v9633_v31 }
0x2cbe   :  { %v6347_v45 = vpop.permute.xlu0 %6346 }
0x2cbf   :  { %9399 = vmatpush3.bf16.msra.mxu1 %v9398_v32 }
0x2cc0   :  { %9400 = vmatprep.subr.bf16.mxu1 %v10126_v59 }
0x2cc5   :  { %v9785_v33 = vpop.eup %9784 }
0x2cc6   :  { %v6262_v34 = vsel %vm1016_vm3, %v9785_v33, 0.0 }
0x2cc7   :  { %6263 = vadd.xlane.f32.xlu1 %v6262_v34 }
0x2cd8   :  { %9636 = vrot.lane.b32.xlu1 %v11242_v60, %s10120_s14 }
0x2d54   :  { %v6264_v35 = vpop.xlane.xlu1 %6263 }
0x2d55   :  { %9786 = vrcp.f32 %v6264_v35 }
0x2d58   :  { %v9637_v20 = vpop.permute.xlu1 %9636 }
0x2d59   :  { %v9639_v37 = vunpack.i.h.bf16 %v9637_v20  ;;  %v9638_v57 = vunpack.i.l.bf16 %v9637_v20 }
0x2d5b   :  { %v9401_v43 = vpack.c.bf16 %v9639_v37, %v9638_v57 }
0x2d5f   :  { %v9787_v39 = vpop.eup %9786 }
0x2d60   :  { %v6266_v41 = vmul.f32 %v9787_v39, %v9785_v33 }
0x2d62   :  { %9031 = vmatmul.mubr.msk.f32.vlgmr.msra.gmra.mrb[74].mxu1 %vm1016_vm3, %v6266_v41 }
0x2d63   :  { %9403 = vmatpush3.bf16.xpose.msk.msra.mxu1 %vm10702_vm5, %v9401_v43  ;;  %9037 = vmatprep.mubr.msk.f32.mxu1 %vm10113_vm1, %v10112_v8 }
0x2d64   :  { %9411 = vmatprep.subr.bf16.mxu1 %v10126_v59 }
0x2d6a   :  { %9038 = vmatmul.mubr.msk.f32.vlgmr.msra.gmra.mrb[76].mxu1 %vm346_vm2, %v6347_v45 }
0x2d6b   :  { %9058 = vmatprep.mubr.msk.f32.mxu1 %vm10113_vm1, %v10112_v8 }
0x2e35   :  { %v11341_v12 = vpop.f32.mrb[74].mxu1 }
0x2e36   :  { %v9032_v47 = vpop.f32.mrb[75].mxu1 }
0x2e3d   :  { %v6424_v11 = vpop.f32.mrb[76].mxu1 }
0x2e3e   :  { %v9039_v46 = vpop.f32.mrb[77].mxu1  ;;  %v6428_v48 = vsel %vm1016_vm3, %v6424_v11, -inf }
0x2e3f   :  { %6429 = vmax.xlane.f32.xlu1 %v6428_v48 }
0x2ecc   :  { %v6430_v49 = vpop.xlane.xlu1 %6429 }
0x2ecd   :  { %v6431_v50 = vsub.f32 %v6424_v11, %v6430_v49 }
0x2ecf   :  { %v6432_v51 = vmul.f32 1.442695, %v6431_v50 }
0x2ed1   :  { %9788 = vpow2.f32 %v6432_v51 }
0x2edb   :  { %v9789_v52 = vpop.eup %9788 }
0x2edc   :  { %v6434_v44 = vsel %vm1016_vm3, %v9789_v52, 0.0 }
0x2edd   :  { %6435 = vadd.xlane.f32.xlu0 %v6434_v44 }
0x2ef3   :  { %9641 = vrot.lane.b32.xlu0 %v11242_v60, %s10121_s12 }
0x2ef7   :  { %9651 = vrot.lane.b32.xlu0 %v11315_v16, %s10117_s1 }
0x2efb   :  { %6702 = vrot.lane.b32.xlu0 %v11265_v15, %s10117_s1 }
0x2f6a   :  { %v6436_v53 = vpop.xlane.xlu0 %6435 }
0x2f6b   :  { %9790 = vrcp.f32 %v6436_v53 }
0x2f6e   :  { %v9642_v54 = vpop.permute.xlu0 %9641 }
0x2f6f   :  { %v9644_v42 = vunpack.i.h.bf16 %v9642_v54  ;;  %v9643_v55 = vunpack.i.l.bf16 %v9642_v54 }
0x2f71   :  { %v9405_v56 = vpack.c.bf16 %v9644_v42, %v9643_v55 }
0x2f72   :  { %v9652_v3 = vpop.permute.xlu0 %9651 }
0x2f73   :  { %9406 = vmatpush3.bf16.msra.mxu0 %v9405_v56  ;;  %v9654_v6 = vunpack.i.h.bf16 %v9652_v3  ;;  %v9653_v38 = vunpack.i.l.bf16 %v9652_v3 }
0x2f74   :  { %9407 = vmatprep.subr.bf16.mxu0 %v10126_v59 }
0x2f75   :  { %v9791_v5 = vpop.eup %9790  ;;  %v9415_v1 = vpack.c.bf16 %v9654_v6, %v9653_v38 }
0x2f76   :  { %v6438_v7 = vmul.f32 %v9791_v5, %v9789_v52  ;;  %v6703_v30 = vpop.permute.xlu0 %6702 }
0x2f78   :  { %9045 = vmatmul.mubr.msk.f32.vlgmr.msra.gmra.mrb[68].mxu0 %vm1016_vm3, %v6438_v7 }
0x2f79   :  { %9051 = vmatprep.mubr.msk.f32.mxu0 %vm10113_vm1, %v10112_v8 }
0x2f7c   :  { %9410 = vmatpush3.bf16.xpose.msk.msra.mxu0 %vm10702_vm5, %v9408_v18 }
0x2f7d   :  { %9418 = vmatprep.subr.bf16.mxu0 %v10126_v59 }
0x2f83   :  { %9052 = vmatmul.mubr.msk.f32.vlgmr.msra.gmra.mrb[70].mxu0 %vm346_vm2, %v11265_v15 }
0x2f84   :  { %9072 = vmatprep.mubr.msk.f32.mxu0 %vm10113_vm1, %v10112_v8 }
0x304b   :  { %v11365_v60 = vpop.f32.mrb[68].mxu0 }
0x304c   :  { %v9046_v25 = vpop.f32.mrb[69].mxu0 }
0x3056   :  { %v6608_v58 = vpop.f32.mrb[70].mxu0 }
0x3057   :  { %v9053_v61 = vpop.f32.mrb[71].mxu0  ;;  %v6612_v62 = vsel %vm1016_vm3, %v6608_v58, -inf }
0x3058   :  { %6613 = vmax.xlane.f32.xlu1 %v6612_v62 }
0x30e5   :  { %v6614_v4 = vpop.xlane.xlu1 %6613 }
0x30e6   :  { %v6615_v9 = vsub.f32 %v6608_v58, %v6614_v4 }
0x30e8   :  { %v6616_v0 = vmul.f32 1.442695, %v6615_v9 }
0x30ea   :  { %9792 = vpow2.f32 %v6616_v0 }
0x30f4   :  { %v9793_v40 = vpop.eup %9792 }
0x30f5   :  { %v6618_v63 = vsel %vm1016_vm3, %v9793_v40, 0.0 }
0x30f6   :  { %6619 = vadd.xlane.f32.xlu1 %v6618_v63 }
0x3107   :  { %9646 = vrot.lane.b32.xlu1 %v11315_v16, %s10115_s30 }
0x3183   :  { %v6620_v14 = vpop.xlane.xlu1 %6619 }
0x3184   :  { %9794 = vrcp.f32 %v6620_v14 }
0x3187   :  { %v9647_v18 = vpop.permute.xlu1 %9646 }
0x3188   :  { %v9649_v24 = vunpack.i.h.bf16 %v9647_v18  ;;  %v9648_v2 = vunpack.i.l.bf16 %v9647_v18 }
0x318a   :  { %v9412_v28 = vpack.c.bf16 %v9649_v24, %v9648_v2 }
0x318c   :  { %9413 = vmatpush3.bf16.msra.mxu1 %v9412_v28 }
0x318d   :  { %9414 = vmatprep.subr.bf16.mxu1 %v10126_v59 }
0x318e   :  { %v9795_v29 = vpop.eup %9794 }
0x318f   :  { %v6622_v36 = vmul.f32 %v9795_v29, %v9793_v40 }
0x3191   :  { %9059 = vmatmul.mubr.msk.f32.vlgmr.msra.gmra.mrb[78].mxu1 %vm1016_vm3, %v6622_v36 }
0x3192   :  { %9065 = vmatprep.mubr.msk.f32.mxu1 %vm10113_vm1, %v10112_v8 }
0x3195   :  { %9417 = vmatpush3.bf16.xpose.msk.msra.mxu1 %vm10702_vm5, %v9415_v1 }
0x3196   :  { %9425 = vmatprep.subr.bf16.mxu1 %v10126_v59 }
0x319c   :  { %9066 = vmatmul.mubr.msk.f32.vlgmr.msra.gmra.mrb[80].mxu1 %vm346_vm2, %v6703_v30 }
0x319d   :  { %9086 = vmatprep.mubr.msk.f32.mxu1 %vm10113_vm1, %v10112_v8 }
0x3264   :  { %v11381_v31 = vpop.f32.mrb[78].mxu1 }
0x3265   :  { %v9060_v32 = vpop.f32.mrb[79].mxu1 }
0x326f   :  { %v6780_v33 = vpop.f32.mrb[80].mxu1 }
0x3270   :  { %v9067_v34 = vpop.f32.mrb[81].mxu1  ;;  %v6784_v35 = vsel %vm1016_vm3, %v6780_v33, -inf }
0x3271   :  { %6785 = vmax.xlane.f32.xlu1 %v6784_v35 }
0x3282   :  { %9661 = vrot.lane.b32.xlu1 %v11315_v16, %s10119_s27 }
0x3286   :  { %6874 = vrot.lane.b32.xlu1 %v11265_v15, %s10119_s27 }
0x32fe   :  { %v6786_v20 = vpop.xlane.xlu1 %6785 }
0x32ff   :  { %v6787_v37 = vsub.f32 %v6780_v33, %v6786_v20 }
0x3301   :  { %v6788_v57 = vmul.f32 1.442695, %v6787_v37 }
0x3302   :  { %v9662_v48 = vpop.permute.xlu1 %9661 }
0x3303   :  { %9796 = vpow2.f32 %v6788_v57  ;;  %v9664_v50 = vunpack.i.h.bf16 %v9662_v48  ;;  %v9663_v51 = vunpack.i.l.bf16 %v9662_v48  ;;  %v5830_v48 = vld [vmem:[#allocation12 + $0x38] sm:$0xff] }
0x3305   :  { %v9422_v44 = vpack.c.bf16 %v9664_v50, %v9663_v51 }
0x3306   :  { %v6875_v53 = vpop.permute.xlu1 %6874 }
0x330d   :  { %v9797_v39 = vpop.eup %9796 }
0x330e   :  { %v6790_v41 = vsel %vm1016_vm3, %v9797_v39, 0.0 }
0x330f   :  { %6791 = vadd.xlane.f32.xlu0 %v6790_v41 }
0x3325   :  { %9656 = vrot.lane.b32.xlu0 %v11315_v16, %s10116_s4 }
0x339c   :  { %v6792_v43 = vpop.xlane.xlu0 %6791 }
0x339d   :  { %9798 = vrcp.f32 %v6792_v43 }
0x33a0   :  { %v9657_v45 = vpop.permute.xlu0 %9656 }
0x33a1   :  { %v9659_v47 = vunpack.i.h.bf16 %v9657_v45  ;;  %v9658_v11 = vunpack.i.l.bf16 %v9657_v45  ;;  %v5827_v45 = vld [vmem:[#allocation12 + $0x20] sm:$0xff] }
0x33a3   :  { %v9419_v46 = vpack.c.bf16 %v9659_v47, %v9658_v11  ;;  %v5828_v47 = vld [vmem:[#allocation12 + $0x28] sm:$0xff]  ;;  %v5829_v11 = vld [vmem:[#allocation12 + $0x30] sm:$0xff] }
0x33a5   :  { %9420 = vmatpush3.bf16.msra.mxu0 %v9419_v46  ;;  %v9435_v46 = vpack.c.bf16 %v5828_v47, %v5827_v45  ;;  %v8210_v47 = vld [vmem:[%s11576_s17 + $0x80] sm:$0xff] }
0x33a6   :  { %9421 = vmatprep.subr.bf16.mxu0 %v10126_v59 }
0x33a7   :  { %v9799_v49 = vpop.eup %9798 }
0x33a8   :  { %v6794_v52 = vmul.f32 %v9799_v49, %v9797_v39  ;;  %v9439_v49 = vpack.c.bf16 %v5830_v48, %v5829_v11  ;;  %v8211_v11 = vld [vmem:[%s11576_s17 + $0x88] sm:$0xff]  ;;  %v8212_v48 = vld [vmem:[%s11576_s17 + $0x90] sm:$0xff] }
0x33aa   :  { %9073 = vmatmul.mubr.msk.f32.vlgmr.msra.gmra.mrb[72].mxu0 %vm1016_vm3, %v6794_v52 }
0x33ab   :  { %9079 = vmatprep.mubr.msk.f32.mxu0 %vm10113_vm1, %v10112_v8 }
0x33ae   :  { %9424 = vmatpush3.bf16.xpose.msk.msra.mxu0 %vm10702_vm5, %v9422_v44 }
0x33af   :  { %9432 = vmatprep.subr.bf16.mxu0 %v10126_v59 }
0x33b5   :  { %9080 = vmatmul.mubr.msk.f32.vlgmr.msra.gmra.mrb[74].mxu0 %vm346_vm2, %v6875_v53 }
0x33b6   :  { %9100 = vmatprep.mubr.msk.f32.mxu0 %vm10113_vm1, %v10112_v8 }
0x347d   :  { %v6870_v54 = vpop.f32.mrb[72].mxu0 }
0x347e   :  { %v9074_v42 = vpop.f32.mrb[73].mxu0 }
0x3488   :  { %v6952_v55 = vpop.f32.mrb[74].mxu0 }
0x3489   :  { %v9081_v56 = vpop.f32.mrb[75].mxu0  ;;  %v6956_v5 = vsel %vm1016_vm3, %v6952_v55, -inf }
0x348a   :  { %6957 = vmax.xlane.f32.xlu0 %v6956_v5 }
0x34a0   :  { %9666 = vrot.lane.b32.xlu0 %v11315_v16, %s10118_s13  ;;  %s11611_s13 = sld [smem:[#allocation32_spill]] }
0x34a4   :  { %7046 = vrot.lane.b32.xlu0 %v11265_v15, %s10120_s14 }
0x3517   :  { %v6958_v7 = vpop.xlane.xlu0 %6957 }
0x3518   :  { %v6959_v25 = vsub.f32 %v6952_v55, %v6958_v7  ;;  %v8193_v55 = vld [vmem:[#allocation13 + $0x1] ss:$0 sm:$0xff] }
0x351a   :  { %v6960_v58 = vmul.f32 1.442695, %v6959_v25 }
0x351b   :  { %v9667_v61 = vpop.permute.xlu0 %9666 }
0x351c   :  { %9800 = vpow2.f32 %v6960_v58  ;;  %v9669_v62 = vunpack.i.h.bf16 %v9667_v61  ;;  %v9668_v4 = vunpack.i.l.bf16 %v9667_v61  ;;  %v8196_v61 = vld [vmem:[%s11574_s15 + $0x20] sm:$0xff] }
0x351e   :  { %v9426_v9 = vpack.c.bf16 %v9669_v62, %v9668_v4 }
0x3520   :  { %9427 = vmatpush3.bf16.msra.mxu1 %v9426_v9 }
0x3521   :  { %9428 = vmatprep.subr.bf16.mxu1 %v10126_v59  ;;  %v7047_v59 = vpop.permute.xlu0 %7046 }
0x3526   :  { %v9801_v0 = vpop.eup %9800 }
0x3527   :  { %v6962_v40 = vsel %vm1016_vm3, %v9801_v0, 0.0 }
0x3528   :  { %6963 = vadd.xlane.f32.xlu1 %v6962_v40  ;;  %v7490_v40 = vld [vmem:[#allocation15 + $0x20] sm:$0xff] }
0x3539   :  { %9671 = vrot.lane.b32.xlu1 %v11315_v16, %s10120_s14 }
0x35b5   :  { %v6964_v63 = vpop.xlane.xlu1 %6963 }
0x35b6   :  { %9802 = vrcp.f32 %v6964_v63  ;;  %v7491_v63 = vld [vmem:[#allocation15 + $0x28] sm:$0xff] }
0x35b9   :  { %v9672_v15 = vpop.permute.xlu1 %9671 }
0x35ba   :  { %v9674_v14 = vunpack.i.h.bf16 %v9672_v15  ;;  %v9673_v18 = vunpack.i.l.bf16 %v9672_v15  ;;  %v9455_v15 = vpack.c.bf16 %v7491_v63, %v7490_v40  ;;  %v7821_v40 = vld [vmem:[%s11611_s13] sm:$0xff] }
0x35bc   :  { %v9429_v28 = vpack.c.bf16 %v9674_v14, %v9673_v18 }
0x35c0   :  { %v9803_v24 = vpop.eup %9802 }
0x35c1   :  { %v6966_v2 = vmul.f32 %v9803_v24, %v9801_v0 }
0x35c3   :  { %9087 = vmatmul.mubr.msk.f32.vlgmr.msra.gmra.mrb[82].mxu1 %vm1016_vm3, %v6966_v2 }
0x35c4   :  { %9431 = vmatpush3.bf16.xpose.msk.msra.mxu1 %vm10702_vm5, %v9429_v28  ;;  %9093 = vmatprep.mubr.msk.f32.mxu1 %vm10113_vm1, %v10112_v8 }
0x35cb   :  { %9094 = vmatmul.mubr.msk.f32.vlgmr.msra.gmra.mrb[84].mxu1 %vm346_vm2, %v7047_v59 }
0x35cc   :  { %9118 = vmatprep.mubr.msk.f32.mxu1 %vm1016_vm3, %v11169_v13 }
0x3696   :  { %v7042_v3 = vpop.f32.mrb[82].mxu1 }
0x3697   :  { %v9088_v29 = vpop.f32.mrb[83].mxu1 }
0x3698   :  { %v7493_v29 = vld [vmem:[#allocation15 + $0x38] sm:$0xff] }
0x369e   :  { %v7124_v6 = vpop.f32.mrb[84].mxu1 }
0x369f   :  { %v9095_v38 = vpop.f32.mrb[85].mxu1  ;;  %v7128_v36 = vsel %vm1016_vm3, %v7124_v6, -inf }
0x36a0   :  { %7129 = vmax.xlane.f32.xlu1 %v7128_v36 }
0x36b1   :  { %6519 = vrot.lane.b32.xlu1 %v11321_v27, %s11604_s18 }
0x36b5   :  { %6523 = vrot.lane.b32.xlu1 %v11341_v12, %s10100_s28 }
0x36b9   :  { %6527 = vrot.lane.b32.xlu1 %v11365_v60, %s10125_s26 }
0x372d   :  { %v7130_v8 = vpop.xlane.xlu1 %7129 }
0x372e   :  { %v7131_v10 = vsub.f32 %v7124_v6, %v7130_v8 }
0x3730   :  { %v7132_v1 = vmul.f32 1.442695, %v7131_v10 }
0x3731   :  { %v6520_v27 = vpop.permute.xlu1 %6519 }
0x3732   :  { %9804 = vpow2.f32 %v7132_v1  ;;  %v6530_v39 = vsel %vm346_vm2, %v11319_v19, %v6520_v27 }
0x3735   :  { %v6524_v60 = vpop.permute.xlu1 %6523 }
0x3739   :  { %v6528_v57 = vpop.permute.xlu1 %6527 }
0x373c   :  { %v9805_v30 = vpop.eup %9804 }
0x373d   :  { %v7134_v32 = vsel %vm1016_vm3, %v9805_v30, 0.0 }
0x373e   :  { %7135 = vadd.xlane.f32.xlu0 %v7134_v32 }
0x3754   :  { %9676 = vrot.lane.b32.xlu0 %v11315_v16, %s10121_s12  ;;  %v6531_v16 = vsel %vm1016_vm3, %v6530_v39, %v6524_v60  ;;  %v8207_v39 = vld [vmem:[%s11576_s17 + $0x68] sm:$0xff] }
0x3755   :  { %v6532_v43 = vsel %vm1018_vm4, %v6531_v16, %v6528_v57  ;;  %v8206_v57 = vld [vmem:[%s11576_s17 + $0x60] sm:$0xff] }
0x3756   :  { %v9467_v16 = vpack.c.bf16 %v8207_v39, %v8206_v57 }
0x3758   :  { %7219 = vrot.lane.b32.xlu0 %v6870_v54, %s11604_s18 }
0x375c   :  { %7223 = vrot.lane.b32.xlu0 %v7042_v3, %s10100_s28  ;;  %v7492_v3 = vld [vmem:[#allocation15 + $0x30] sm:$0xff] }
0x375d   :  { %v9459_v6 = vpack.c.bf16 %v7493_v29, %v7492_v3 }
0x37cb   :  { %v7136_v12 = vpop.xlane.xlu0 %7135 }
0x37cc   :  { %9806 = vrcp.f32 %v7136_v12 }
0x37cf   :  { %v9677_v33 = vpop.permute.xlu0 %9676 }
0x37d0   :  { %v9679_v34 = vunpack.i.h.bf16 %v9677_v33  ;;  %v9678_v35 = vunpack.i.l.bf16 %v9677_v33 }
0x37d2   :  { %v9433_v20 = vpack.c.bf16 %v9679_v34, %v9678_v35 }
0x37d3   :  { %v7220_v51 = vpop.permute.xlu0 %7219 }
0x37d4   :  { %9434 = vmatpush3.bf16.msra.mxu0 %v9433_v20  ;;  %v7230_v44 = vsel %vm346_vm2, %v11381_v31, %v7220_v51  ;;  %v8197_v31 = vld [vmem:[%s11574_s15 + $0x28] sm:$0xff] }
0x37d5   :  { %9436 = vmatprep.subr.bf16.mxu0 %v9435_v46  ;;  %v9447_v9 = vpack.c.bf16 %v8197_v31, %v8196_v61 }
0x37d6   :  { %v9807_v37 = vpop.eup %9806 }
0x37d7   :  { %v7138_v41 = vmul.f32 %v9807_v37, %v9805_v30  ;;  %v7224_v52 = vpop.permute.xlu0 %7223 }
0x37d8   :  { %v7231_v53 = vsel %vm1016_vm3, %v7230_v44, %v7224_v52 }
0x37d9   :  { %9101 = vmatmul.mubr.msk.f32.vlgmr.msra.gmra.mrb[76].mxu0 %vm1016_vm3, %v7138_v41  ;;  %v8208_v41 = vld [vmem:[%s11576_s17 + $0x70] sm:$0xff] }
0x37da   :  { %9111 = vmatprep.mubr.msk.f32.mxu0 %vm256_vm0, %v6532_v43  ;;  %9438 = vmatpush3.bf16.msra.mxu0 %v9435_v46  ;;  %v8209_v43 = vld [vmem:[%s11576_s17 + $0x78] sm:$0xff]  ;;  %v9475_v46 = vpack.c.bf16 %v8211_v11, %v8210_v47 }
0x37db   :  { %9440 = vmatprep.subr.bf16.mxu0 %v9439_v49  ;;  %v9471_v45 = vpack.c.bf16 %v8209_v43, %v8208_v41 }
0x37de   :  { %9442 = vmatpush3.bf16.msra.mxu0 %v9439_v49  ;;  %v8213_v49 = vld [vmem:[%s11576_s17 + $0x98] sm:$0xff] }
0x37df   :  { %9456 = vmatprep.subr.bf16.mxu0 %v9455_v15 }
0x38ac   :  { %v7214_v19 = vpop.f32.mrb[76].mxu0 }
0x38ad   :  { %7227 = vrot.lane.b32.xlu1 %v7214_v19, %s10125_s26  ;;  %v9102_v50 = vpop.f32.mrb[77].mxu0  ;;  %v9479_v19 = vpack.c.bf16 %v8213_v49, %v8212_v48  ;;  %v8224_v48 = vld [vmem:[#allocation19] ss:$0 sm:$0xff] }
0x391f   :  { %v7228_v54 = vpop.permute.xlu1 %7227 }
0x3920   :  { %v7232_v42 = vsel %vm1018_vm4, %v7231_v53, %v7228_v54 }
0x3921   :  { %9112 = vmatmul.mubr.msk.f32.vlgmr.msra.gmra.mrb[78].mxu0 %vm256_vm0, %v7232_v42 }
0x3922   :  { %9458 = vmatpush3.bf16.msra.mxu0 %v9455_v15 }
0x3923   :  { %9460 = vmatprep.subr.bf16.mxu0 %v9459_v6 }
0x3926   :  { %9462 = vmatpush3.bf16.msra.mxu0 %v9459_v6 }
0x3927   :  { %9468 = vmatprep.subr.bf16.mxu0 %v9467_v16 }
0x39f4   :  { %v9113_v56 = vpop.f32.mrb[78].mxu0 }
0x39f5   :  { %v7315_v5 = vadd.f32 %v9113_v56, %v11254_v26  ;;  %v7305_v7 = vpop.f32.mrb[79].mxu0  ;;  %v8199_v26 = vld [vmem:[%s11574_s15 + $0x38] sm:$0xff] }
0x39f6   :  { %v7314_v25 = vadd.f32 %v7305_v7, %v11251_v23  ;;  %v8198_v23 = vld [vmem:[%s11574_s15 + $0x30] sm:$0xff] }
0x39f7   :  { %v7323_v58 = vadd.f32 %v8193_v55, %v7315_v5  ;;  %v9451_v0 = vpack.c.bf16 %v8199_v26, %v8198_v23  ;;  %v8216_v23 = vld [vmem:[%s11576_s17 + $0xb0] sm:$0xff]  ;;  %v8217_v26 = vld [vmem:[%s11576_s17 + $0xb8] sm:$0xff] }
0x39f8   :  { %v7322_v62 = vadd.f32 %v8193_v55, %v7314_v25 }
0x39fa   :  { %v9443_v4 = vpack.c.bf16 %v7323_v58, %v7322_v62 }
0x39fc   :  { %9444 = vmatprep.subr.bf16.mxu1 %v9443_v4 }
0x39fd   :  { %9446 = vmatpush3.bf16.msra.mxu1 %v9443_v4  ;;  %v8215_v4 = vld [vmem:[%s11576_s17 + $0xa8] sm:$0xff] }
0x39fe   :  { %9448 = vmatprep.subr.bf16.mxu1 %v9447_v9 }
0x3a00   :  { %9119 = vmatmul.mubr.msk.f32.vlgmr.msra.gmra.mrb[86].mxu1 %vm1016_vm3, %v11227_v17 }
0x3a01   :  { %9450 = vmatpush3.bf16.msra.mxu1 %v9447_v9 }
0x3a02   :  { %9452 = vmatprep.subr.bf16.mxu1 %v9451_v0 }
0x3a05   :  { %9454 = vmatpush3.bf16.msra.mxu1 %v9451_v0  ;;  %v9487_v0 = vpack.c.bf16 %v8217_v26, %v8216_v23 }
0x3ad3   :  { %v9120_v14 = vpop.f32.mrb[86].mxu1 }
0x3ad4   :  { %v7655_v18 = vadd.f32 %v9120_v14, %v11246_v21  ;;  %v7390_v24 = vpop.f32.mrb[87].mxu1  ;;  %v7400_v59 = vsub.f32 %v7323_v58, %v9120_v14 }
0x3ad5   :  { %v7399_v2 = vsub.f32 %v7322_v62, %v7390_v24  ;;  %v7654_v28 = vadd.f32 %v7390_v24, %v11248_v22  ;;  %v8214_v62 = vld [vmem:[%s11576_s17 + $0xa0] sm:$0xff] }
0x3ad6   :  { %v9483_v9 = vpack.c.bf16 %v8215_v4, %v8214_v62 }
0x3ad7   :  { %9129 = vmatprep.mubr.msk.f32.mxu1 %vm256_vm0, %v7399_v2 }
0x3ad8   :  { %9130 = vmatmul.mubr.msk.f32.vlgmr.msra.gmra.mrb[88].mxu1 %vm256_vm0, %v7400_v59 }
0x3ad9   :  { %9147 = vmatprep.mubr.msk.f32.mxu1 %vm1016_vm3, %v11169_v13 }
0x3bab   :  { %v9131_v38 = vpop.f32.mrb[88].mxu1 }
0x3bac   :  { %v7478_v36 = vpop.f32.mrb[89].mxu1  ;;  %v7488_v8 = vmax.f32 %v9131_v38, 0.0 }
0x3bad   :  { %v7487_v21 = vmax.f32 %v7478_v36, 0.0 }
0x3baf   :  { %9140 = vmatprep.mubr.msk.f32.mxu0 %vm256_vm0, %v7487_v21  ;;  %v8220_v21 = vld [vmem:[#allocation16] ss:$0 sm:$0xff] }
0x3bb0   :  { %9141 = vmatmul.mubr.msk.f32.vlgmr.msra.gmra.mrb[80].mxu0 %vm256_vm0, %v7488_v8 }
0x3bb1   :  { %9470 = vmatpush3.bf16.msra.mxu0 %v9467_v16 }
0x3bb2   :  { %9472 = vmatprep.subr.bf16.mxu0 %v9471_v45 }
0x3bb5   :  { %9474 = vmatpush3.bf16.msra.mxu0 %v9471_v45 }
0x3bb6   :  { %9476 = vmatprep.subr.bf16.mxu0 %v9475_v46 }
0x3bb9   :  { %9478 = vmatpush3.bf16.msra.mxu0 %v9475_v46 }
0x3bba   :  { %9480 = vmatprep.subr.bf16.mxu0 %v9479_v19 }
0x3bbd   :  { %9482 = vmatpush3.bf16.msra.mxu0 %v9479_v19 }
0x3bbe   :  { %9484 = vmatprep.subr.bf16.mxu0 %v9483_v9 }
0x3bc1   :  { %9486 = vmatpush3.bf16.msra.mxu0 %v9483_v9 }
0x3bc2   :  { %9488 = vmatprep.subr.bf16.mxu0 %v9487_v0 }
0x3bc5   :  { %9490 = vmatpush3.bf16.msra.mxu0 %v9487_v0 }
0x3c83   :  { %v9142_v22 = vpop.f32.mrb[80].mxu0 }
0x3c84   :  { %v7576_v10 = vadd.f32 %v9142_v22, %v7400_v59  ;;  %v7566_v1 = vpop.f32.mrb[81].mxu0 }
0x3c85   :  { %v7575_v30 = vadd.f32 %v7566_v1, %v7399_v2  ;;  %v8221_v1 = vld [vmem:[#allocation18] ss:$0 sm:$0xff] }
0x3c87   :  { %v9463_v32 = vpack.c.bf16 %v7576_v10, %v7575_v30 }
0x3c89   :  { %9464 = vmatprep.subr.bf16.mxu1 %v9463_v32 }
0x3c8a   :  { %9466 = vmatpush3.bf16.msra.mxu1 %v9463_v32 }
0x3c8d   :  { %9148 = vmatmul.mubr.msk.f32.vlgmr.msra.gmra.mrb[90].mxu1 %vm1016_vm3, %v11227_v17 }
0x3c8e   :  { %9181 = vmatprep.mubr.msk.f32.mxu1 %vm1016_vm3, %v7821_v40 }
0x3d60   :  { %v9149_v13 = vpop.f32.mrb[90].mxu1 }
0x3d61   :  { %v7653_v27 = vsub.f32 %v7576_v10, %v9149_v13  ;;  %v11468_v12 = vadd.f32 %v9149_v13, %v7655_v18  ;;  %v7643_v33 = vpop.f32.mrb[91].mxu1 }
0x3d62   :  { %v7652_v60 = vsub.f32 %v7575_v30, %v7643_v33  ;;  %v7656_v34 = vadd.f32 %v7654_v28, %v7643_v33  ;;  %v232_v33 = vld [vmem:[%s11579_s20] sm:$0xff] }
0x3d63   :  { %v7781_v35 = vsel %vm256_vm0, %v7653_v27, 0.0  ;;  %v7661_v17 = vrot.slane %v11468_v12, 1  ;;  %v7659_v28 = vrot.slane %v11468_v12, 7 }
0x3d64   :  { %7782 = vadd.xlane.f32.xlu1 %v7781_v35  ;;  %v7778_v20 = vsel %vm256_vm0, %v7652_v60, 0.0  ;;  %v7660_v37 = vrot.slane %v7656_v34, 1  ;;  %v7658_v55 = vrot.slane %v7656_v34, 7  ;;  %v234_v35 = vld [vmem:[%s11579_s20 + $0x10] sm:$0xff] }
0x3d65   :  { %7779 = vadd.xlane.f32.xlu0 %v7778_v20  ;;  %v235_v20 = vld [vmem:[%s11579_s20 + $0x18] sm:$0xff] }
0x3d75   :  { %7664 = vrot.lane.b32.xlu1 %v7656_v34, %s10127_s29 }
0x3d79   :  { %7672 = vrot.lane.b32.xlu1 %v7660_v37, %s10114_s22  ;;  %v9499_v37 = vpack.c.bf16 %v235_v20, %v234_v35 }
0x3d7d   :  { %7674 = vrot.lane.b32.xlu1 %v7661_v17, %s10114_s22  ;;  %s11612_s22 = sld [smem:[#allocation30_spill]] }
0x3d83   :  { %v244_v17 = vld [vmem:[%s11612_s22 + $0x8] sm:$0xff]  ;;  %v243_v57 = vld [vmem:[%s11612_s22] sm:$0xff] }
0x3df1   :  { %v7783_v50 = vpop.xlane.xlu1 %7782 }
0x3df2   :  { %v7786_v51 = vmul.f32 0.03125, %v7783_v50  ;;  %v7780_v52 = vpop.xlane.xlu0 %7779 }
0x3df3   :  { %v7785_v44 = vmul.f32 0.03125, %v7780_v52 }
0x3df4   :  { %v7788_v53 = vsub.f32 %v7653_v27, %v7786_v51 }
0x3df5   :  { %v7787_v54 = vsub.f32 %v7652_v60, %v7785_v44  ;;  %v7665_v42 = vpop.permute.xlu1 %7664  ;;  %v233_v60 = vld [vmem:[%s11579_s20 + $0x8] sm:$0xff] }
0x3df6   :  { %v7678_v5 = vsel %vm256_vm0, %v7658_v55, %v7665_v42  ;;  %v7790_v58 = vmul.f32 %v7788_v53, %v7788_v53  ;;  %v9495_v34 = vpack.c.bf16 %v233_v60, %v232_v33 }
0x3df7   :  { %v7789_v56 = vmul.f32 %v7787_v54, %v7787_v54 }
0x3df8   :  { %v7794_v31 = vsel %vm256_vm0, %v7790_v58, 0.0 }
0x3df9   :  { %v7673_v7 = vpop.permute.xlu1 %7672  ;;  %v7791_v25 = vsel %vm256_vm0, %v7789_v56, 0.0 }
0x3dfa   :  { %v7680_v61 = vsel %vm3918_vm6, %v7678_v5, %v7673_v7  ;;  %7792 = vadd.xlane.f32.xlu0 %v7791_v25 }
0x3dfb   :  { %9174 = vmatprep.mubr.msk.f32.mxu0 %vm3933_vm7, %v7680_v61 }
0x3dfd   :  { %v7675_v3 = vpop.permute.xlu1 %7674 }
0x3dfe   :  { %7795 = vadd.xlane.f32.xlu0 %v7794_v31 }
0x3e14   :  { %7666 = vrot.lane.b32.xlu0 %v11468_v12, %s10127_s29  ;;  %v7822_v12 = vld [vmem:[%s11611_s13 + $0x8] sm:$0xff] }
0x3e87   :  { %v7793_v63 = vpop.xlane.xlu0 %7792 }
0x3e88   :  { %v7797_v15 = vmul.f32 0.03125, %v7793_v63 }
0x3e8a   :  { %v7799_v14 = vadd.f32 1e-05, %v7797_v15 }
0x3e8b   :  { %v7796_v18 = vpop.xlane.xlu0 %7795 }
0x3e8c   :  { %9808 = vrsqrt.f32 %v7799_v14  ;;  %v7798_v24 = vmul.f32 0.03125, %v7796_v18 }
0x3e8e   :  { %v7800_v2 = vadd.f32 1e-05, %v7798_v24 }
0x3e8f   :  { %v7667_v59 = vpop.permute.xlu0 %7666 }
0x3e90   :  { %9810 = vrsqrt.f32 %v7800_v2  ;;  %v7679_v29 = vsel %vm256_vm0, %v7659_v28, %v7667_v59 }
0x3e91   :  { %v7681_v6 = vsel %vm3918_vm6, %v7679_v29, %v7675_v3 }
0x3e92   :  { %9175 = vmatmul.mubr.msk.f32.vlgmr.msra.gmra.mrb[42].mxu0 %vm3933_vm7, %v7681_v6 }
0x3e96   :  { %v9809_v38 = vpop.eup %9808 }
0x3e97   :  { %v7803_v36 = vmul.f32 %v9809_v38, %v7787_v54 }
0x3e99   :  { %v7811_v10 = vmul.f32 %v8220_v21, %v7803_v36 }
0x3e9a   :  { %v9811_v8 = vpop.eup %9810 }
0x3e9b   :  { %v7804_v22 = vmul.f32 %v9811_v8, %v7788_v53  ;;  %v7819_v32 = vadd.f32 %v8221_v1, %v7811_v10 }
0x3e9d   :  { %v7812_v30 = vmul.f32 %v8220_v21, %v7804_v22 }
0x3e9f   :  { %v7820_v13 = vadd.f32 %v8221_v1, %v7812_v30 }
0x3ea1   :  { %v9491_v27 = vpack.c.bf16 %v7820_v13, %v7819_v32 }
0x3ea3   :  { %9492 = vmatprep.subr.bf16.mxu1 %v9491_v27 }
0x3ea4   :  { %9494 = vmatpush3.bf16.msra.mxu1 %v9491_v27 }
0x3ea5   :  { %9496 = vmatprep.subr.bf16.mxu1 %v9495_v34 }
0x3ea7   :  { %9182 = vmatmul.mubr.msk.f32.vlgmr.msra.gmra.mrb[92].mxu1 %vm1016_vm3, %v7822_v12 }
0x3ea8   :  { %9498 = vmatpush3.bf16.msra.mxu1 %v9495_v34 }
0x3ea9   :  { %9500 = vmatprep.subr.bf16.mxu1 %v9499_v37 }
0x3eac   :  { %9502 = vmatpush3.bf16.msra.mxu1 %v9499_v37 }
0x3f65   :  { %v9176_v39 = vpop.f32.mrb[42].mxu0 }
0x3f66   :  { %v9503_v41 = vadd.f32 %v9176_v39, %v244_v17  ;;  %v7767_v16 = vpop.f32.mrb[43].mxu0 }
0x3f67   :  { %v9504_v43 = vadd.f32 %v7767_v16, %v243_v57 }
0x3f68   :  { %7997 = vrot.lane.b32.xlu1 %v9503_v41, %s10128_s11 }
0x3f69   :  { %7995 = vrot.lane.b32.xlu0 %v9504_v43, %s10128_s11 }
0x3f7a   :  { %v9183_v45 = vpop.f32.mrb[92].mxu1 }
0x3f7b   :  { %v7895_v47 = vpop.f32.mrb[93].mxu1  ;;  %v7905_v46 = vsub.f32 %v7820_v13, %v9183_v45 }
0x3f7c   :  { %v7904_v11 = vsub.f32 %v7819_v32, %v7895_v47 }
0x3f7e   :  { %9192 = vmatprep.mubr.msk.f32.mxu1 %vm256_vm0, %v7904_v11 }
0x3f7f   :  { %9193 = vmatmul.mubr.msk.f32.vlgmr.msra.gmra.mrb[94].mxu1 %vm256_vm0, %v7905_v46 }
0x3fda   :  { %v7998_v51 = vpop.permute.xlu1 %7997 }
0x3fdb   :  { %v7996_v44 = vpop.permute.xlu0 %7995 }
0x4052   :  { %v9194_v49 = vpop.f32.mrb[94].mxu1 }
0x4053   :  { %v7990_v19 = vadd.f32 %v9194_v49, %v8224_v48  ;;  %v7984_v50 = vpop.f32.mrb[95].mxu1 }
0x4054   :  { %v7985_v52 = vadd.f32 %v8224_v48, %v7984_v50 }
0x4055   :  { %v8003_v53 = vsel %vm8001_vm8, %v7990_v19, %v7998_v51 }
0x4056   :  { %8005 = vst.msk [vmem:[%s11613_s10 + $0x8] sm:$0xff] %vm346_vm2, %v8003_v53  ;;  %v8002_v54 = vsel %vm8001_vm8, %v7985_v52, %v7996_v44 }
0x4057   :  { %8004 = vst.msk [vmem:[%s11613_s10] sm:$0xff] %vm346_vm2, %v8002_v54 }
0x4058   :  { %8010 = vsyncpa [#allocation3], 1 }
0x4059   :  { %8011 = vsyncpa [#allocation5], 1 }
0x405a   :  { %8012 = vsyncpa [#allocation8], 1 }
0x405b   :  { %8013 = vsyncpa [#allocation11], 1 }
0x405c   :  { %8014 = vsyncpa [#allocation14], 1 }
0x405d   :  { %8015 = vsyncpa [#allocation17], 1 }
0x405e   :  { %8016 = vsyncpa [#allocation20], 1 }

</bundles_post_ra>
